<compile_context>
chip_gen: v5e
topology: v5e:2x2
jax: 0.10.0
libtpu: 0.0.40
codegen_flags: <defaults>
</compile_context>

<pallas_src>
import math
from functools import partial

import jax
import jax.numpy as jnp
from jax.experimental import pallas as pl
from jax.experimental.pallas import tpu as pltpu

LN_EPS = 1e-5
# MXU input dtype (accumulation is always f32). Set to jnp.float32 for exact f32 parity.
COMPUTE_DTYPE = jnp.bfloat16


# ---------------------------- tiling / compiler-param helpers ----------------------------

def _pick_row_tile(M, target=512):
    """Largest multiple-of-8 row tile that evenly divides M, capped at `target`."""
    if M <= 8 or M % 8 != 0:
        return M
    cap = min(target, M)
    cap -= cap % 8
    best = M
    for tm in range(cap, 7, -8):
        if M % tm == 0:
            best = tm
            break
    if best == M and M >= 16:
        half = (M // 2) - (M // 2) % 8
        for tm in range(min(target, half), 7, -8):
            if M % tm == 0:
                return tm
    return best


def _pick_col_tile(N, target=512):
    """Lane-dense column tile: multiple of 128 dividing N, capped at `target`."""
    if N <= 128 or N % 128 != 0:
        return N
    cap = min(target, N)
    cap -= cap % 128
    for tn in range(cap, 127, -128):
        if N % tn == 0:
            return tn
    return N


def _vmem_cap_bytes():
    try:
        return int(pltpu.get_tpu_info().vmem_capacity_bytes)
    except Exception:
        return 64 * 1024 * 1024          # conservative (v7x per-TC VMEM)


def _compiler_params(semantics, est_bytes):
    """Raise the scoped-VMEM limit only when the estimated working set needs it."""
    limit = int(est_bytes * 1.3)
    if limit <= 32 * 1024 * 1024:
        return pltpu.CompilerParams(dimension_semantics=semantics)
    limit = min(limit, _vmem_cap_bytes() - 4 * 1024 * 1024)
    return pltpu.CompilerParams(dimension_semantics=semantics, vmem_limit_bytes=limit)


def _attn_vmem_est(s_kv, tq, d):
    cb = jnp.dtype(COMPUTE_DTYPE).itemsize
    return (2 * s_kv * d * 4            # full K/V-source block (double buffered)
            + 4 * tq * d * 4            # query-tile input + output blocks
            + 8 * d * d * cb            # wq + wkv + wo (double buffered)
            + 2 * s_kv * d * cb         # per-head K/V scratch
            + 2 * s_kv * d * 4          # kv projection temporary (qi == 0)
            + 2 * tq * s_kv * 4         # scores / exp temporaries
            + 4 * tq * d * 4)           # q, acc, y, LN temporaries


def _ffn_vmem_est(tm, d, f):
    cb = jnp.dtype(COMPUTE_DTYPE).itemsize
    return 4 * tm * d * 4 + 4 * d * f * cb + 2 * tm * f * 4 + 2 * tm * d * 4


def _linear_vmem_est(tm, k, tn):
    cb = jnp.dtype(COMPUTE_DTYPE).itemsize
    return 2 * tm * k * 4 + 2 * k * tn * cb + 2 * tm * tn * 4 + 2 * tn * 4


# ---------------------------- in-kernel helpers ----------------------------

def _ln(y, g, b):
    mu = jnp.mean(y, axis=-1, keepdims=True)
    var = jnp.mean((y - mu) ** 2, axis=-1, keepdims=True)
    return (y - mu) * jax.lax.rsqrt(var + LN_EPS) * g + b


def _project_kv(src, wkv_ref, bkv_ref, k_sc, v_sc, nhead):
    """Fused (S, D) @ (D, 2D) K/V projection -> per-head VMEM scratch (done once per batch)."""
    s_kv, D = src.shape
    Dh = D // nhead
    kv = jnp.dot(src.astype(COMPUTE_DTYPE), wkv_ref[...],
                 preferred_element_type=jnp.float32) + bkv_ref[...]
    for h in range(nhead):                       # static head loop
        k_sc[h] = kv[:, h * Dh:(h + 1) * Dh].astype(COMPUTE_DTYPE)
        v_sc[h] = kv[:, D + h * Dh:D + (h + 1) * Dh].astype(COMPUTE_DTYPE)


def _attn_tile_core(xq, wq_ref, bq_ref, wo_ref, bo_ref, g_ref, bn_ref, k_sc, v_sc, nhead):
    """Per-query-tile MHA with out-projection fused into the head loop, + residual + LayerNorm."""
    tq, D = xq.shape
    Dh = D // nhead
    scale = 1.0 / math.sqrt(float(Dh))
    q = jnp.dot(xq.astype(COMPUTE_DTYPE), wq_ref[...],
                preferred_element_type=jnp.float32) + bq_ref[...]
    acc = jnp.zeros((tq, D), jnp.float32)
    for h in range(nhead):                       # static head loop (no per-head launches)
        qh = (q[:, h * Dh:(h + 1) * Dh] * scale).astype(COMPUTE_DTYPE)
        kh = k_sc[h]                             # (S_kv, Dh), head-major -> aligned load
        vh = v_sc[h]
        s = jax.lax.dot_general(qh, kh, (((1,), (1,)), ((), ())),
                                preferred_element_type=jnp.float32)       # (tq, S_kv)
        m = jnp.max(s, axis=-1, keepdims=True)
        p = jnp.exp(s - m)
        denom = jnp.sum(p, axis=-1, keepdims=True)
        ctx = jnp.dot(p.astype(COMPUTE_DTYPE), vh, preferred_element_type=jnp.float32)
        ctx = ctx * pl.reciprocal(denom, approx=True)       # deferred normalization (tq, Dh)
        acc = acc + jnp.dot(ctx.astype(COMPUTE_DTYPE), wo_ref[h * Dh:(h + 1) * Dh, :],
                            preferred_element_type=jnp.float32)           # fused out-proj
    y = xq + acc + bo_ref[...]
    return _ln(y, g_ref[...], bn_ref[...])


# ---------------------------- Pallas kernels ----------------------------

def _self_attn_block_kernel(x_ref, wq_ref, bq_ref, wkv_ref, bkv_ref, wo_ref, bo_ref,
                            g_ref, bn_ref, o_ref, k_sc, v_sc, *, nhead, tq):
    qi = pl.program_id(1)

    @pl.when(qi == 0)                            # K/V projected once per batch element
    def _():
        _project_kv(x_ref[...], wkv_ref, bkv_ref, k_sc, v_sc, nhead)

    row0 = qi * tq
    if tq % 8 == 0:
        row0 = pl.multiple_of(row0, 8)
    xq = x_ref[pl.ds(row0, tq), :]               # sublane-aligned query-tile slice
    o_ref[...] = _attn_tile_core(xq, wq_ref, bq_ref, wo_ref, bo_ref,
                                 g_ref, bn_ref, k_sc, v_sc, nhead)


def _cross_attn_block_kernel(x_ref, mem_ref, wq_ref, bq_ref, wkv_ref, bkv_ref, wo_ref, bo_ref,
                             g_ref, bn_ref, o_ref, k_sc, v_sc, *, nhead):
    qi = pl.program_id(1)

    @pl.when(qi == 0)
    def _():
        _project_kv(mem_ref[...], wkv_ref, bkv_ref, k_sc, v_sc, nhead)

    o_ref[...] = _attn_tile_core(x_ref[...], wq_ref, bq_ref, wo_ref, bo_ref,
                                 g_ref, bn_ref, k_sc, v_sc, nhead)


def _ffn_core(x, w1_ref, b1_ref, w2_ref, b2_ref, g_ref, bn_ref):
    h = jnp.dot(x.astype(COMPUTE_DTYPE), w1_ref[...],
                preferred_element_type=jnp.float32) + b1_ref[...]
    h = jnp.maximum(h, 0.0)
    f = jnp.dot(h.astype(COMPUTE_DTYPE), w2_ref[...],
                preferred_element_type=jnp.float32) + b2_ref[...]
    return _ln(x + f, g_ref[...], bn_ref[...])


def _ffn_block_kernel(x_ref, w1_ref, b1_ref, w2_ref, b2_ref, g_ref, bn_ref, o_ref):
    o_ref[...] = _ffn_core(x_ref[...], w1_ref, b1_ref, w2_ref, b2_ref, g_ref, bn_ref)


def _ffn_block_final_norm_kernel(x_ref, w1_ref, b1_ref, w2_ref, b2_ref, g_ref, bn_ref,
                                 g2_ref, bn2_ref, o_ref):
    # last layer of a stack: also applies the stack's final LayerNorm (fused, no extra pass)
    y = _ffn_core(x_ref[...], w1_ref, b1_ref, w2_ref, b2_ref, g_ref, bn_ref)
    o_ref[...] = _ln(y, g2_ref[...], bn2_ref[...])


def _layernorm_kernel(x_ref, g_ref, b_ref, o_ref):
    o_ref[...] = _ln(x_ref[...], g_ref[...], b_ref[...])


def _linear_kernel(x_ref, wt_ref, b_ref, o_ref):
    o_ref[...] = (jnp.dot(x_ref[...].astype(COMPUTE_DTYPE), wt_ref[...],
                          preferred_element_type=jnp.float32) + b_ref[...])


# ---------------------------- pallas_call wrappers ----------------------------

def pallas_self_attn_block(x, mha, g, bn, nhead):
    B, S, D = x.shape
    Dh = D // nhead
    TQ = _pick_row_tile(S, target=256)
    est = _attn_vmem_est(S, TQ, D)
    return pl.pallas_call(
        partial(_self_attn_block_kernel, nhead=nhead, tq=TQ),
        out_shape=jax.ShapeDtypeStruct((B, S, D), jnp.float32),
        grid=(B, S // TQ),
        in_specs=[
            pl.BlockSpec((None, S, D), lambda b, qi: (b, 0, 0)),    # x (Q source + K/V source)
            pl.BlockSpec((D, D), lambda b, qi: (0, 0)),             # wq_t
            pl.BlockSpec((1, D), lambda b, qi: (0, 0)),             # bq
            pl.BlockSpec((D, 2 * D), lambda b, qi: (0, 0)),         # wkv_t
            pl.BlockSpec((1, 2 * D), lambda b, qi: (0, 0)),         # bkv
            pl.BlockSpec((D, D), lambda b, qi: (0, 0)),             # wo_t
            pl.BlockSpec((1, D), lambda b, qi: (0, 0)),             # bo
            pl.BlockSpec((1, D), lambda b, qi: (0, 0)),             # ln gamma
            pl.BlockSpec((1, D), lambda b, qi: (0, 0)),             # ln beta
        ],
        out_specs=pl.BlockSpec((None, TQ, D), lambda b, qi: (b, qi, 0)),
        scratch_shapes=[pltpu.VMEM((nhead, S, Dh), COMPUTE_DTYPE),
                        pltpu.VMEM((nhead, S, Dh), COMPUTE_DTYPE)],
        compiler_params=_compiler_params(("parallel", "arbitrary"), est),
    )(x, mha["wq_t"], mha["bq"], mha["wkv_t"], mha["bkv"], mha["wo_t"], mha["bo"], g, bn)


def pallas_cross_attn_block(x, memory, mha, g, bn, nhead):
    B, St, D = x.shape
    Ss = memory.shape[1]
    Dh = D // nhead
    TQ = _pick_row_tile(St, target=256)
    est = _attn_vmem_est(Ss, TQ, D) + 2 * TQ * D * 4
    return pl.pallas_call(
        partial(_cross_attn_block_kernel, nhead=nhead),
        out_shape=jax.ShapeDtypeStruct((B, St, D), jnp.float32),
        grid=(B, St // TQ),
        in_specs=[
            pl.BlockSpec((None, TQ, D), lambda b, qi: (b, qi, 0)),  # query tile
            pl.BlockSpec((None, Ss, D), lambda b, qi: (b, 0, 0)),   # encoder memory (K/V source)
            pl.BlockSpec((D, D), lambda b, qi: (0, 0)),             # wq_t
            pl.BlockSpec((1, D), lambda b, qi: (0, 0)),             # bq
            pl.BlockSpec((D, 2 * D), lambda b, qi: (0, 0)),         # wkv_t
            pl.BlockSpec((1, 2 * D), lambda b, qi: (0, 0)),         # bkv
            pl.BlockSpec((D, D), lambda b, qi: (0, 0)),             # wo_t
            pl.BlockSpec((1, D), lambda b, qi: (0, 0)),             # bo
            pl.BlockSpec((1, D), lambda b, qi: (0, 0)),             # ln gamma
            pl.BlockSpec((1, D), lambda b, qi: (0, 0)),             # ln beta
        ],
        out_specs=pl.BlockSpec((None, TQ, D), lambda b, qi: (b, qi, 0)),
        scratch_shapes=[pltpu.VMEM((nhead, Ss, Dh), COMPUTE_DTYPE),
                        pltpu.VMEM((nhead, Ss, Dh), COMPUTE_DTYPE)],
        compiler_params=_compiler_params(("parallel", "arbitrary"), est),
    )(x, memory, mha["wq_t"], mha["bq"], mha["wkv_t"], mha["bkv"], mha["wo_t"], mha["bo"], g, bn)


def pallas_ffn_block(x, w1_t, b1, w2_t, b2, g, bn, final_g=None, final_b=None):
    """LayerNorm(x + linear2(relu(linear1(x)))) [optionally followed by the stack's final LN]."""
    B, S, D = x.shape
    M = B * S
    F = w1_t.shape[1]
    TM = _pick_row_tile(M)
    x2 = x.reshape(M, D)
    use_final = final_g is not None
    in_specs = [
        pl.BlockSpec((TM, D), lambda i: (i, 0)),
        pl.BlockSpec((D, F), lambda i: (0, 0)),
        pl.BlockSpec((1, F), lambda i: (0, 0)),
        pl.BlockSpec((F, D), lambda i: (0, 0)),
        pl.BlockSpec((1, D), lambda i: (0, 0)),
        pl.BlockSpec((1, D), lambda i: (0, 0)),
        pl.BlockSpec((1, D), lambda i: (0, 0)),
    ]
    args = [x2, w1_t, b1, w2_t, b2, g, bn]
    kern = _ffn_block_kernel
    if use_final:
        in_specs += [pl.BlockSpec((1, D), lambda i: (0, 0)),
                     pl.BlockSpec((1, D), lambda i: (0, 0))]
        args += [final_g, final_b]
        kern = _ffn_block_final_norm_kernel
    out = pl.pallas_call(
        kern,
        out_shape=jax.ShapeDtypeStruct((M, D), jnp.float32),
        grid=(M // TM,),
        in_specs=in_specs,
        out_specs=pl.BlockSpec((TM, D), lambda i: (i, 0)),
        compiler_params=_compiler_params(("parallel",), _ffn_vmem_est(TM, D, F)),
    )(*args)
    return out.reshape(B, S, D)


def pallas_layernorm(x3, g, b):
    # only used as a fallback when an encoder/decoder stack has zero layers
    B, S, D = x3.shape
    M = B * S
    TM = _pick_row_tile(M)
    out = pl.pallas_call(
        _layernorm_kernel,
        out_shape=jax.ShapeDtypeStruct((M, D), jnp.float32),
        grid=(M // TM,),
        in_specs=[pl.BlockSpec((TM, D), lambda i: (i, 0)),
                  pl.BlockSpec((1, D), lambda i: (0, 0)),
                  pl.BlockSpec((1, D), lambda i: (0, 0))],
        out_specs=pl.BlockSpec((TM, D), lambda i: (i, 0)),
        compiler_params=pltpu.CompilerParams(dimension_semantics=("parallel",)),
    )(x3.reshape(M, D), g, b)
    return out.reshape(B, S, D)


def pallas_linear(x2, w_t, b):
    # x2: [M, K] f32, w_t: [K, N] (pre-transposed, vocab padded to %128), b: [1, N] f32
    M, K = x2.shape
    N = w_t.shape[1]
    TM = _pick_row_tile(M)
    TN = _pick_col_tile(N)
    return pl.pallas_call(
        _linear_kernel,
        out_shape=jax.ShapeDtypeStruct((M, N), jnp.float32),
        grid=(M // TM, N // TN),
        in_specs=[
            pl.BlockSpec((TM, K), lambda i, j: (i, 0)),
            pl.BlockSpec((K, TN), lambda i, j: (0, j)),
            pl.BlockSpec((1, TN), lambda i, j: (0, j)),
        ],
        out_specs=pl.BlockSpec((TM, TN), lambda i, j: (i, j)),
        compiler_params=_compiler_params(("parallel", "parallel"),
                                         _linear_vmem_est(TM, K, TN)),
    )(x2, w_t, b)


# ---------------------------- model composition ----------------------------

@partial(jax.jit, static_argnames=("nhead", "vocab_size"))
def transformer_seq2seq_forward(params, src, tgt, *, nhead, vocab_size):
    emb = params["embedding_scaled"]      # sqrt(d_model) folded in at prepare time
    pe = params["pe"]
    D = emb.shape[1]

    # ----- encode -----  (gather + PE add fused into a single XLA op; no standalone kernel)
    x = emb[src] + pe[:, : src.shape[1]]
    enc_layers = params["encoder_layers"]
    for li, lp in enumerate(enc_layers):
        last = li == len(enc_layers) - 1
        x = pallas_self_attn_block(x, lp["self_attn"], lp["norm1_g"], lp["norm1_b"], nhead)
        x = pallas_ffn_block(
            x, lp["lin1_w_t"], lp["lin1_b"], lp["lin2_w_t"], lp["lin2_b"],
            lp["norm2_g"], lp["norm2_b"],
            final_g=params["enc_norm_g"] if last else None,
            final_b=params["enc_norm_b"] if last else None)
    if not enc_layers:
        x = pallas_layernorm(x, params["enc_norm_g"], params["enc_norm_b"])
    memory = x

    # ----- decode -----
    y = emb[tgt] + pe[:, : tgt.shape[1]]
    dec_layers = params["decoder_layers"]
    for li, lp in enumerate(dec_layers):
        last = li == len(dec_layers) - 1
        y = pallas_self_attn_block(y, lp["self_attn"], lp["norm1_g"], lp["norm1_b"], nhead)
        y = pallas_cross_attn_block(y, memory, lp["cross_attn"],
                                    lp["norm2_g"], lp["norm2_b"], nhead)
        y = pallas_ffn_block(
            y, lp["lin1_w_t"], lp["lin1_b"], lp["lin2_w_t"], lp["lin2_b"],
            lp["norm3_g"], lp["norm3_b"],
            final_g=params["dec_norm_g"] if last else None,
            final_b=params["dec_norm_b"] if last else None)
    if not dec_layers:
        y = pallas_layernorm(y, params["dec_norm_g"], params["dec_norm_b"])

    B, St = tgt.shape
    logits_p = pallas_linear(y.reshape(B * St, D), params["fc_out_w_t"], params["fc_out_b"])
    return logits_p[:, :vocab_size].reshape(B, St, vocab_size)


# ---------------------------- parameter init / prep ----------------------------

def _init_linear(key, out_dim, in_dim):
    k1, k2 = jax.random.split(key)
    bound = 1.0 / math.sqrt(in_dim)
    w = jax.random.uniform(k1, (out_dim, in_dim), jnp.float32, -bound, bound)
    b = jax.random.uniform(k2, (out_dim,), jnp.float32, -bound, bound)
    return w, b


def _init_mha(key, d_model):
    k1, k2 = jax.random.split(key)
    bound = 1.0 / math.sqrt(d_model)
    in_w = jax.random.uniform(k1, (3 * d_model, d_model), jnp.float32, -bound, bound)
    in_b = jnp.zeros((3 * d_model,), jnp.float32)
    ow, ob = _init_linear(k2, d_model, d_model)
    return {"in_proj_w": in_w, "in_proj_b": in_b, "out_proj_w": ow, "out_proj_b": ob}


def _init_encoder_layer(key, d_model, dff):
    ks = jax.random.split(key, 3)
    w1, b1 = _init_linear(ks[1], dff, d_model)
    w2, b2 = _init_linear(ks[2], d_model, dff)
    return {
        "self_attn": _init_mha(ks[0], d_model),
        "lin1_w": w1, "lin1_b": b1, "lin2_w": w2, "lin2_b": b2,
        "norm1_g": jnp.ones((d_model,), jnp.float32), "norm1_b": jnp.zeros((d_model,), jnp.float32),
        "norm2_g": jnp.ones((d_model,), jnp.float32), "norm2_b": jnp.zeros((d_model,), jnp.float32),
    }


def _init_decoder_layer(key, d_model, dff):
    ks = jax.random.split(key, 4)
    w1, b1 = _init_linear(ks[2], dff, d_model)
    w2, b2 = _init_linear(ks[3], d_model, dff)
    return {
        "self_attn": _init_mha(ks[0], d_model),
        "cross_attn": _init_mha(ks[1], d_model),
        "lin1_w": w1, "lin1_b": b1, "lin2_w": w2, "lin2_b": b2,
        "norm1_g": jnp.ones((d_model,), jnp.float32), "norm1_b": jnp.zeros((d_model,), jnp.float32),
        "norm2_g": jnp.ones((d_model,), jnp.float32), "norm2_b": jnp.zeros((d_model,), jnp.float32),
        "norm3_g": jnp.ones((d_model,), jnp.float32), "norm3_b": jnp.zeros((d_model,), jnp.float32),
    }


def _make_positional_encoding(max_len, d_model):
    position = jnp.arange(max_len, dtype=jnp.float32)[:, None]
    div_term = jnp.exp(
        jnp.arange(0, d_model, 2, dtype=jnp.float32) * (-math.log(10000.0) / d_model))
    pe = jnp.zeros((max_len, d_model), jnp.float32)
    pe = pe.at[:, 0::2].set(jnp.sin(position * div_term))
    pe = pe.at[:, 1::2].set(jnp.cos(position * div_term))
    return pe[None]


def init_params(key, vocab_size, d_model, nhead, n_enc, n_dec, dff, max_len):
    ks = jax.random.split(key, 2 + n_enc + n_dec)
    embedding = jax.random.normal(ks[0], (vocab_size, d_model), jnp.float32)
    fc_w, fc_b = _init_linear(ks[1], vocab_size, d_model)
    enc_layers = [_init_encoder_layer(ks[2 + i], d_model, dff) for i in range(n_enc)]
    dec_layers = [_init_decoder_layer(ks[2 + n_enc + i], d_model, dff) for i in range(n_dec)]
    return {
        "d_model": d_model, "nhead": nhead, "vocab_size": vocab_size,
        "embedding": embedding,
        "pe": _make_positional_encoding(max_len, d_model),
        "encoder_layers": enc_layers, "decoder_layers": dec_layers,
        "enc_norm_g": jnp.ones((d_model,), jnp.float32),
        "enc_norm_b": jnp.zeros((d_model,), jnp.float32),
        "dec_norm_g": jnp.ones((d_model,), jnp.float32),
        "dec_norm_b": jnp.zeros((d_model,), jnp.float32),
        "fc_out_w": fc_w, "fc_out_b": fc_b,
    }


def _prep_mha(m, d_model):
    w_in = m["in_proj_w"]                 # (3D, D), rows = [Wq; Wk; Wv]
    b_in = m["in_proj_b"]
    return {
        "wq_t": jnp.asarray(w_in[:d_model].T, COMPUTE_DTYPE),        # (D, D)
        "bq": b_in[:d_model].reshape(1, -1).astype(jnp.float32),
        "wkv_t": jnp.asarray(w_in[d_model:].T, COMPUTE_DTYPE),       # (D, 2D)
        "bkv": b_in[d_model:].reshape(1, -1).astype(jnp.float32),
        "wo_t": jnp.asarray(m["out_proj_w"].T, COMPUTE_DTYPE),       # (D, D)
        "bo": m["out_proj_b"].reshape(1, -1).astype(jnp.float32),
    }


def _prep_enc_layer(lp, d_model):
    return {
        "self_attn": _prep_mha(lp["self_attn"], d_model),
        "lin1_w_t": jnp.asarray(lp["lin1_w"].T, COMPUTE_DTYPE), "lin1_b": lp["lin1_b"].reshape(1, -1),
        "lin2_w_t": jnp.asarray(lp["lin2_w"].T, COMPUTE_DTYPE), "lin2_b": lp["lin2_b"].reshape(1, -1),
        "norm1_g": lp["norm1_g"].reshape(1, -1), "norm1_b": lp["norm1_b"].reshape(1, -1),
        "norm2_g": lp["norm2_g"].reshape(1, -1), "norm2_b": lp["norm2_b"].reshape(1, -1),
    }


def _prep_dec_layer(lp, d_model):
    p = _prep_enc_layer(lp, d_model)
    p["cross_attn"] = _prep_mha(lp["cross_attn"], d_model)
    p["norm3_g"] = lp["norm3_g"].reshape(1, -1)
    p["norm3_b"] = lp["norm3_b"].reshape(1, -1)
    return p


def prepare_params(raw):
    """One-time host-side prep: fold sqrt(d_model) into the embedding, pre-transpose / split
    all weights to [in, out] bf16, and pad fc_out to a 128-multiple vocab."""
    d_model = raw["d_model"]
    V = raw["fc_out_w"].shape[0]
    Vp = ((V + 127) // 128) * 128
    fc_w_t = jnp.zeros((d_model, Vp), jnp.float32).at[:, :V].set(raw["fc_out_w"].T)
    fc_b = jnp.zeros((1, Vp), jnp.float32).at[:, :V].set(raw["fc_out_b"][None, :])
    return {
        "embedding_scaled": raw["embedding"] * math.sqrt(float(d_model)),
        "pe": raw["pe"],
        "encoder_layers": [_prep_enc_layer(lp, d_model) for lp in raw["encoder_layers"]],
        "decoder_layers": [_prep_dec_layer(lp, d_model) for lp in raw["decoder_layers"]],
        "enc_norm_g": raw["enc_norm_g"].reshape(1, -1),
        "enc_norm_b": raw["enc_norm_b"].reshape(1, -1),
        "dec_norm_g": raw["dec_norm_g"].reshape(1, -1),
        "dec_norm_b": raw["dec_norm_b"].reshape(1, -1),
        "fc_out_w_t": jnp.asarray(fc_w_t, COMPUTE_DTYPE),
        "fc_out_b": fc_b,
    }


# ---------------------------- main ----------------------------

if __name__ == "__main__":
    key = jax.random.PRNGKey(0)
    vocab_size, d_model, nhead, dff = 64, 32, 4, 64
    n_enc, n_dec = 2, 2
    B, Ssrc, Stgt = 2, 8, 8

    pkey, dkey = jax.random.split(key)
    raw_params = init_params(pkey, vocab_size, d_model, nhead, n_enc, n_dec, dff, max_len=32)
    params = prepare_params(raw_params)

    k1, k2 = jax.random.split(dkey)
    src = jax.random.randint(k1, (B, Ssrc), 0, vocab_size)
    tgt = jax.random.randint(k2, (B, Stgt), 0, vocab_size)

    logits = transformer_seq2seq_forward(params, src, tgt, nhead=nhead, vocab_size=vocab_size)
    logits = jax.block_until_ready(logits)
    assert logits.shape == (B, Stgt, vocab_size), logits.shape
    assert logits.dtype == jnp.float32
    print("KERNEL_OK")
</pallas_src>

<mosaic_0001>
module attributes {stable_mosaic.version = 11 : i64} {
  func.func @_ffn_block_kernel(%arg0: i32, %arg1: memref<8x32xf32, #tpu.memory_space<vmem>>, %arg2: memref<32x64xbf16, #tpu.memory_space<vmem>>, %arg3: memref<1x64xf32, #tpu.memory_space<vmem>>, %arg4: memref<64x32xbf16, #tpu.memory_space<vmem>>, %arg5: memref<1x32xf32, #tpu.memory_space<vmem>>, %arg6: memref<1x32xf32, #tpu.memory_space<vmem>>, %arg7: memref<1x32xf32, #tpu.memory_space<vmem>>, %arg8: memref<8x32xf32, #tpu.memory_space<vmem>>) attributes {dimension_semantics = [#tpu.dimension_semantics<parallel>], iteration_bounds = array<i64: 2>, scalar_prefetch = 0 : i64, scratch_operands = 0 : i64, tpu.core_type = #tpu.core_type<tc>, window_params = [{transform_indices = @transform_0, window_bounds = array<i64: 8, 32>}, {pipeline_mode = #tpu.pipeline_mode<synchronous>, transform_indices = @transform_1, window_bounds = array<i64: 32, 64>}, {pipeline_mode = #tpu.pipeline_mode<synchronous>, transform_indices = @transform_2, window_bounds = array<i64: 1, 64>}, {pipeline_mode = #tpu.pipeline_mode<synchronous>, transform_indices = @transform_3, window_bounds = array<i64: 64, 32>}, {pipeline_mode = #tpu.pipeline_mode<synchronous>, transform_indices = @transform_4, window_bounds = array<i64: 1, 32>}, {pipeline_mode = #tpu.pipeline_mode<synchronous>, transform_indices = @transform_5, window_bounds = array<i64: 1, 32>}, {pipeline_mode = #tpu.pipeline_mode<synchronous>, transform_indices = @transform_6, window_bounds = array<i64: 1, 32>}, {transform_indices = @transform_7, window_bounds = array<i64: 8, 32>}]} {
    %c0 = arith.constant 0 : index
    %c0_0 = arith.constant 0 : index
    %0 = vector.load %arg1[%c0, %c0_0] : memref<8x32xf32, #tpu.memory_space<vmem>>, vector<8x32xf32>
    %1 = arith.truncf %0 : vector<8x32xf32> to vector<8x32xbf16>
    %c0_1 = arith.constant 0 : index
    %c0_2 = arith.constant 0 : index
    %2 = vector.load %arg2[%c0_1, %c0_2] : memref<32x64xbf16, #tpu.memory_space<vmem>>, vector<32x64xbf16>
    %cst = arith.constant dense<0.000000e+00> : vector<8x64xf32>
    %3 = tpu.matmul %1, %2, %cst {dimension_numbers = #tpu.dot_dimension_numbers<[1], [0], [0], [1], [0, 0, 1, 1], [], []>} : vector<8x32xbf16>, vector<32x64xbf16>, vector<8x64xf32> -> vector<8x64xf32>
    %c0_3 = arith.constant 0 : index
    %c0_4 = arith.constant 0 : index
    %4 = vector.load %arg3[%c0_3, %c0_4] : memref<1x64xf32, #tpu.memory_space<vmem>>, vector<1x64xf32>
    %5 = vector.broadcast %4 : vector<1x64xf32> to vector<8x64xf32>
    %6 = arith.addf %3, %5 : vector<8x64xf32>
    %cst_5 = arith.constant 0.000000e+00 : f32
    %7 = vector.broadcast %cst_5 : f32 to vector<8x64xf32>
    %8 = arith.maximumf %6, %7 : vector<8x64xf32>
    %9 = arith.truncf %8 : vector<8x64xf32> to vector<8x64xbf16>
    %c0_6 = arith.constant 0 : index
    %c0_7 = arith.constant 0 : index
    %10 = vector.load %arg4[%c0_6, %c0_7] : memref<64x32xbf16, #tpu.memory_space<vmem>>, vector<64x32xbf16>
    %cst_8 = arith.constant dense<0.000000e+00> : vector<8x32xf32>
    %11 = tpu.matmul %9, %10, %cst_8 {dimension_numbers = #tpu.dot_dimension_numbers<[1], [0], [0], [1], [0, 0, 1, 1], [], []>} : vector<8x64xbf16>, vector<64x32xbf16>, vector<8x32xf32> -> vector<8x32xf32>
    %c0_9 = arith.constant 0 : index
    %c0_10 = arith.constant 0 : index
    %12 = vector.load %arg5[%c0_9, %c0_10] : memref<1x32xf32, #tpu.memory_space<vmem>>, vector<1x32xf32>
    %13 = vector.broadcast %12 : vector<1x32xf32> to vector<8x32xf32>
    %14 = arith.addf %11, %13 : vector<8x32xf32>
    %15 = arith.addf %0, %14 : vector<8x32xf32>
    %c0_11 = arith.constant 0 : index
    %c0_12 = arith.constant 0 : index
    %16 = vector.load %arg6[%c0_11, %c0_12] : memref<1x32xf32, #tpu.memory_space<vmem>>, vector<1x32xf32>
    %c0_13 = arith.constant 0 : index
    %c0_14 = arith.constant 0 : index
    %17 = vector.load %arg7[%c0_13, %c0_14] : memref<1x32xf32, #tpu.memory_space<vmem>>, vector<1x32xf32>
    %cst_15 = arith.constant dense<0.000000e+00> : vector<8xf32>
    %18 = vector.multi_reduction <add>, %15, %cst_15 [1] : vector<8x32xf32> to vector<8xf32>
    %19 = vector.shape_cast %18 : vector<8xf32> to vector<8x1xf32>
    %cst_16 = arith.constant 3.200000e+01 : f32
    %20 = vector.broadcast %cst_16 : f32 to vector<8x1xf32>
    %21 = arith.divf %19, %20 : vector<8x1xf32>
    %22 = vector.broadcast %21 : vector<8x1xf32> to vector<8x32xf32>
    %23 = arith.subf %15, %22 : vector<8x32xf32>
    %24 = arith.mulf %23, %23 : vector<8x32xf32>
    %cst_17 = arith.constant dense<0.000000e+00> : vector<8xf32>
    %25 = vector.multi_reduction <add>, %24, %cst_17 [1] : vector<8x32xf32> to vector<8xf32>
    %26 = vector.shape_cast %25 : vector<8xf32> to vector<8x1xf32>
    %cst_18 = arith.constant 3.200000e+01 : f32
    %27 = vector.broadcast %cst_18 : f32 to vector<8x1xf32>
    %28 = arith.divf %26, %27 : vector<8x1xf32>
    %29 = vector.broadcast %21 : vector<8x1xf32> to vector<8x32xf32>
    %30 = arith.subf %15, %29 : vector<8x32xf32>
    %cst_19 = arith.constant 9.99999974E-6 : f32
    %31 = vector.broadcast %cst_19 : f32 to vector<8x1xf32>
    %32 = arith.addf %28, %31 : vector<8x1xf32>
    %33 = math.rsqrt %32 : vector<8x1xf32>
    %34 = vector.broadcast %33 : vector<8x1xf32> to vector<8x32xf32>
    %35 = arith.mulf %30, %34 : vector<8x32xf32>
    %36 = vector.broadcast %16 : vector<1x32xf32> to vector<8x32xf32>
    %37 = arith.mulf %35, %36 : vector<8x32xf32>
    %38 = vector.broadcast %17 : vector<1x32xf32> to vector<8x32xf32>
    %39 = arith.addf %37, %38 : vector<8x32xf32>
    %c0_20 = arith.constant 0 : index
    %c0_21 = arith.constant 0 : index
    %40 = vector.load %arg8[%c0_20, %c0_21] : memref<8x32xf32, #tpu.memory_space<vmem>>, vector<8x32xf32>
    tpu.vector_store %arg8[%c0_20, %c0_21], %39 {strides = array<i32>} : memref<8x32xf32, #tpu.memory_space<vmem>>, vector<8x32xf32>,
    return
  }
  func.func @transform_0(%arg0: i32) -> (i32, i32) {
    %c0_i32 = arith.constant 0 : i32
    %c0_i32_0 = arith.constant 0 : i32
    return %arg0, %c0_i32 : i32, i32
  }
  func.func @transform_1(%arg0: i32) -> (i32, i32) {
    %c0_i32 = arith.constant 0 : i32
    %c0_i32_0 = arith.constant 0 : i32
    %c0_i32_1 = arith.constant 0 : i32
    return %c0_i32, %c0_i32_0 : i32, i32
  }
  func.func @transform_2(%arg0: i32) -> (i32, i32) {
    %c0_i32 = arith.constant 0 : i32
    %c0_i32_0 = arith.constant 0 : i32
    %c0_i32_1 = arith.constant 0 : i32
    return %c0_i32, %c0_i32_0 : i32, i32
  }
  func.func @transform_3(%arg0: i32) -> (i32, i32) {
    %c0_i32 = arith.constant 0 : i32
    %c0_i32_0 = arith.constant 0 : i32
    %c0_i32_1 = arith.constant 0 : i32
    return %c0_i32, %c0_i32_0 : i32, i32
  }
  func.func @transform_4(%arg0: i32) -> (i32, i32) {
    %c0_i32 = arith.constant 0 : i32
    %c0_i32_0 = arith.constant 0 : i32
    %c0_i32_1 = arith.constant 0 : i32
    return %c0_i32, %c0_i32_0 : i32, i32
  }
  func.func @transform_5(%arg0: i32) -> (i32, i32) {
    %c0_i32 = arith.constant 0 : i32
    %c0_i32_0 = arith.constant 0 : i32
    %c0_i32_1 = arith.constant 0 : i32
    return %c0_i32, %c0_i32_0 : i32, i32
  }
  func.func @transform_6(%arg0: i32) -> (i32, i32) {
    %c0_i32 = arith.constant 0 : i32
    %c0_i32_0 = arith.constant 0 : i32
    %c0_i32_1 = arith.constant 0 : i32
    return %c0_i32, %c0_i32_0 : i32, i32
  }
  func.func @transform_7(%arg0: i32) -> (i32, i32) {
    %c0_i32 = arith.constant 0 : i32
    %c0_i32_0 = arith.constant 0 : i32
    return %arg0, %c0_i32 : i32, i32
  }
}

module attributes {stable_mosaic.version = 11 : i64} {
  func.func @_self_attn_block_kernel(%arg0: i32, %arg1: i32, %arg2: memref<1x8x32xf32, #tpu.memory_space<vmem>>, %arg3: memref<32x32xbf16, #tpu.memory_space<vmem>>, %arg4: memref<1x32xf32, #tpu.memory_space<vmem>>, %arg5: memref<32x64xbf16, #tpu.memory_space<vmem>>, %arg6: memref<1x64xf32, #tpu.memory_space<vmem>>, %arg7: memref<32x32xbf16, #tpu.memory_space<vmem>>, %arg8: memref<1x32xf32, #tpu.memory_space<vmem>>, %arg9: memref<1x32xf32, #tpu.memory_space<vmem>>, %arg10: memref<1x32xf32, #tpu.memory_space<vmem>>, %arg11: memref<1x8x32xf32, #tpu.memory_space<vmem>>, %arg12: memref<4x8x8xbf16, #tpu.memory_space<vmem>>, %arg13: memref<4x8x8xbf16, #tpu.memory_space<vmem>>) attributes {dimension_semantics = [#tpu.dimension_semantics<parallel>, #tpu.dimension_semantics<arbitrary>], iteration_bounds = array<i64: 2, 1>, scalar_prefetch = 0 : i64, scratch_operands = 2 : i64, tpu.core_type = #tpu.core_type<tc>, window_params = [{transform_indices = @transform_0, window_bounds = array<i64: 1, 8, 32>}, {pipeline_mode = #tpu.pipeline_mode<synchronous>, transform_indices = @transform_1, window_bounds = array<i64: 32, 32>}, {pipeline_mode = #tpu.pipeline_mode<synchronous>, transform_indices = @transform_2, window_bounds = array<i64: 1, 32>}, {pipeline_mode = #tpu.pipeline_mode<synchronous>, transform_indices = @transform_3, window_bounds = array<i64: 32, 64>}, {pipeline_mode = #tpu.pipeline_mode<synchronous>, transform_indices = @transform_4, window_bounds = array<i64: 1, 64>}, {pipeline_mode = #tpu.pipeline_mode<synchronous>, transform_indices = @transform_5, window_bounds = array<i64: 32, 32>}, {pipeline_mode = #tpu.pipeline_mode<synchronous>, transform_indices = @transform_6, window_bounds = array<i64: 1, 32>}, {pipeline_mode = #tpu.pipeline_mode<synchronous>, transform_indices = @transform_7, window_bounds = array<i64: 1, 32>}, {pipeline_mode = #tpu.pipeline_mode<synchronous>, transform_indices = @transform_8, window_bounds = array<i64: 1, 32>}, {transform_indices = @transform_9, window_bounds = array<i64: 1, 8, 32>}]} {
    %c0_i32 = arith.constant 0 : i32
    %0 = arith.cmpi eq, %arg1, %c0_i32 : i32
    %1 = arith.extui %0 : i1 to i32
    %c0_i32_0 = arith.constant 0 : i32
    %2 = arith.cmpi ne, %1, %c0_i32_0 : i32
    scf.if %2 {
      %c0_71 = arith.constant 0 : index
      %c0_72 = arith.constant 0 : index
      %c0_73 = arith.constant 0 : index
      %146 = vector.load %arg2[%c0_71, %c0_72, %c0_73] : memref<1x8x32xf32, #tpu.memory_space<vmem>>, vector<1x8x32xf32>
      %147 = vector.shape_cast %146 : vector<1x8x32xf32> to vector<8x32xf32>
      %148 = arith.truncf %147 : vector<8x32xf32> to vector<8x32xbf16>
      %c0_74 = arith.constant 0 : index
      %c0_75 = arith.constant 0 : index
      %149 = vector.load %arg5[%c0_74, %c0_75] : memref<32x64xbf16, #tpu.memory_space<vmem>>, vector<32x64xbf16>
      %cst_76 = arith.constant dense<0.000000e+00> : vector<8x64xf32>
      %150 = tpu.matmul %148, %149, %cst_76 {dimension_numbers = #tpu.dot_dimension_numbers<[1], [0], [0], [1], [0, 0, 1, 1], [], []>} : vector<8x32xbf16>, vector<32x64xbf16>, vector<8x64xf32> -> vector<8x64xf32>
      %c0_77 = arith.constant 0 : index
      %c0_78 = arith.constant 0 : index
      %151 = vector.load %arg6[%c0_77, %c0_78] : memref<1x64xf32, #tpu.memory_space<vmem>>, vector<1x64xf32>
      %152 = vector.broadcast %151 : vector<1x64xf32> to vector<8x64xf32>
      %153 = arith.addf %150, %152 : vector<8x64xf32>
      %154 = vector.extract_strided_slice %153 {offsets = [0, 0], sizes = [8, 8], strides = [1, 1]} : vector<8x64xf32> to vector<8x8xf32>
      %155 = arith.truncf %154 : vector<8x8xf32> to vector<8x8xbf16>
      %c0_79 = arith.constant 0 : index
      %c0_80 = arith.constant 0 : index
      %c0_81 = arith.constant 0 : index
      %156 = vector.load %arg12[%c0_79, %c0_80, %c0_81] : memref<4x8x8xbf16, #tpu.memory_space<vmem>>, vector<1x8x8xbf16>
      %157 = vector.shape_cast %156 : vector<1x8x8xbf16> to vector<8x8xbf16>
      %158 = vector.shape_cast %155 : vector<8x8xbf16> to vector<1x8x8xbf16>
      tpu.vector_store %arg12[%c0_79, %c0_80, %c0_81], %158 {strides = array<i32>} : memref<4x8x8xbf16, #tpu.memory_space<vmem>>, vector<1x8x8xbf16>,
      %159 = vector.extract_strided_slice %153 {offsets = [0, 32], sizes = [8, 8], strides = [1, 1]} : vector<8x64xf32> to vector<8x8xf32>
      %160 = arith.truncf %159 : vector<8x8xf32> to vector<8x8xbf16>
      %c0_82 = arith.constant 0 : index
      %c0_83 = arith.constant 0 : index
      %c0_84 = arith.constant 0 : index
      %161 = vector.load %arg13[%c0_82, %c0_83, %c0_84] : memref<4x8x8xbf16, #tpu.memory_space<vmem>>, vector<1x8x8xbf16>
      %162 = vector.shape_cast %161 : vector<1x8x8xbf16> to vector<8x8xbf16>
      %163 = vector.shape_cast %160 : vector<8x8xbf16> to vector<1x8x8xbf16>
      tpu.vector_store %arg13[%c0_82, %c0_83, %c0_84], %163 {strides = array<i32>} : memref<4x8x8xbf16, #tpu.memory_space<vmem>>, vector<1x8x8xbf16>,
      %164 = vector.extract_strided_slice %153 {offsets = [0, 8], sizes = [8, 8], strides = [1, 1]} : vector<8x64xf32> to vector<8x8xf32>
      %165 = arith.truncf %164 : vector<8x8xf32> to vector<8x8xbf16>
      %c1_85 = arith.constant 1 : index
      %c0_86 = arith.constant 0 : index
      %c0_87 = arith.constant 0 : index
      %166 = vector.load %arg12[%c1_85, %c0_86, %c0_87] : memref<4x8x8xbf16, #tpu.memory_space<vmem>>, vector<1x8x8xbf16>
      %167 = vector.shape_cast %166 : vector<1x8x8xbf16> to vector<8x8xbf16>
      %168 = vector.shape_cast %165 : vector<8x8xbf16> to vector<1x8x8xbf16>
      tpu.vector_store %arg12[%c1_85, %c0_86, %c0_87], %168 {strides = array<i32>} : memref<4x8x8xbf16, #tpu.memory_space<vmem>>, vector<1x8x8xbf16>,
      %169 = vector.extract_strided_slice %153 {offsets = [0, 40], sizes = [8, 8], strides = [1, 1]} : vector<8x64xf32> to vector<8x8xf32>
      %170 = arith.truncf %169 : vector<8x8xf32> to vector<8x8xbf16>
      %c1_88 = arith.constant 1 : index
      %c0_89 = arith.constant 0 : index
      %c0_90 = arith.constant 0 : index
      %171 = vector.load %arg13[%c1_88, %c0_89, %c0_90] : memref<4x8x8xbf16, #tpu.memory_space<vmem>>, vector<1x8x8xbf16>
      %172 = vector.shape_cast %171 : vector<1x8x8xbf16> to vector<8x8xbf16>
      %173 = vector.shape_cast %170 : vector<8x8xbf16> to vector<1x8x8xbf16>
      tpu.vector_store %arg13[%c1_88, %c0_89, %c0_90], %173 {strides = array<i32>} : memref<4x8x8xbf16, #tpu.memory_space<vmem>>, vector<1x8x8xbf16>,
      %174 = vector.extract_strided_slice %153 {offsets = [0, 16], sizes = [8, 8], strides = [1, 1]} : vector<8x64xf32> to vector<8x8xf32>
      %175 = arith.truncf %174 : vector<8x8xf32> to vector<8x8xbf16>
      %c2_91 = arith.constant 2 : index
      %c0_92 = arith.constant 0 : index
      %c0_93 = arith.constant 0 : index
      %176 = vector.load %arg12[%c2_91, %c0_92, %c0_93] : memref<4x8x8xbf16, #tpu.memory_space<vmem>>, vector<1x8x8xbf16>
      %177 = vector.shape_cast %176 : vector<1x8x8xbf16> to vector<8x8xbf16>
      %178 = vector.shape_cast %175 : vector<8x8xbf16> to vector<1x8x8xbf16>
      tpu.vector_store %arg12[%c2_91, %c0_92, %c0_93], %178 {strides = array<i32>} : memref<4x8x8xbf16, #tpu.memory_space<vmem>>, vector<1x8x8xbf16>,
      %179 = vector.extract_strided_slice %153 {offsets = [0, 48], sizes = [8, 8], strides = [1, 1]} : vector<8x64xf32> to vector<8x8xf32>
      %180 = arith.truncf %179 : vector<8x8xf32> to vector<8x8xbf16>
      %c2_94 = arith.constant 2 : index
      %c0_95 = arith.constant 0 : index
      %c0_96 = arith.constant 0 : index
      %181 = vector.load %arg13[%c2_94, %c0_95, %c0_96] : memref<4x8x8xbf16, #tpu.memory_space<vmem>>, vector<1x8x8xbf16>
      %182 = vector.shape_cast %181 : vector<1x8x8xbf16> to vector<8x8xbf16>
      %183 = vector.shape_cast %180 : vector<8x8xbf16> to vector<1x8x8xbf16>
      tpu.vector_store %arg13[%c2_94, %c0_95, %c0_96], %183 {strides = array<i32>} : memref<4x8x8xbf16, #tpu.memory_space<vmem>>, vector<1x8x8xbf16>,
      %184 = vector.extract_strided_slice %153 {offsets = [0, 24], sizes = [8, 8], strides = [1, 1]} : vector<8x64xf32> to vector<8x8xf32>
      %185 = arith.truncf %184 : vector<8x8xf32> to vector<8x8xbf16>
      %c3_97 = arith.constant 3 : index
      %c0_98 = arith.constant 0 : index
      %c0_99 = arith.constant 0 : index
      %186 = vector.load %arg12[%c3_97, %c0_98, %c0_99] : memref<4x8x8xbf16, #tpu.memory_space<vmem>>, vector<1x8x8xbf16>
      %187 = vector.shape_cast %186 : vector<1x8x8xbf16> to vector<8x8xbf16>
      %188 = vector.shape_cast %185 : vector<8x8xbf16> to vector<1x8x8xbf16>
      tpu.vector_store %arg12[%c3_97, %c0_98, %c0_99], %188 {strides = array<i32>} : memref<4x8x8xbf16, #tpu.memory_space<vmem>>, vector<1x8x8xbf16>,
      %189 = vector.extract_strided_slice %153 {offsets = [0, 56], sizes = [8, 8], strides = [1, 1]} : vector<8x64xf32> to vector<8x8xf32>
      %190 = arith.truncf %189 : vector<8x8xf32> to vector<8x8xbf16>
      %c3_100 = arith.constant 3 : index
      %c0_101 = arith.constant 0 : index
      %c0_102 = arith.constant 0 : index
      %191 = vector.load %arg13[%c3_100, %c0_101, %c0_102] : memref<4x8x8xbf16, #tpu.memory_space<vmem>>, vector<1x8x8xbf16>
      %192 = vector.shape_cast %191 : vector<1x8x8xbf16> to vector<8x8xbf16>
      %193 = vector.shape_cast %190 : vector<8x8xbf16> to vector<1x8x8xbf16>
      tpu.vector_store %arg13[%c3_100, %c0_101, %c0_102], %193 {strides = array<i32>} : memref<4x8x8xbf16, #tpu.memory_space<vmem>>, vector<1x8x8xbf16>,
    } else {
    }
    %c8_i32 = arith.constant 8 : i32
    %3 = arith.muli %arg1, %c8_i32 : i32
    %4 = tpu.assume_multiple %3, 8 : i32
    %c0 = arith.constant 0 : index
    %5 = arith.index_cast %4 : i32 to index
    %c0_1 = arith.constant 0 : index
    %6 = vector.load %arg2[%c0, %5, %c0_1] : memref<1x8x32xf32, #tpu.memory_space<vmem>>, vector<1x8x32xf32>
    %7 = vector.shape_cast %6 : vector<1x8x32xf32> to vector<8x32xf32>
    %8 = arith.truncf %7 : vector<8x32xf32> to vector<8x32xbf16>
    %c0_2 = arith.constant 0 : index
    %c0_3 = arith.constant 0 : index
    %9 = vector.load %arg3[%c0_2, %c0_3] : memref<32x32xbf16, #tpu.memory_space<vmem>>, vector<32x32xbf16>
    %cst = arith.constant dense<0.000000e+00> : vector<8x32xf32>
    %10 = tpu.matmul %8, %9, %cst {dimension_numbers = #tpu.dot_dimension_numbers<[1], [0], [0], [1], [0, 0, 1, 1], [], []>} : vector<8x32xbf16>, vector<32x32xbf16>, vector<8x32xf32> -> vector<8x32xf32>
    %c0_4 = arith.constant 0 : index
    %c0_5 = arith.constant 0 : index
    %11 = vector.load %arg4[%c0_4, %c0_5] : memref<1x32xf32, #tpu.memory_space<vmem>>, vector<1x32xf32>
    %12 = vector.broadcast %11 : vector<1x32xf32> to vector<8x32xf32>
    %13 = arith.addf %10, %12 : vector<8x32xf32>
    %cst_6 = arith.constant 0.000000e+00 : f32
    %14 = vector.broadcast %cst_6 : f32 to vector<8x32xf32>
    %15 = vector.extract_strided_slice %13 {offsets = [0, 0], sizes = [8, 8], strides = [1, 1]} : vector<8x32xf32> to vector<8x8xf32>
    %cst_7 = arith.constant 0.353553385 : f32
    %16 = vector.broadcast %cst_7 : f32 to vector<8x8xf32>
    %17 = arith.mulf %15, %16 : vector<8x8xf32>
    %18 = arith.truncf %17 : vector<8x8xf32> to vector<8x8xbf16>
    %c0_8 = arith.constant 0 : index
    %c0_9 = arith.constant 0 : index
    %c0_10 = arith.constant 0 : index
    %19 = vector.load %arg12[%c0_8, %c0_9, %c0_10] : memref<4x8x8xbf16, #tpu.memory_space<vmem>>, vector<1x8x8xbf16>
    %20 = vector.shape_cast %19 : vector<1x8x8xbf16> to vector<8x8xbf16>
    %c0_11 = arith.constant 0 : index
    %c0_12 = arith.constant 0 : index
    %c0_13 = arith.constant 0 : index
    %21 = vector.load %arg13[%c0_11, %c0_12, %c0_13] : memref<4x8x8xbf16, #tpu.memory_space<vmem>>, vector<1x8x8xbf16>
    %22 = vector.shape_cast %21 : vector<1x8x8xbf16> to vector<8x8xbf16>
    %cst_14 = arith.constant dense<0.000000e+00> : vector<8x8xf32>
    %23 = tpu.matmul %18, %20, %cst_14 {dimension_numbers = #tpu.dot_dimension_numbers<[1], [1], [0], [0], [0, 0, 1, 0], [], []>} : vector<8x8xbf16>, vector<8x8xbf16>, vector<8x8xf32> -> vector<8x8xf32>
    %cst_15 = arith.constant dense<0xFF800000> : vector<8xf32>
    %24 = vector.multi_reduction <maximumf>, %23, %cst_15 [1] : vector<8x8xf32> to vector<8xf32>
    %25 = vector.shape_cast %24 : vector<8xf32> to vector<8x1xf32>
    %26 = vector.broadcast %25 : vector<8x1xf32> to vector<8x8xf32>
    %27 = arith.subf %23, %26 : vector<8x8xf32>
    %28 = math.exp %27 : vector<8x8xf32>
    %cst_16 = arith.constant dense<0.000000e+00> : vector<8xf32>
    %29 = vector.multi_reduction <add>, %28, %cst_16 [1] : vector<8x8xf32> to vector<8xf32>
    %30 = vector.shape_cast %29 : vector<8xf32> to vector<8x1xf32>
    %31 = arith.truncf %28 : vector<8x8xf32> to vector<8x8xbf16>
    %cst_17 = arith.constant dense<0.000000e+00> : vector<8x8xf32>
    %32 = tpu.matmul %31, %22, %cst_17 {dimension_numbers = #tpu.dot_dimension_numbers<[1], [0], [0], [1], [0, 0, 1, 1], [], []>} : vector<8x8xbf16>, vector<8x8xbf16>, vector<8x8xf32> -> vector<8x8xf32>
    %33 = tpu.reciprocal %30 {approx = true} : vector<8x1xf32> -> vector<8x1xf32>
    %34 = vector.broadcast %33 : vector<8x1xf32> to vector<8x8xf32>
    %35 = arith.mulf %32, %34 : vector<8x8xf32>
    %36 = arith.truncf %35 : vector<8x8xf32> to vector<8x8xbf16>
    %c0_18 = arith.constant 0 : index
    %c0_19 = arith.constant 0 : index
    %37 = vector.load %arg7[%c0_18, %c0_19] : memref<32x32xbf16, #tpu.memory_space<vmem>>, vector<8x32xbf16>
    %cst_20 = arith.constant dense<0.000000e+00> : vector<8x32xf32>
    %38 = tpu.matmul %36, %37, %cst_20 {dimension_numbers = #tpu.dot_dimension_numbers<[1], [0], [0], [1], [0, 0, 1, 1], [], []>} : vector<8x8xbf16>, vector<8x32xbf16>, vector<8x32xf32> -> vector<8x32xf32>
    %39 = arith.addf %14, %38 : vector<8x32xf32>
    %40 = vector.extract_strided_slice %13 {offsets = [0, 8], sizes = [8, 8], strides = [1, 1]} : vector<8x32xf32> to vector<8x8xf32>
    %cst_21 = arith.constant 0.353553385 : f32
    %41 = vector.broadcast %cst_21 : f32 to vector<8x8xf32>
    %42 = arith.mulf %40, %41 : vector<8x8xf32>
    %43 = arith.truncf %42 : vector<8x8xf32> to vector<8x8xbf16>
    %c1 = arith.constant 1 : index
    %c0_22 = arith.constant 0 : index
    %c0_23 = arith.constant 0 : index
    %44 = vector.load %arg12[%c1, %c0_22, %c0_23] : memref<4x8x8xbf16, #tpu.memory_space<vmem>>, vector<1x8x8xbf16>
    %45 = vector.shape_cast %44 : vector<1x8x8xbf16> to vector<8x8xbf16>
    %c1_24 = arith.constant 1 : index
    %c0_25 = arith.constant 0 : index
    %c0_26 = arith.constant 0 : index
    %46 = vector.load %arg13[%c1_24, %c0_25, %c0_26] : memref<4x8x8xbf16, #tpu.memory_space<vmem>>, vector<1x8x8xbf16>
    %47 = vector.shape_cast %46 : vector<1x8x8xbf16> to vector<8x8xbf16>
    %cst_27 = arith.constant dense<0.000000e+00> : vector<8x8xf32>
    %48 = tpu.matmul %43, %45, %cst_27 {dimension_numbers = #tpu.dot_dimension_numbers<[1], [1], [0], [0], [0, 0, 1, 0], [], []>} : vector<8x8xbf16>, vector<8x8xbf16>, vector<8x8xf32> -> vector<8x8xf32>
    %cst_28 = arith.constant dense<0xFF800000> : vector<8xf32>
    %49 = vector.multi_reduction <maximumf>, %48, %cst_28 [1] : vector<8x8xf32> to vector<8xf32>
    %50 = vector.shape_cast %49 : vector<8xf32> to vector<8x1xf32>
    %51 = vector.broadcast %50 : vector<8x1xf32> to vector<8x8xf32>
    %52 = arith.subf %48, %51 : vector<8x8xf32>
    %53 = math.exp %52 : vector<8x8xf32>
    %cst_29 = arith.constant dense<0.000000e+00> : vector<8xf32>
    %54 = vector.multi_reduction <add>, %53, %cst_29 [1] : vector<8x8xf32> to vector<8xf32>
    %55 = vector.shape_cast %54 : vector<8xf32> to vector<8x1xf32>
    %56 = arith.truncf %53 : vector<8x8xf32> to vector<8x8xbf16>
    %cst_30 = arith.constant dense<0.000000e+00> : vector<8x8xf32>
    %57 = tpu.matmul %56, %47, %cst_30 {dimension_numbers = #tpu.dot_dimension_numbers<[1], [0], [0], [1], [0, 0, 1, 1], [], []>} : vector<8x8xbf16>, vector<8x8xbf16>, vector<8x8xf32> -> vector<8x8xf32>
    %58 = tpu.reciprocal %55 {approx = true} : vector<8x1xf32> -> vector<8x1xf32>
    %59 = vector.broadcast %58 : vector<8x1xf32> to vector<8x8xf32>
    %60 = arith.mulf %57, %59 : vector<8x8xf32>
    %61 = arith.truncf %60 : vector<8x8xf32> to vector<8x8xbf16>
    %c8 = arith.constant 8 : index
    %c0_31 = arith.constant 0 : index
    %62 = vector.load %arg7[%c8, %c0_31] : memref<32x32xbf16, #tpu.memory_space<vmem>>, vector<8x32xbf16>
    %cst_32 = arith.constant dense<0.000000e+00> : vector<8x32xf32>
    %63 = tpu.matmul %61, %62, %cst_32 {dimension_numbers = #tpu.dot_dimension_numbers<[1], [0], [0], [1], [0, 0, 1, 1], [], []>} : vector<8x8xbf16>, vector<8x32xbf16>, vector<8x32xf32> -> vector<8x32xf32>
    %64 = arith.addf %39, %63 : vector<8x32xf32>
    %65 = vector.extract_strided_slice %13 {offsets = [0, 16], sizes = [8, 8], strides = [1, 1]} : vector<8x32xf32> to vector<8x8xf32>
    %cst_33 = arith.constant 0.353553385 : f32
    %66 = vector.broadcast %cst_33 : f32 to vector<8x8xf32>
    %67 = arith.mulf %65, %66 : vector<8x8xf32>
    %68 = arith.truncf %67 : vector<8x8xf32> to vector<8x8xbf16>
    %c2 = arith.constant 2 : index
    %c0_34 = arith.constant 0 : index
    %c0_35 = arith.constant 0 : index
    %69 = vector.load %arg12[%c2, %c0_34, %c0_35] : memref<4x8x8xbf16, #tpu.memory_space<vmem>>, vector<1x8x8xbf16>
    %70 = vector.shape_cast %69 : vector<1x8x8xbf16> to vector<8x8xbf16>
    %c2_36 = arith.constant 2 : index
    %c0_37 = arith.constant 0 : index
    %c0_38 = arith.constant 0 : index
    %71 = vector.load %arg13[%c2_36, %c0_37, %c0_38] : memref<4x8x8xbf16, #tpu.memory_space<vmem>>, vector<1x8x8xbf16>
    %72 = vector.shape_cast %71 : vector<1x8x8xbf16> to vector<8x8xbf16>
    %cst_39 = arith.constant dense<0.000000e+00> : vector<8x8xf32>
    %73 = tpu.matmul %68, %70, %cst_39 {dimension_numbers = #tpu.dot_dimension_numbers<[1], [1], [0], [0], [0, 0, 1, 0], [], []>} : vector<8x8xbf16>, vector<8x8xbf16>, vector<8x8xf32> -> vector<8x8xf32>
    %cst_40 = arith.constant dense<0xFF800000> : vector<8xf32>
    %74 = vector.multi_reduction <maximumf>, %73, %cst_40 [1] : vector<8x8xf32> to vector<8xf32>
    %75 = vector.shape_cast %74 : vector<8xf32> to vector<8x1xf32>
    %76 = vector.broadcast %75 : vector<8x1xf32> to vector<8x8xf32>
    %77 = arith.subf %73, %76 : vector<8x8xf32>
    %78 = math.exp %77 : vector<8x8xf32>
    %cst_41 = arith.constant dense<0.000000e+00> : vector<8xf32>
    %79 = vector.multi_reduction <add>, %78, %cst_41 [1] : vector<8x8xf32> to vector<8xf32>
    %80 = vector.shape_cast %79 : vector<8xf32> to vector<8x1xf32>
    %81 = arith.truncf %78 : vector<8x8xf32> to vector<8x8xbf16>
    %cst_42 = arith.constant dense<0.000000e+00> : vector<8x8xf32>
    %82 = tpu.matmul %81, %72, %cst_42 {dimension_numbers = #tpu.dot_dimension_numbers<[1], [0], [0], [1], [0, 0, 1, 1], [], []>} : vector<8x8xbf16>, vector<8x8xbf16>, vector<8x8xf32> -> vector<8x8xf32>
    %83 = tpu.reciprocal %80 {approx = true} : vector<8x1xf32> -> vector<8x1xf32>
    %84 = vector.broadcast %83 : vector<8x1xf32> to vector<8x8xf32>
    %85 = arith.mulf %82, %84 : vector<8x8xf32>
    %86 = arith.truncf %85 : vector<8x8xf32> to vector<8x8xbf16>
    %c16 = arith.constant 16 : index
    %c0_43 = arith.constant 0 : index
    %87 = vector.load %arg7[%c16, %c0_43] : memref<32x32xbf16, #tpu.memory_space<vmem>>, vector<8x32xbf16>
    %cst_44 = arith.constant dense<0.000000e+00> : vector<8x32xf32>
    %88 = tpu.matmul %86, %87, %cst_44 {dimension_numbers = #tpu.dot_dimension_numbers<[1], [0], [0], [1], [0, 0, 1, 1], [], []>} : vector<8x8xbf16>, vector<8x32xbf16>, vector<8x32xf32> -> vector<8x32xf32>
    %89 = arith.addf %64, %88 : vector<8x32xf32>
    %90 = vector.extract_strided_slice %13 {offsets = [0, 24], sizes = [8, 8], strides = [1, 1]} : vector<8x32xf32> to vector<8x8xf32>
    %cst_45 = arith.constant 0.353553385 : f32
    %91 = vector.broadcast %cst_45 : f32 to vector<8x8xf32>
    %92 = arith.mulf %90, %91 : vector<8x8xf32>
    %93 = arith.truncf %92 : vector<8x8xf32> to vector<8x8xbf16>
    %c3 = arith.constant 3 : index
    %c0_46 = arith.constant 0 : index
    %c0_47 = arith.constant 0 : index
    %94 = vector.load %arg12[%c3, %c0_46, %c0_47] : memref<4x8x8xbf16, #tpu.memory_space<vmem>>, vector<1x8x8xbf16>
    %95 = vector.shape_cast %94 : vector<1x8x8xbf16> to vector<8x8xbf16>
    %c3_48 = arith.constant 3 : index
    %c0_49 = arith.constant 0 : index
    %c0_50 = arith.constant 0 : index
    %96 = vector.load %arg13[%c3_48, %c0_49, %c0_50] : memref<4x8x8xbf16, #tpu.memory_space<vmem>>, vector<1x8x8xbf16>
    %97 = vector.shape_cast %96 : vector<1x8x8xbf16> to vector<8x8xbf16>
    %cst_51 = arith.constant dense<0.000000e+00> : vector<8x8xf32>
    %98 = tpu.matmul %93, %95, %cst_51 {dimension_numbers = #tpu.dot_dimension_numbers<[1], [1], [0], [0], [0, 0, 1, 0], [], []>} : vector<8x8xbf16>, vector<8x8xbf16>, vector<8x8xf32> -> vector<8x8xf32>
    %cst_52 = arith.constant dense<0xFF800000> : vector<8xf32>
    %99 = vector.multi_reduction <maximumf>, %98, %cst_52 [1] : vector<8x8xf32> to vector<8xf32>
    %100 = vector.shape_cast %99 : vector<8xf32> to vector<8x1xf32>
    %101 = vector.broadcast %100 : vector<8x1xf32> to vector<8x8xf32>
    %102 = arith.subf %98, %101 : vector<8x8xf32>
    %103 = math.exp %102 : vector<8x8xf32>
    %cst_53 = arith.constant dense<0.000000e+00> : vector<8xf32>
    %104 = vector.multi_reduction <add>, %103, %cst_53 [1] : vector<8x8xf32> to vector<8xf32>
    %105 = vector.shape_cast %104 : vector<8xf32> to vector<8x1xf32>
    %106 = arith.truncf %103 : vector<8x8xf32> to vector<8x8xbf16>
    %cst_54 = arith.constant dense<0.000000e+00> : vector<8x8xf32>
    %107 = tpu.matmul %106, %97, %cst_54 {dimension_numbers = #tpu.dot_dimension_numbers<[1], [0], [0], [1], [0, 0, 1, 1], [], []>} : vector<8x8xbf16>, vector<8x8xbf16>, vector<8x8xf32> -> vector<8x8xf32>
    %108 = tpu.reciprocal %105 {approx = true} : vector<8x1xf32> -> vector<8x1xf32>
    %109 = vector.broadcast %108 : vector<8x1xf32> to vector<8x8xf32>
    %110 = arith.mulf %107, %109 : vector<8x8xf32>
    %111 = arith.truncf %110 : vector<8x8xf32> to vector<8x8xbf16>
    %c24 = arith.constant 24 : index
    %c0_55 = arith.constant 0 : index
    %112 = vector.load %arg7[%c24, %c0_55] : memref<32x32xbf16, #tpu.memory_space<vmem>>, vector<8x32xbf16>
    %cst_56 = arith.constant dense<0.000000e+00> : vector<8x32xf32>
    %113 = tpu.matmul %111, %112, %cst_56 {dimension_numbers = #tpu.dot_dimension_numbers<[1], [0], [0], [1], [0, 0, 1, 1], [], []>} : vector<8x8xbf16>, vector<8x32xbf16>, vector<8x32xf32> -> vector<8x32xf32>
    %114 = arith.addf %89, %113 : vector<8x32xf32>
    %115 = arith.addf %7, %114 : vector<8x32xf32>
    %c0_57 = arith.constant 0 : index
    %c0_58 = arith.constant 0 : index
    %116 = vector.load %arg8[%c0_57, %c0_58] : memref<1x32xf32, #tpu.memory_space<vmem>>, vector<1x32xf32>
    %117 = vector.broadcast %116 : vector<1x32xf32> to vector<8x32xf32>
    %118 = arith.addf %115, %117 : vector<8x32xf32>
    %c0_59 = arith.constant 0 : index
    %c0_60 = arith.constant 0 : index
    %119 = vector.load %arg9[%c0_59, %c0_60] : memref<1x32xf32, #tpu.memory_space<vmem>>, vector<1x32xf32>
    %c0_61 = arith.constant 0 : index
    %c0_62 = arith.constant 0 : index
    %120 = vector.load %arg10[%c0_61, %c0_62] : memref<1x32xf32, #tpu.memory_space<vmem>>, vector<1x32xf32>
    %cst_63 = arith.constant dense<0.000000e+00> : vector<8xf32>
    %121 = vector.multi_reduction <add>, %118, %cst_63 [1] : vector<8x32xf32> to vector<8xf32>
    %122 = vector.shape_cast %121 : vector<8xf32> to vector<8x1xf32>
    %cst_64 = arith.constant 3.200000e+01 : f32
    %123 = vector.broadcast %cst_64 : f32 to vector<8x1xf32>
    %124 = arith.divf %122, %123 : vector<8x1xf32>
    %125 = vector.broadcast %124 : vector<8x1xf32> to vector<8x32xf32>
    %126 = arith.subf %118, %125 : vector<8x32xf32>
    %127 = arith.mulf %126, %126 : vector<8x32xf32>
    %cst_65 = arith.constant dense<0.000000e+00> : vector<8xf32>
    %128 = vector.multi_reduction <add>, %127, %cst_65 [1] : vector<8x32xf32> to vector<8xf32>
    %129 = vector.shape_cast %128 : vector<8xf32> to vector<8x1xf32>
    %cst_66 = arith.constant 3.200000e+01 : f32
    %130 = vector.broadcast %cst_66 : f32 to vector<8x1xf32>
    %131 = arith.divf %129, %130 : vector<8x1xf32>
    %132 = vector.broadcast %124 : vector<8x1xf32> to vector<8x32xf32>
    %133 = arith.subf %118, %132 : vector<8x32xf32>
    %cst_67 = arith.constant 9.99999974E-6 : f32
    %134 = vector.broadcast %cst_67 : f32 to vector<8x1xf32>
    %135 = arith.addf %131, %134 : vector<8x1xf32>
    %136 = math.rsqrt %135 : vector<8x1xf32>
    %137 = vector.broadcast %136 : vector<8x1xf32> to vector<8x32xf32>
    %138 = arith.mulf %133, %137 : vector<8x32xf32>
    %139 = vector.broadcast %119 : vector<1x32xf32> to vector<8x32xf32>
    %140 = arith.mulf %138, %139 : vector<8x32xf32>
    %141 = vector.broadcast %120 : vector<1x32xf32> to vector<8x32xf32>
    %142 = arith.addf %140, %141 : vector<8x32xf32>
    %c0_68 = arith.constant 0 : index
    %c0_69 = arith.constant 0 : index
    %c0_70 = arith.constant 0 : index
    %143 = vector.load %arg11[%c0_68, %c0_69, %c0_70] : memref<1x8x32xf32, #tpu.memory_space<vmem>>, vector<1x8x32xf32>
    %144 = vector.shape_cast %143 : vector<1x8x32xf32> to vector<8x32xf32>
    %145 = vector.shape_cast %142 : vector<8x32xf32> to vector<1x8x32xf32>
    tpu.vector_store %arg11[%c0_68, %c0_69, %c0_70], %145 {strides = array<i32>} : memref<1x8x32xf32, #tpu.memory_space<vmem>>, vector<1x8x32xf32>,
    return
  }
  func.func @transform_0(%arg0: i32, %arg1: i32) -> (i32, i32, i32) {
    %c0_i32 = arith.constant 0 : i32
    %c0_i32_0 = arith.constant 0 : i32
    %c0_i32_1 = arith.constant 0 : i32
    return %arg0, %c0_i32, %c0_i32_0 : i32, i32, i32
  }
  func.func @transform_1(%arg0: i32, %arg1: i32) -> (i32, i32) {
    %c0_i32 = arith.constant 0 : i32
    %c0_i32_0 = arith.constant 0 : i32
    %c0_i32_1 = arith.constant 0 : i32
    return %c0_i32, %c0_i32_0 : i32, i32
  }
  func.func @transform_2(%arg0: i32, %arg1: i32) -> (i32, i32) {
    %c0_i32 = arith.constant 0 : i32
    %c0_i32_0 = arith.constant 0 : i32
    %c0_i32_1 = arith.constant 0 : i32
    return %c0_i32, %c0_i32_0 : i32, i32
  }
  func.func @transform_3(%arg0: i32, %arg1: i32) -> (i32, i32) {
    %c0_i32 = arith.constant 0 : i32
    %c0_i32_0 = arith.constant 0 : i32
    %c0_i32_1 = arith.constant 0 : i32
    return %c0_i32, %c0_i32_0 : i32, i32
  }
  func.func @transform_4(%arg0: i32, %arg1: i32) -> (i32, i32) {
    %c0_i32 = arith.constant 0 : i32
    %c0_i32_0 = arith.constant 0 : i32
    %c0_i32_1 = arith.constant 0 : i32
    return %c0_i32, %c0_i32_0 : i32, i32
  }
  func.func @transform_5(%arg0: i32, %arg1: i32) -> (i32, i32) {
    %c0_i32 = arith.constant 0 : i32
    %c0_i32_0 = arith.constant 0 : i32
    %c0_i32_1 = arith.constant 0 : i32
    return %c0_i32, %c0_i32_0 : i32, i32
  }
  func.func @transform_6(%arg0: i32, %arg1: i32) -> (i32, i32) {
    %c0_i32 = arith.constant 0 : i32
    %c0_i32_0 = arith.constant 0 : i32
    %c0_i32_1 = arith.constant 0 : i32
    return %c0_i32, %c0_i32_0 : i32, i32
  }
  func.func @transform_7(%arg0: i32, %arg1: i32) -> (i32, i32) {
    %c0_i32 = arith.constant 0 : i32
    %c0_i32_0 = arith.constant 0 : i32
    %c0_i32_1 = arith.constant 0 : i32
    return %c0_i32, %c0_i32_0 : i32, i32
  }
  func.func @transform_8(%arg0: i32, %arg1: i32) -> (i32, i32) {
    %c0_i32 = arith.constant 0 : i32
    %c0_i32_0 = arith.constant 0 : i32
    %c0_i32_1 = arith.constant 0 : i32
    return %c0_i32, %c0_i32_0 : i32, i32
  }
  func.func @transform_9(%arg0: i32, %arg1: i32) -> (i32, i32, i32) {
    %c0_i32 = arith.constant 0 : i32
    %c0_i32_0 = arith.constant 0 : i32
    return %arg0, %arg1, %c0_i32 : i32, i32, i32
  }
}

module attributes {stable_mosaic.version = 11 : i64} {
  func.func @_ffn_block_final_norm_kernel(%arg0: i32, %arg1: memref<8x32xf32, #tpu.memory_space<vmem>>, %arg2: memref<32x64xbf16, #tpu.memory_space<vmem>>, %arg3: memref<1x64xf32, #tpu.memory_space<vmem>>, %arg4: memref<64x32xbf16, #tpu.memory_space<vmem>>, %arg5: memref<1x32xf32, #tpu.memory_space<vmem>>, %arg6: memref<1x32xf32, #tpu.memory_space<vmem>>, %arg7: memref<1x32xf32, #tpu.memory_space<vmem>>, %arg8: memref<1x32xf32, #tpu.memory_space<vmem>>, %arg9: memref<1x32xf32, #tpu.memory_space<vmem>>, %arg10: memref<8x32xf32, #tpu.memory_space<vmem>>) attributes {dimension_semantics = [#tpu.dimension_semantics<parallel>], iteration_bounds = array<i64: 2>, scalar_prefetch = 0 : i64, scratch_operands = 0 : i64, tpu.core_type = #tpu.core_type<tc>, window_params = [{transform_indices = @transform_0, window_bounds = array<i64: 8, 32>}, {pipeline_mode = #tpu.pipeline_mode<synchronous>, transform_indices = @transform_1, window_bounds = array<i64: 32, 64>}, {pipeline_mode = #tpu.pipeline_mode<synchronous>, transform_indices = @transform_2, window_bounds = array<i64: 1, 64>}, {pipeline_mode = #tpu.pipeline_mode<synchronous>, transform_indices = @transform_3, window_bounds = array<i64: 64, 32>}, {pipeline_mode = #tpu.pipeline_mode<synchronous>, transform_indices = @transform_4, window_bounds = array<i64: 1, 32>}, {pipeline_mode = #tpu.pipeline_mode<synchronous>, transform_indices = @transform_5, window_bounds = array<i64: 1, 32>}, {pipeline_mode = #tpu.pipeline_mode<synchronous>, transform_indices = @transform_6, window_bounds = array<i64: 1, 32>}, {pipeline_mode = #tpu.pipeline_mode<synchronous>, transform_indices = @transform_7, window_bounds = array<i64: 1, 32>}, {pipeline_mode = #tpu.pipeline_mode<synchronous>, transform_indices = @transform_8, window_bounds = array<i64: 1, 32>}, {transform_indices = @transform_9, window_bounds = array<i64: 8, 32>}]} {
    %c0 = arith.constant 0 : index
    %c0_0 = arith.constant 0 : index
    %0 = vector.load %arg1[%c0, %c0_0] : memref<8x32xf32, #tpu.memory_space<vmem>>, vector<8x32xf32>
    %1 = arith.truncf %0 : vector<8x32xf32> to vector<8x32xbf16>
    %c0_1 = arith.constant 0 : index
    %c0_2 = arith.constant 0 : index
    %2 = vector.load %arg2[%c0_1, %c0_2] : memref<32x64xbf16, #tpu.memory_space<vmem>>, vector<32x64xbf16>
    %cst = arith.constant dense<0.000000e+00> : vector<8x64xf32>
    %3 = tpu.matmul %1, %2, %cst {dimension_numbers = #tpu.dot_dimension_numbers<[1], [0], [0], [1], [0, 0, 1, 1], [], []>} : vector<8x32xbf16>, vector<32x64xbf16>, vector<8x64xf32> -> vector<8x64xf32>
    %c0_3 = arith.constant 0 : index
    %c0_4 = arith.constant 0 : index
    %4 = vector.load %arg3[%c0_3, %c0_4] : memref<1x64xf32, #tpu.memory_space<vmem>>, vector<1x64xf32>
    %5 = vector.broadcast %4 : vector<1x64xf32> to vector<8x64xf32>
    %6 = arith.addf %3, %5 : vector<8x64xf32>
    %cst_5 = arith.constant 0.000000e+00 : f32
    %7 = vector.broadcast %cst_5 : f32 to vector<8x64xf32>
    %8 = arith.maximumf %6, %7 : vector<8x64xf32>
    %9 = arith.truncf %8 : vector<8x64xf32> to vector<8x64xbf16>
    %c0_6 = arith.constant 0 : index
    %c0_7 = arith.constant 0 : index
    %10 = vector.load %arg4[%c0_6, %c0_7] : memref<64x32xbf16, #tpu.memory_space<vmem>>, vector<64x32xbf16>
    %cst_8 = arith.constant dense<0.000000e+00> : vector<8x32xf32>
    %11 = tpu.matmul %9, %10, %cst_8 {dimension_numbers = #tpu.dot_dimension_numbers<[1], [0], [0], [1], [0, 0, 1, 1], [], []>} : vector<8x64xbf16>, vector<64x32xbf16>, vector<8x32xf32> -> vector<8x32xf32>
    %c0_9 = arith.constant 0 : index
    %c0_10 = arith.constant 0 : index
    %12 = vector.load %arg5[%c0_9, %c0_10] : memref<1x32xf32, #tpu.memory_space<vmem>>, vector<1x32xf32>
    %13 = vector.broadcast %12 : vector<1x32xf32> to vector<8x32xf32>
    %14 = arith.addf %11, %13 : vector<8x32xf32>
    %15 = arith.addf %0, %14 : vector<8x32xf32>
    %c0_11 = arith.constant 0 : index
    %c0_12 = arith.constant 0 : index
    %16 = vector.load %arg6[%c0_11, %c0_12] : memref<1x32xf32, #tpu.memory_space<vmem>>, vector<1x32xf32>
    %c0_13 = arith.constant 0 : index
    %c0_14 = arith.constant 0 : index
    %17 = vector.load %arg7[%c0_13, %c0_14] : memref<1x32xf32, #tpu.memory_space<vmem>>, vector<1x32xf32>
    %cst_15 = arith.constant dense<0.000000e+00> : vector<8xf32>
    %18 = vector.multi_reduction <add>, %15, %cst_15 [1] : vector<8x32xf32> to vector<8xf32>
    %19 = vector.shape_cast %18 : vector<8xf32> to vector<8x1xf32>
    %cst_16 = arith.constant 3.200000e+01 : f32
    %20 = vector.broadcast %cst_16 : f32 to vector<8x1xf32>
    %21 = arith.divf %19, %20 : vector<8x1xf32>
    %22 = vector.broadcast %21 : vector<8x1xf32> to vector<8x32xf32>
    %23 = arith.subf %15, %22 : vector<8x32xf32>
    %24 = arith.mulf %23, %23 : vector<8x32xf32>
    %cst_17 = arith.constant dense<0.000000e+00> : vector<8xf32>
    %25 = vector.multi_reduction <add>, %24, %cst_17 [1] : vector<8x32xf32> to vector<8xf32>
    %26 = vector.shape_cast %25 : vector<8xf32> to vector<8x1xf32>
    %cst_18 = arith.constant 3.200000e+01 : f32
    %27 = vector.broadcast %cst_18 : f32 to vector<8x1xf32>
    %28 = arith.divf %26, %27 : vector<8x1xf32>
    %29 = vector.broadcast %21 : vector<8x1xf32> to vector<8x32xf32>
    %30 = arith.subf %15, %29 : vector<8x32xf32>
    %cst_19 = arith.constant 9.99999974E-6 : f32
    %31 = vector.broadcast %cst_19 : f32 to vector<8x1xf32>
    %32 = arith.addf %28, %31 : vector<8x1xf32>
    %33 = math.rsqrt %32 : vector<8x1xf32>
    %34 = vector.broadcast %33 : vector<8x1xf32> to vector<8x32xf32>
    %35 = arith.mulf %30, %34 : vector<8x32xf32>
    %36 = vector.broadcast %16 : vector<1x32xf32> to vector<8x32xf32>
    %37 = arith.mulf %35, %36 : vector<8x32xf32>
    %38 = vector.broadcast %17 : vector<1x32xf32> to vector<8x32xf32>
    %39 = arith.addf %37, %38 : vector<8x32xf32>
    %c0_20 = arith.constant 0 : index
    %c0_21 = arith.constant 0 : index
    %40 = vector.load %arg8[%c0_20, %c0_21] : memref<1x32xf32, #tpu.memory_space<vmem>>, vector<1x32xf32>
    %c0_22 = arith.constant 0 : index
    %c0_23 = arith.constant 0 : index
    %41 = vector.load %arg9[%c0_22, %c0_23] : memref<1x32xf32, #tpu.memory_space<vmem>>, vector<1x32xf32>
    %cst_24 = arith.constant dense<0.000000e+00> : vector<8xf32>
    %42 = vector.multi_reduction <add>, %39, %cst_24 [1] : vector<8x32xf32> to vector<8xf32>
    %43 = vector.shape_cast %42 : vector<8xf32> to vector<8x1xf32>
    %cst_25 = arith.constant 3.200000e+01 : f32
    %44 = vector.broadcast %cst_25 : f32 to vector<8x1xf32>
    %45 = arith.divf %43, %44 : vector<8x1xf32>
    %46 = vector.broadcast %45 : vector<8x1xf32> to vector<8x32xf32>
    %47 = arith.subf %39, %46 : vector<8x32xf32>
    %48 = arith.mulf %47, %47 : vector<8x32xf32>
    %cst_26 = arith.constant dense<0.000000e+00> : vector<8xf32>
    %49 = vector.multi_reduction <add>, %48, %cst_26 [1] : vector<8x32xf32> to vector<8xf32>
    %50 = vector.shape_cast %49 : vector<8xf32> to vector<8x1xf32>
    %cst_27 = arith.constant 3.200000e+01 : f32
    %51 = vector.broadcast %cst_27 : f32 to vector<8x1xf32>
    %52 = arith.divf %50, %51 : vector<8x1xf32>
    %53 = vector.broadcast %45 : vector<8x1xf32> to vector<8x32xf32>
    %54 = arith.subf %39, %53 : vector<8x32xf32>
    %cst_28 = arith.constant 9.99999974E-6 : f32
    %55 = vector.broadcast %cst_28 : f32 to vector<8x1xf32>
    %56 = arith.addf %52, %55 : vector<8x1xf32>
    %57 = math.rsqrt %56 : vector<8x1xf32>
    %58 = vector.broadcast %57 : vector<8x1xf32> to vector<8x32xf32>
    %59 = arith.mulf %54, %58 : vector<8x32xf32>
    %60 = vector.broadcast %40 : vector<1x32xf32> to vector<8x32xf32>
    %61 = arith.mulf %59, %60 : vector<8x32xf32>
    %62 = vector.broadcast %41 : vector<1x32xf32> to vector<8x32xf32>
    %63 = arith.addf %61, %62 : vector<8x32xf32>
    %c0_29 = arith.constant 0 : index
    %c0_30 = arith.constant 0 : index
    %64 = vector.load %arg10[%c0_29, %c0_30] : memref<8x32xf32, #tpu.memory_space<vmem>>, vector<8x32xf32>
    tpu.vector_store %arg10[%c0_29, %c0_30], %63 {strides = array<i32>} : memref<8x32xf32, #tpu.memory_space<vmem>>, vector<8x32xf32>,
    return
  }
  func.func @transform_0(%arg0: i32) -> (i32, i32) {
    %c0_i32 = arith.constant 0 : i32
    %c0_i32_0 = arith.constant 0 : i32
    return %arg0, %c0_i32 : i32, i32
  }
  func.func @transform_1(%arg0: i32) -> (i32, i32) {
    %c0_i32 = arith.constant 0 : i32
    %c0_i32_0 = arith.constant 0 : i32
    %c0_i32_1 = arith.constant 0 : i32
    return %c0_i32, %c0_i32_0 : i32, i32
  }
  func.func @transform_2(%arg0: i32) -> (i32, i32) {
    %c0_i32 = arith.constant 0 : i32
    %c0_i32_0 = arith.constant 0 : i32
    %c0_i32_1 = arith.constant 0 : i32
    return %c0_i32, %c0_i32_0 : i32, i32
  }
  func.func @transform_3(%arg0: i32) -> (i32, i32) {
    %c0_i32 = arith.constant 0 : i32
    %c0_i32_0 = arith.constant 0 : i32
    %c0_i32_1 = arith.constant 0 : i32
    return %c0_i32, %c0_i32_0 : i32, i32
  }
  func.func @transform_4(%arg0: i32) -> (i32, i32) {
    %c0_i32 = arith.constant 0 : i32
    %c0_i32_0 = arith.constant 0 : i32
    %c0_i32_1 = arith.constant 0 : i32
    return %c0_i32, %c0_i32_0 : i32, i32
  }
  func.func @transform_5(%arg0: i32) -> (i32, i32) {
    %c0_i32 = arith.constant 0 : i32
    %c0_i32_0 = arith.constant 0 : i32
    %c0_i32_1 = arith.constant 0 : i32
    return %c0_i32, %c0_i32_0 : i32, i32
  }
  func.func @transform_6(%arg0: i32) -> (i32, i32) {
    %c0_i32 = arith.constant 0 : i32
    %c0_i32_0 = arith.constant 0 : i32
    %c0_i32_1 = arith.constant 0 : i32
    return %c0_i32, %c0_i32_0 : i32, i32
  }
  func.func @transform_7(%arg0: i32) -> (i32, i32) {
    %c0_i32 = arith.constant 0 : i32
    %c0_i32_0 = arith.constant 0 : i32
    %c0_i32_1 = arith.constant 0 : i32
    return %c0_i32, %c0_i32_0 : i32, i32
  }
  func.func @transform_8(%arg0: i32) -> (i32, i32) {
    %c0_i32 = arith.constant 0 : i32
    %c0_i32_0 = arith.constant 0 : i32
    %c0_i32_1 = arith.constant 0 : i32
    return %c0_i32, %c0_i32_0 : i32, i32
  }
  func.func @transform_9(%arg0: i32) -> (i32, i32) {
    %c0_i32 = arith.constant 0 : i32
    %c0_i32_0 = arith.constant 0 : i32
    return %arg0, %c0_i32 : i32, i32
  }
}

module attributes {stable_mosaic.version = 11 : i64} {
  func.func @_self_attn_block_kernel(%arg0: i32, %arg1: i32, %arg2: memref<1x8x32xf32, #tpu.memory_space<vmem>>, %arg3: memref<32x32xbf16, #tpu.memory_space<vmem>>, %arg4: memref<1x32xf32, #tpu.memory_space<vmem>>, %arg5: memref<32x64xbf16, #tpu.memory_space<vmem>>, %arg6: memref<1x64xf32, #tpu.memory_space<vmem>>, %arg7: memref<32x32xbf16, #tpu.memory_space<vmem>>, %arg8: memref<1x32xf32, #tpu.memory_space<vmem>>, %arg9: memref<1x32xf32, #tpu.memory_space<vmem>>, %arg10: memref<1x32xf32, #tpu.memory_space<vmem>>, %arg11: memref<1x8x32xf32, #tpu.memory_space<vmem>>, %arg12: memref<4x8x8xbf16, #tpu.memory_space<vmem>>, %arg13: memref<4x8x8xbf16, #tpu.memory_space<vmem>>) attributes {dimension_semantics = [#tpu.dimension_semantics<parallel>, #tpu.dimension_semantics<arbitrary>], iteration_bounds = array<i64: 2, 1>, scalar_prefetch = 0 : i64, scratch_operands = 2 : i64, tpu.core_type = #tpu.core_type<tc>, window_params = [{transform_indices = @transform_0, window_bounds = array<i64: 1, 8, 32>}, {pipeline_mode = #tpu.pipeline_mode<synchronous>, transform_indices = @transform_1, window_bounds = array<i64: 32, 32>}, {pipeline_mode = #tpu.pipeline_mode<synchronous>, transform_indices = @transform_2, window_bounds = array<i64: 1, 32>}, {pipeline_mode = #tpu.pipeline_mode<synchronous>, transform_indices = @transform_3, window_bounds = array<i64: 32, 64>}, {pipeline_mode = #tpu.pipeline_mode<synchronous>, transform_indices = @transform_4, window_bounds = array<i64: 1, 64>}, {pipeline_mode = #tpu.pipeline_mode<synchronous>, transform_indices = @transform_5, window_bounds = array<i64: 32, 32>}, {pipeline_mode = #tpu.pipeline_mode<synchronous>, transform_indices = @transform_6, window_bounds = array<i64: 1, 32>}, {pipeline_mode = #tpu.pipeline_mode<synchronous>, transform_indices = @transform_7, window_bounds = array<i64: 1, 32>}, {pipeline_mode = #tpu.pipeline_mode<synchronous>, transform_indices = @transform_8, window_bounds = array<i64: 1, 32>}, {transform_indices = @transform_9, window_bounds = array<i64: 1, 8, 32>}]} {
    %c0_i32 = arith.constant 0 : i32
    %0 = arith.cmpi eq, %arg1, %c0_i32 : i32
    %1 = arith.extui %0 : i1 to i32
    %c0_i32_0 = arith.constant 0 : i32
    %2 = arith.cmpi ne, %1, %c0_i32_0 : i32
    scf.if %2 {
      %c0_71 = arith.constant 0 : index
      %c0_72 = arith.constant 0 : index
      %c0_73 = arith.constant 0 : index
      %146 = vector.load %arg2[%c0_71, %c0_72, %c0_73] : memref<1x8x32xf32, #tpu.memory_space<vmem>>, vector<1x8x32xf32>
      %147 = vector.shape_cast %146 : vector<1x8x32xf32> to vector<8x32xf32>
      %148 = arith.truncf %147 : vector<8x32xf32> to vector<8x32xbf16>
      %c0_74 = arith.constant 0 : index
      %c0_75 = arith.constant 0 : index
      %149 = vector.load %arg5[%c0_74, %c0_75] : memref<32x64xbf16, #tpu.memory_space<vmem>>, vector<32x64xbf16>
      %cst_76 = arith.constant dense<0.000000e+00> : vector<8x64xf32>
      %150 = tpu.matmul %148, %149, %cst_76 {dimension_numbers = #tpu.dot_dimension_numbers<[1], [0], [0], [1], [0, 0, 1, 1], [], []>} : vector<8x32xbf16>, vector<32x64xbf16>, vector<8x64xf32> -> vector<8x64xf32>
      %c0_77 = arith.constant 0 : index
      %c0_78 = arith.constant 0 : index
      %151 = vector.load %arg6[%c0_77, %c0_78] : memref<1x64xf32, #tpu.memory_space<vmem>>, vector<1x64xf32>
      %152 = vector.broadcast %151 : vector<1x64xf32> to vector<8x64xf32>
      %153 = arith.addf %150, %152 : vector<8x64xf32>
      %154 = vector.extract_strided_slice %153 {offsets = [0, 0], sizes = [8, 8], strides = [1, 1]} : vector<8x64xf32> to vector<8x8xf32>
      %155 = arith.truncf %154 : vector<8x8xf32> to vector<8x8xbf16>
      %c0_79 = arith.constant 0 : index
      %c0_80 = arith.constant 0 : index
      %c0_81 = arith.constant 0 : index
      %156 = vector.load %arg12[%c0_79, %c0_80, %c0_81] : memref<4x8x8xbf16, #tpu.memory_space<vmem>>, vector<1x8x8xbf16>
      %157 = vector.shape_cast %156 : vector<1x8x8xbf16> to vector<8x8xbf16>
      %158 = vector.shape_cast %155 : vector<8x8xbf16> to vector<1x8x8xbf16>
      tpu.vector_store %arg12[%c0_79, %c0_80, %c0_81], %158 {strides = array<i32>} : memref<4x8x8xbf16, #tpu.memory_space<vmem>>, vector<1x8x8xbf16>,
      %159 = vector.extract_strided_slice %153 {offsets = [0, 32], sizes = [8, 8], strides = [1, 1]} : vector<8x64xf32> to vector<8x8xf32>
      %160 = arith.truncf %159 : vector<8x8xf32> to vector<8x8xbf16>
      %c0_82 = arith.constant 0 : index
      %c0_83 = arith.constant 0 : index
      %c0_84 = arith.constant 0 : index
      %161 = vector.load %arg13[%c0_82, %c0_83, %c0_84] : memref<4x8x8xbf16, #tpu.memory_space<vmem>>, vector<1x8x8xbf16>
      %162 = vector.shape_cast %161 : vector<1x8x8xbf16> to vector<8x8xbf16>
      %163 = vector.shape_cast %160 : vector<8x8xbf16> to vector<1x8x8xbf16>
      tpu.vector_store %arg13[%c0_82, %c0_83, %c0_84], %163 {strides = array<i32>} : memref<4x8x8xbf16, #tpu.memory_space<vmem>>, vector<1x8x8xbf16>,
      %164 = vector.extract_strided_slice %153 {offsets = [0, 8], sizes = [8, 8], strides = [1, 1]} : vector<8x64xf32> to vector<8x8xf32>
      %165 = arith.truncf %164 : vector<8x8xf32> to vector<8x8xbf16>
      %c1_85 = arith.constant 1 : index
      %c0_86 = arith.constant 0 : index
      %c0_87 = arith.constant 0 : index
      %166 = vector.load %arg12[%c1_85, %c0_86, %c0_87] : memref<4x8x8xbf16, #tpu.memory_space<vmem>>, vector<1x8x8xbf16>
      %167 = vector.shape_cast %166 : vector<1x8x8xbf16> to vector<8x8xbf16>
      %168 = vector.shape_cast %165 : vector<8x8xbf16> to vector<1x8x8xbf16>
      tpu.vector_store %arg12[%c1_85, %c0_86, %c0_87], %168 {strides = array<i32>} : memref<4x8x8xbf16, #tpu.memory_space<vmem>>, vector<1x8x8xbf16>,
      %169 = vector.extract_strided_slice %153 {offsets = [0, 40], sizes = [8, 8], strides = [1, 1]} : vector<8x64xf32> to vector<8x8xf32>
      %170 = arith.truncf %169 : vector<8x8xf32> to vector<8x8xbf16>
      %c1_88 = arith.constant 1 : index
      %c0_89 = arith.constant 0 : index
      %c0_90 = arith.constant 0 : index
      %171 = vector.load %arg13[%c1_88, %c0_89, %c0_90] : memref<4x8x8xbf16, #tpu.memory_space<vmem>>, vector<1x8x8xbf16>
      %172 = vector.shape_cast %171 : vector<1x8x8xbf16> to vector<8x8xbf16>
      %173 = vector.shape_cast %170 : vector<8x8xbf16> to vector<1x8x8xbf16>
      tpu.vector_store %arg13[%c1_88, %c0_89, %c0_90], %173 {strides = array<i32>} : memref<4x8x8xbf16, #tpu.memory_space<vmem>>, vector<1x8x8xbf16>,
      %174 = vector.extract_strided_slice %153 {offsets = [0, 16], sizes = [8, 8], strides = [1, 1]} : vector<8x64xf32> to vector<8x8xf32>
      %175 = arith.truncf %174 : vector<8x8xf32> to vector<8x8xbf16>
      %c2_91 = arith.constant 2 : index
      %c0_92 = arith.constant 0 : index
      %c0_93 = arith.constant 0 : index
      %176 = vector.load %arg12[%c2_91, %c0_92, %c0_93] : memref<4x8x8xbf16, #tpu.memory_space<vmem>>, vector<1x8x8xbf16>
      %177 = vector.shape_cast %176 : vector<1x8x8xbf16> to vector<8x8xbf16>
      %178 = vector.shape_cast %175 : vector<8x8xbf16> to vector<1x8x8xbf16>
      tpu.vector_store %arg12[%c2_91, %c0_92, %c0_93], %178 {strides = array<i32>} : memref<4x8x8xbf16, #tpu.memory_space<vmem>>, vector<1x8x8xbf16>,
      %179 = vector.extract_strided_slice %153 {offsets = [0, 48], sizes = [8, 8], strides = [1, 1]} : vector<8x64xf32> to vector<8x8xf32>
      %180 = arith.truncf %179 : vector<8x8xf32> to vector<8x8xbf16>
      %c2_94 = arith.constant 2 : index
      %c0_95 = arith.constant 0 : index
      %c0_96 = arith.constant 0 : index
      %181 = vector.load %arg13[%c2_94, %c0_95, %c0_96] : memref<4x8x8xbf16, #tpu.memory_space<vmem>>, vector<1x8x8xbf16>
      %182 = vector.shape_cast %181 : vector<1x8x8xbf16> to vector<8x8xbf16>
      %183 = vector.shape_cast %180 : vector<8x8xbf16> to vector<1x8x8xbf16>
      tpu.vector_store %arg13[%c2_94, %c0_95, %c0_96], %183 {strides = array<i32>} : memref<4x8x8xbf16, #tpu.memory_space<vmem>>, vector<1x8x8xbf16>,
      %184 = vector.extract_strided_slice %153 {offsets = [0, 24], sizes = [8, 8], strides = [1, 1]} : vector<8x64xf32> to vector<8x8xf32>
      %185 = arith.truncf %184 : vector<8x8xf32> to vector<8x8xbf16>
      %c3_97 = arith.constant 3 : index
      %c0_98 = arith.constant 0 : index
      %c0_99 = arith.constant 0 : index
      %186 = vector.load %arg12[%c3_97, %c0_98, %c0_99] : memref<4x8x8xbf16, #tpu.memory_space<vmem>>, vector<1x8x8xbf16>
      %187 = vector.shape_cast %186 : vector<1x8x8xbf16> to vector<8x8xbf16>
      %188 = vector.shape_cast %185 : vector<8x8xbf16> to vector<1x8x8xbf16>
      tpu.vector_store %arg12[%c3_97, %c0_98, %c0_99], %188 {strides = array<i32>} : memref<4x8x8xbf16, #tpu.memory_space<vmem>>, vector<1x8x8xbf16>,
      %189 = vector.extract_strided_slice %153 {offsets = [0, 56], sizes = [8, 8], strides = [1, 1]} : vector<8x64xf32> to vector<8x8xf32>
      %190 = arith.truncf %189 : vector<8x8xf32> to vector<8x8xbf16>
      %c3_100 = arith.constant 3 : index
      %c0_101 = arith.constant 0 : index
      %c0_102 = arith.constant 0 : index
      %191 = vector.load %arg13[%c3_100, %c0_101, %c0_102] : memref<4x8x8xbf16, #tpu.memory_space<vmem>>, vector<1x8x8xbf16>
      %192 = vector.shape_cast %191 : vector<1x8x8xbf16> to vector<8x8xbf16>
      %193 = vector.shape_cast %190 : vector<8x8xbf16> to vector<1x8x8xbf16>
      tpu.vector_store %arg13[%c3_100, %c0_101, %c0_102], %193 {strides = array<i32>} : memref<4x8x8xbf16, #tpu.memory_space<vmem>>, vector<1x8x8xbf16>,
    } else {
    }
    %c8_i32 = arith.constant 8 : i32
    %3 = arith.muli %arg1, %c8_i32 : i32
    %4 = tpu.assume_multiple %3, 8 : i32
    %c0 = arith.constant 0 : index
    %5 = arith.index_cast %4 : i32 to index
    %c0_1 = arith.constant 0 : index
    %6 = vector.load %arg2[%c0, %5, %c0_1] : memref<1x8x32xf32, #tpu.memory_space<vmem>>, vector<1x8x32xf32>
    %7 = vector.shape_cast %6 : vector<1x8x32xf32> to vector<8x32xf32>
    %8 = arith.truncf %7 : vector<8x32xf32> to vector<8x32xbf16>
    %c0_2 = arith.constant 0 : index
    %c0_3 = arith.constant 0 : index
    %9 = vector.load %arg3[%c0_2, %c0_3] : memref<32x32xbf16, #tpu.memory_space<vmem>>, vector<32x32xbf16>
    %cst = arith.constant dense<0.000000e+00> : vector<8x32xf32>
    %10 = tpu.matmul %8, %9, %cst {dimension_numbers = #tpu.dot_dimension_numbers<[1], [0], [0], [1], [0, 0, 1, 1], [], []>} : vector<8x32xbf16>, vector<32x32xbf16>, vector<8x32xf32> -> vector<8x32xf32>
    %c0_4 = arith.constant 0 : index
    %c0_5 = arith.constant 0 : index
    %11 = vector.load %arg4[%c0_4, %c0_5] : memref<1x32xf32, #tpu.memory_space<vmem>>, vector<1x32xf32>
    %12 = vector.broadcast %11 : vector<1x32xf32> to vector<8x32xf32>
    %13 = arith.addf %10, %12 : vector<8x32xf32>
    %cst_6 = arith.constant 0.000000e+00 : f32
    %14 = vector.broadcast %cst_6 : f32 to vector<8x32xf32>
    %15 = vector.extract_strided_slice %13 {offsets = [0, 0], sizes = [8, 8], strides = [1, 1]} : vector<8x32xf32> to vector<8x8xf32>
    %cst_7 = arith.constant 0.353553385 : f32
    %16 = vector.broadcast %cst_7 : f32 to vector<8x8xf32>
    %17 = arith.mulf %15, %16 : vector<8x8xf32>
    %18 = arith.truncf %17 : vector<8x8xf32> to vector<8x8xbf16>
    %c0_8 = arith.constant 0 : index
    %c0_9 = arith.constant 0 : index
    %c0_10 = arith.constant 0 : index
    %19 = vector.load %arg12[%c0_8, %c0_9, %c0_10] : memref<4x8x8xbf16, #tpu.memory_space<vmem>>, vector<1x8x8xbf16>
    %20 = vector.shape_cast %19 : vector<1x8x8xbf16> to vector<8x8xbf16>
    %c0_11 = arith.constant 0 : index
    %c0_12 = arith.constant 0 : index
    %c0_13 = arith.constant 0 : index
    %21 = vector.load %arg13[%c0_11, %c0_12, %c0_13] : memref<4x8x8xbf16, #tpu.memory_space<vmem>>, vector<1x8x8xbf16>
    %22 = vector.shape_cast %21 : vector<1x8x8xbf16> to vector<8x8xbf16>
    %cst_14 = arith.constant dense<0.000000e+00> : vector<8x8xf32>
    %23 = tpu.matmul %18, %20, %cst_14 {dimension_numbers = #tpu.dot_dimension_numbers<[1], [1], [0], [0], [0, 0, 1, 0], [], []>} : vector<8x8xbf16>, vector<8x8xbf16>, vector<8x8xf32> -> vector<8x8xf32>
    %cst_15 = arith.constant dense<0xFF800000> : vector<8xf32>
    %24 = vector.multi_reduction <maximumf>, %23, %cst_15 [1] : vector<8x8xf32> to vector<8xf32>
    %25 = vector.shape_cast %24 : vector<8xf32> to vector<8x1xf32>
    %26 = vector.broadcast %25 : vector<8x1xf32> to vector<8x8xf32>
    %27 = arith.subf %23, %26 : vector<8x8xf32>
    %28 = math.exp %27 : vector<8x8xf32>
    %cst_16 = arith.constant dense<0.000000e+00> : vector<8xf32>
    %29 = vector.multi_reduction <add>, %28, %cst_16 [1] : vector<8x8xf32> to vector<8xf32>
    %30 = vector.shape_cast %29 : vector<8xf32> to vector<8x1xf32>
    %31 = arith.truncf %28 : vector<8x8xf32> to vector<8x8xbf16>
    %cst_17 = arith.constant dense<0.000000e+00> : vector<8x8xf32>
    %32 = tpu.matmul %31, %22, %cst_17 {dimension_numbers = #tpu.dot_dimension_numbers<[1], [0], [0], [1], [0, 0, 1, 1], [], []>} : vector<8x8xbf16>, vector<8x8xbf16>, vector<8x8xf32> -> vector<8x8xf32>
    %33 = tpu.reciprocal %30 {approx = true} : vector<8x1xf32> -> vector<8x1xf32>
    %34 = vector.broadcast %33 : vector<8x1xf32> to vector<8x8xf32>
    %35 = arith.mulf %32, %34 : vector<8x8xf32>
    %36 = arith.truncf %35 : vector<8x8xf32> to vector<8x8xbf16>
    %c0_18 = arith.constant 0 : index
    %c0_19 = arith.constant 0 : index
    %37 = vector.load %arg7[%c0_18, %c0_19] : memref<32x32xbf16, #tpu.memory_space<vmem>>, vector<8x32xbf16>
    %cst_20 = arith.constant dense<0.000000e+00> : vector<8x32xf32>
    %38 = tpu.matmul %36, %37, %cst_20 {dimension_numbers = #tpu.dot_dimension_numbers<[1], [0], [0], [1], [0, 0, 1, 1], [], []>} : vector<8x8xbf16>, vector<8x32xbf16>, vector<8x32xf32> -> vector<8x32xf32>
    %39 = arith.addf %14, %38 : vector<8x32xf32>
    %40 = vector.extract_strided_slice %13 {offsets = [0, 8], sizes = [8, 8], strides = [1, 1]} : vector<8x32xf32> to vector<8x8xf32>
    %cst_21 = arith.constant 0.353553385 : f32
    %41 = vector.broadcast %cst_21 : f32 to vector<8x8xf32>
    %42 = arith.mulf %40, %41 : vector<8x8xf32>
    %43 = arith.truncf %42 : vector<8x8xf32> to vector<8x8xbf16>
    %c1 = arith.constant 1 : index
    %c0_22 = arith.constant 0 : index
    %c0_23 = arith.constant 0 : index
    %44 = vector.load %arg12[%c1, %c0_22, %c0_23] : memref<4x8x8xbf16, #tpu.memory_space<vmem>>, vector<1x8x8xbf16>
    %45 = vector.shape_cast %44 : vector<1x8x8xbf16> to vector<8x8xbf16>
    %c1_24 = arith.constant 1 : index
    %c0_25 = arith.constant 0 : index
    %c0_26 = arith.constant 0 : index
    %46 = vector.load %arg13[%c1_24, %c0_25, %c0_26] : memref<4x8x8xbf16, #tpu.memory_space<vmem>>, vector<1x8x8xbf16>
    %47 = vector.shape_cast %46 : vector<1x8x8xbf16> to vector<8x8xbf16>
    %cst_27 = arith.constant dense<0.000000e+00> : vector<8x8xf32>
    %48 = tpu.matmul %43, %45, %cst_27 {dimension_numbers = #tpu.dot_dimension_numbers<[1], [1], [0], [0], [0, 0, 1, 0], [], []>} : vector<8x8xbf16>, vector<8x8xbf16>, vector<8x8xf32> -> vector<8x8xf32>
    %cst_28 = arith.constant dense<0xFF800000> : vector<8xf32>
    %49 = vector.multi_reduction <maximumf>, %48, %cst_28 [1] : vector<8x8xf32> to vector<8xf32>
    %50 = vector.shape_cast %49 : vector<8xf32> to vector<8x1xf32>
    %51 = vector.broadcast %50 : vector<8x1xf32> to vector<8x8xf32>
    %52 = arith.subf %48, %51 : vector<8x8xf32>
    %53 = math.exp %52 : vector<8x8xf32>
    %cst_29 = arith.constant dense<0.000000e+00> : vector<8xf32>
    %54 = vector.multi_reduction <add>, %53, %cst_29 [1] : vector<8x8xf32> to vector<8xf32>
    %55 = vector.shape_cast %54 : vector<8xf32> to vector<8x1xf32>
    %56 = arith.truncf %53 : vector<8x8xf32> to vector<8x8xbf16>
    %cst_30 = arith.constant dense<0.000000e+00> : vector<8x8xf32>
    %57 = tpu.matmul %56, %47, %cst_30 {dimension_numbers = #tpu.dot_dimension_numbers<[1], [0], [0], [1], [0, 0, 1, 1], [], []>} : vector<8x8xbf16>, vector<8x8xbf16>, vector<8x8xf32> -> vector<8x8xf32>
    %58 = tpu.reciprocal %55 {approx = true} : vector<8x1xf32> -> vector<8x1xf32>
    %59 = vector.broadcast %58 : vector<8x1xf32> to vector<8x8xf32>
    %60 = arith.mulf %57, %59 : vector<8x8xf32>
    %61 = arith.truncf %60 : vector<8x8xf32> to vector<8x8xbf16>
    %c8 = arith.constant 8 : index
    %c0_31 = arith.constant 0 : index
    %62 = vector.load %arg7[%c8, %c0_31] : memref<32x32xbf16, #tpu.memory_space<vmem>>, vector<8x32xbf16>
    %cst_32 = arith.constant dense<0.000000e+00> : vector<8x32xf32>
    %63 = tpu.matmul %61, %62, %cst_32 {dimension_numbers = #tpu.dot_dimension_numbers<[1], [0], [0], [1], [0, 0, 1, 1], [], []>} : vector<8x8xbf16>, vector<8x32xbf16>, vector<8x32xf32> -> vector<8x32xf32>
    %64 = arith.addf %39, %63 : vector<8x32xf32>
    %65 = vector.extract_strided_slice %13 {offsets = [0, 16], sizes = [8, 8], strides = [1, 1]} : vector<8x32xf32> to vector<8x8xf32>
    %cst_33 = arith.constant 0.353553385 : f32
    %66 = vector.broadcast %cst_33 : f32 to vector<8x8xf32>
    %67 = arith.mulf %65, %66 : vector<8x8xf32>
    %68 = arith.truncf %67 : vector<8x8xf32> to vector<8x8xbf16>
    %c2 = arith.constant 2 : index
    %c0_34 = arith.constant 0 : index
    %c0_35 = arith.constant 0 : index
    %69 = vector.load %arg12[%c2, %c0_34, %c0_35] : memref<4x8x8xbf16, #tpu.memory_space<vmem>>, vector<1x8x8xbf16>
    %70 = vector.shape_cast %69 : vector<1x8x8xbf16> to vector<8x8xbf16>
    %c2_36 = arith.constant 2 : index
    %c0_37 = arith.constant 0 : index
    %c0_38 = arith.constant 0 : index
    %71 = vector.load %arg13[%c2_36, %c0_37, %c0_38] : memref<4x8x8xbf16, #tpu.memory_space<vmem>>, vector<1x8x8xbf16>
    %72 = vector.shape_cast %71 : vector<1x8x8xbf16> to vector<8x8xbf16>
    %cst_39 = arith.constant dense<0.000000e+00> : vector<8x8xf32>
    %73 = tpu.matmul %68, %70, %cst_39 {dimension_numbers = #tpu.dot_dimension_numbers<[1], [1], [0], [0], [0, 0, 1, 0], [], []>} : vector<8x8xbf16>, vector<8x8xbf16>, vector<8x8xf32> -> vector<8x8xf32>
    %cst_40 = arith.constant dense<0xFF800000> : vector<8xf32>
    %74 = vector.multi_reduction <maximumf>, %73, %cst_40 [1] : vector<8x8xf32> to vector<8xf32>
    %75 = vector.shape_cast %74 : vector<8xf32> to vector<8x1xf32>
    %76 = vector.broadcast %75 : vector<8x1xf32> to vector<8x8xf32>
    %77 = arith.subf %73, %76 : vector<8x8xf32>
    %78 = math.exp %77 : vector<8x8xf32>
    %cst_41 = arith.constant dense<0.000000e+00> : vector<8xf32>
    %79 = vector.multi_reduction <add>, %78, %cst_41 [1] : vector<8x8xf32> to vector<8xf32>
    %80 = vector.shape_cast %79 : vector<8xf32> to vector<8x1xf32>
    %81 = arith.truncf %78 : vector<8x8xf32> to vector<8x8xbf16>
    %cst_42 = arith.constant dense<0.000000e+00> : vector<8x8xf32>
    %82 = tpu.matmul %81, %72, %cst_42 {dimension_numbers = #tpu.dot_dimension_numbers<[1], [0], [0], [1], [0, 0, 1, 1], [], []>} : vector<8x8xbf16>, vector<8x8xbf16>, vector<8x8xf32> -> vector<8x8xf32>
    %83 = tpu.reciprocal %80 {approx = true} : vector<8x1xf32> -> vector<8x1xf32>
    %84 = vector.broadcast %83 : vector<8x1xf32> to vector<8x8xf32>
    %85 = arith.mulf %82, %84 : vector<8x8xf32>
    %86 = arith.truncf %85 : vector<8x8xf32> to vector<8x8xbf16>
    %c16 = arith.constant 16 : index
    %c0_43 = arith.constant 0 : index
    %87 = vector.load %arg7[%c16, %c0_43] : memref<32x32xbf16, #tpu.memory_space<vmem>>, vector<8x32xbf16>
    %cst_44 = arith.constant dense<0.000000e+00> : vector<8x32xf32>
    %88 = tpu.matmul %86, %87, %cst_44 {dimension_numbers = #tpu.dot_dimension_numbers<[1], [0], [0], [1], [0, 0, 1, 1], [], []>} : vector<8x8xbf16>, vector<8x32xbf16>, vector<8x32xf32> -> vector<8x32xf32>
    %89 = arith.addf %64, %88 : vector<8x32xf32>
    %90 = vector.extract_strided_slice %13 {offsets = [0, 24], sizes = [8, 8], strides = [1, 1]} : vector<8x32xf32> to vector<8x8xf32>
    %cst_45 = arith.constant 0.353553385 : f32
    %91 = vector.broadcast %cst_45 : f32 to vector<8x8xf32>
    %92 = arith.mulf %90, %91 : vector<8x8xf32>
    %93 = arith.truncf %92 : vector<8x8xf32> to vector<8x8xbf16>
    %c3 = arith.constant 3 : index
    %c0_46 = arith.constant 0 : index
    %c0_47 = arith.constant 0 : index
    %94 = vector.load %arg12[%c3, %c0_46, %c0_47] : memref<4x8x8xbf16, #tpu.memory_space<vmem>>, vector<1x8x8xbf16>
    %95 = vector.shape_cast %94 : vector<1x8x8xbf16> to vector<8x8xbf16>
    %c3_48 = arith.constant 3 : index
    %c0_49 = arith.constant 0 : index
    %c0_50 = arith.constant 0 : index
    %96 = vector.load %arg13[%c3_48, %c0_49, %c0_50] : memref<4x8x8xbf16, #tpu.memory_space<vmem>>, vector<1x8x8xbf16>
    %97 = vector.shape_cast %96 : vector<1x8x8xbf16> to vector<8x8xbf16>
    %cst_51 = arith.constant dense<0.000000e+00> : vector<8x8xf32>
    %98 = tpu.matmul %93, %95, %cst_51 {dimension_numbers = #tpu.dot_dimension_numbers<[1], [1], [0], [0], [0, 0, 1, 0], [], []>} : vector<8x8xbf16>, vector<8x8xbf16>, vector<8x8xf32> -> vector<8x8xf32>
    %cst_52 = arith.constant dense<0xFF800000> : vector<8xf32>
    %99 = vector.multi_reduction <maximumf>, %98, %cst_52 [1] : vector<8x8xf32> to vector<8xf32>
    %100 = vector.shape_cast %99 : vector<8xf32> to vector<8x1xf32>
    %101 = vector.broadcast %100 : vector<8x1xf32> to vector<8x8xf32>
    %102 = arith.subf %98, %101 : vector<8x8xf32>
    %103 = math.exp %102 : vector<8x8xf32>
    %cst_53 = arith.constant dense<0.000000e+00> : vector<8xf32>
    %104 = vector.multi_reduction <add>, %103, %cst_53 [1] : vector<8x8xf32> to vector<8xf32>
    %105 = vector.shape_cast %104 : vector<8xf32> to vector<8x1xf32>
    %106 = arith.truncf %103 : vector<8x8xf32> to vector<8x8xbf16>
    %cst_54 = arith.constant dense<0.000000e+00> : vector<8x8xf32>
    %107 = tpu.matmul %106, %97, %cst_54 {dimension_numbers = #tpu.dot_dimension_numbers<[1], [0], [0], [1], [0, 0, 1, 1], [], []>} : vector<8x8xbf16>, vector<8x8xbf16>, vector<8x8xf32> -> vector<8x8xf32>
    %108 = tpu.reciprocal %105 {approx = true} : vector<8x1xf32> -> vector<8x1xf32>
    %109 = vector.broadcast %108 : vector<8x1xf32> to vector<8x8xf32>
    %110 = arith.mulf %107, %109 : vector<8x8xf32>
    %111 = arith.truncf %110 : vector<8x8xf32> to vector<8x8xbf16>
    %c24 = arith.constant 24 : index
    %c0_55 = arith.constant 0 : index
    %112 = vector.load %arg7[%c24, %c0_55] : memref<32x32xbf16, #tpu.memory_space<vmem>>, vector<8x32xbf16>
    %cst_56 = arith.constant dense<0.000000e+00> : vector<8x32xf32>
    %113 = tpu.matmul %111, %112, %cst_56 {dimension_numbers = #tpu.dot_dimension_numbers<[1], [0], [0], [1], [0, 0, 1, 1], [], []>} : vector<8x8xbf16>, vector<8x32xbf16>, vector<8x32xf32> -> vector<8x32xf32>
    %114 = arith.addf %89, %113 : vector<8x32xf32>
    %115 = arith.addf %7, %114 : vector<8x32xf32>
    %c0_57 = arith.constant 0 : index
    %c0_58 = arith.constant 0 : index
    %116 = vector.load %arg8[%c0_57, %c0_58] : memref<1x32xf32, #tpu.memory_space<vmem>>, vector<1x32xf32>
    %117 = vector.broadcast %116 : vector<1x32xf32> to vector<8x32xf32>
    %118 = arith.addf %115, %117 : vector<8x32xf32>
    %c0_59 = arith.constant 0 : index
    %c0_60 = arith.constant 0 : index
    %119 = vector.load %arg9[%c0_59, %c0_60] : memref<1x32xf32, #tpu.memory_space<vmem>>, vector<1x32xf32>
    %c0_61 = arith.constant 0 : index
    %c0_62 = arith.constant 0 : index
    %120 = vector.load %arg10[%c0_61, %c0_62] : memref<1x32xf32, #tpu.memory_space<vmem>>, vector<1x32xf32>
    %cst_63 = arith.constant dense<0.000000e+00> : vector<8xf32>
    %121 = vector.multi_reduction <add>, %118, %cst_63 [1] : vector<8x32xf32> to vector<8xf32>
    %122 = vector.shape_cast %121 : vector<8xf32> to vector<8x1xf32>
    %cst_64 = arith.constant 3.200000e+01 : f32
    %123 = vector.broadcast %cst_64 : f32 to vector<8x1xf32>
    %124 = arith.divf %122, %123 : vector<8x1xf32>
    %125 = vector.broadcast %124 : vector<8x1xf32> to vector<8x32xf32>
    %126 = arith.subf %118, %125 : vector<8x32xf32>
    %127 = arith.mulf %126, %126 : vector<8x32xf32>
    %cst_65 = arith.constant dense<0.000000e+00> : vector<8xf32>
    %128 = vector.multi_reduction <add>, %127, %cst_65 [1] : vector<8x32xf32> to vector<8xf32>
    %129 = vector.shape_cast %128 : vector<8xf32> to vector<8x1xf32>
    %cst_66 = arith.constant 3.200000e+01 : f32
    %130 = vector.broadcast %cst_66 : f32 to vector<8x1xf32>
    %131 = arith.divf %129, %130 : vector<8x1xf32>
    %132 = vector.broadcast %124 : vector<8x1xf32> to vector<8x32xf32>
    %133 = arith.subf %118, %132 : vector<8x32xf32>
    %cst_67 = arith.constant 9.99999974E-6 : f32
    %134 = vector.broadcast %cst_67 : f32 to vector<8x1xf32>
    %135 = arith.addf %131, %134 : vector<8x1xf32>
    %136 = math.rsqrt %135 : vector<8x1xf32>
    %137 = vector.broadcast %136 : vector<8x1xf32> to vector<8x32xf32>
    %138 = arith.mulf %133, %137 : vector<8x32xf32>
    %139 = vector.broadcast %119 : vector<1x32xf32> to vector<8x32xf32>
    %140 = arith.mulf %138, %139 : vector<8x32xf32>
    %141 = vector.broadcast %120 : vector<1x32xf32> to vector<8x32xf32>
    %142 = arith.addf %140, %141 : vector<8x32xf32>
    %c0_68 = arith.constant 0 : index
    %c0_69 = arith.constant 0 : index
    %c0_70 = arith.constant 0 : index
    %143 = vector.load %arg11[%c0_68, %c0_69, %c0_70] : memref<1x8x32xf32, #tpu.memory_space<vmem>>, vector<1x8x32xf32>
    %144 = vector.shape_cast %143 : vector<1x8x32xf32> to vector<8x32xf32>
    %145 = vector.shape_cast %142 : vector<8x32xf32> to vector<1x8x32xf32>
    tpu.vector_store %arg11[%c0_68, %c0_69, %c0_70], %145 {strides = array<i32>} : memref<1x8x32xf32, #tpu.memory_space<vmem>>, vector<1x8x32xf32>,
    return
  }
  func.func @transform_0(%arg0: i32, %arg1: i32) -> (i32, i32, i32) {
    %c0_i32 = arith.constant 0 : i32
    %c0_i32_0 = arith.constant 0 : i32
    %c0_i32_1 = arith.constant 0 : i32
    return %arg0, %c0_i32, %c0_i32_0 : i32, i32, i32
  }
  func.func @transform_1(%arg0: i32, %arg1: i32) -> (i32, i32) {
    %c0_i32 = arith.constant 0 : i32
    %c0_i32_0 = arith.constant 0 : i32
    %c0_i32_1 = arith.constant 0 : i32
    return %c0_i32, %c0_i32_0 : i32, i32
  }
  func.func @transform_2(%arg0: i32, %arg1: i32) -> (i32, i32) {
    %c0_i32 = arith.constant 0 : i32
    %c0_i32_0 = arith.constant 0 : i32
    %c0_i32_1 = arith.constant 0 : i32
    return %c0_i32, %c0_i32_0 : i32, i32
  }
  func.func @transform_3(%arg0: i32, %arg1: i32) -> (i32, i32) {
    %c0_i32 = arith.constant 0 : i32
    %c0_i32_0 = arith.constant 0 : i32
    %c0_i32_1 = arith.constant 0 : i32
    return %c0_i32, %c0_i32_0 : i32, i32
  }
  func.func @transform_4(%arg0: i32, %arg1: i32) -> (i32, i32) {
    %c0_i32 = arith.constant 0 : i32
    %c0_i32_0 = arith.constant 0 : i32
    %c0_i32_1 = arith.constant 0 : i32
    return %c0_i32, %c0_i32_0 : i32, i32
  }
  func.func @transform_5(%arg0: i32, %arg1: i32) -> (i32, i32) {
    %c0_i32 = arith.constant 0 : i32
    %c0_i32_0 = arith.constant 0 : i32
    %c0_i32_1 = arith.constant 0 : i32
    return %c0_i32, %c0_i32_0 : i32, i32
  }
  func.func @transform_6(%arg0: i32, %arg1: i32) -> (i32, i32) {
    %c0_i32 = arith.constant 0 : i32
    %c0_i32_0 = arith.constant 0 : i32
    %c0_i32_1 = arith.constant 0 : i32
    return %c0_i32, %c0_i32_0 : i32, i32
  }
  func.func @transform_7(%arg0: i32, %arg1: i32) -> (i32, i32) {
    %c0_i32 = arith.constant 0 : i32
    %c0_i32_0 = arith.constant 0 : i32
    %c0_i32_1 = arith.constant 0 : i32
    return %c0_i32, %c0_i32_0 : i32, i32
  }
  func.func @transform_8(%arg0: i32, %arg1: i32) -> (i32, i32) {
    %c0_i32 = arith.constant 0 : i32
    %c0_i32_0 = arith.constant 0 : i32
    %c0_i32_1 = arith.constant 0 : i32
    return %c0_i32, %c0_i32_0 : i32, i32
  }
  func.func @transform_9(%arg0: i32, %arg1: i32) -> (i32, i32, i32) {
    %c0_i32 = arith.constant 0 : i32
    %c0_i32_0 = arith.constant 0 : i32
    return %arg0, %arg1, %c0_i32 : i32, i32, i32
  }
}

module attributes {stable_mosaic.version = 11 : i64} {
  func.func @_ffn_block_final_norm_kernel(%arg0: i32, %arg1: memref<8x32xf32, #tpu.memory_space<vmem>>, %arg2: memref<32x64xbf16, #tpu.memory_space<vmem>>, %arg3: memref<1x64xf32, #tpu.memory_space<vmem>>, %arg4: memref<64x32xbf16, #tpu.memory_space<vmem>>, %arg5: memref<1x32xf32, #tpu.memory_space<vmem>>, %arg6: memref<1x32xf32, #tpu.memory_space<vmem>>, %arg7: memref<1x32xf32, #tpu.memory_space<vmem>>, %arg8: memref<1x32xf32, #tpu.memory_space<vmem>>, %arg9: memref<1x32xf32, #tpu.memory_space<vmem>>, %arg10: memref<8x32xf32, #tpu.memory_space<vmem>>) attributes {dimension_semantics = [#tpu.dimension_semantics<parallel>], iteration_bounds = array<i64: 2>, scalar_prefetch = 0 : i64, scratch_operands = 0 : i64, tpu.core_type = #tpu.core_type<tc>, window_params = [{transform_indices = @transform_0, window_bounds = array<i64: 8, 32>}, {pipeline_mode = #tpu.pipeline_mode<synchronous>, transform_indices = @transform_1, window_bounds = array<i64: 32, 64>}, {pipeline_mode = #tpu.pipeline_mode<synchronous>, transform_indices = @transform_2, window_bounds = array<i64: 1, 64>}, {pipeline_mode = #tpu.pipeline_mode<synchronous>, transform_indices = @transform_3, window_bounds = array<i64: 64, 32>}, {pipeline_mode = #tpu.pipeline_mode<synchronous>, transform_indices = @transform_4, window_bounds = array<i64: 1, 32>}, {pipeline_mode = #tpu.pipeline_mode<synchronous>, transform_indices = @transform_5, window_bounds = array<i64: 1, 32>}, {pipeline_mode = #tpu.pipeline_mode<synchronous>, transform_indices = @transform_6, window_bounds = array<i64: 1, 32>}, {pipeline_mode = #tpu.pipeline_mode<synchronous>, transform_indices = @transform_7, window_bounds = array<i64: 1, 32>}, {pipeline_mode = #tpu.pipeline_mode<synchronous>, transform_indices = @transform_8, window_bounds = array<i64: 1, 32>}, {transform_indices = @transform_9, window_bounds = array<i64: 8, 32>}]} {
    %c0 = arith.constant 0 : index
    %c0_0 = arith.constant 0 : index
    %0 = vector.load %arg1[%c0, %c0_0] : memref<8x32xf32, #tpu.memory_space<vmem>>, vector<8x32xf32>
    %1 = arith.truncf %0 : vector<8x32xf32> to vector<8x32xbf16>
    %c0_1 = arith.constant 0 : index
    %c0_2 = arith.constant 0 : index
    %2 = vector.load %arg2[%c0_1, %c0_2] : memref<32x64xbf16, #tpu.memory_space<vmem>>, vector<32x64xbf16>
    %cst = arith.constant dense<0.000000e+00> : vector<8x64xf32>
    %3 = tpu.matmul %1, %2, %cst {dimension_numbers = #tpu.dot_dimension_numbers<[1], [0], [0], [1], [0, 0, 1, 1], [], []>} : vector<8x32xbf16>, vector<32x64xbf16>, vector<8x64xf32> -> vector<8x64xf32>
    %c0_3 = arith.constant 0 : index
    %c0_4 = arith.constant 0 : index
    %4 = vector.load %arg3[%c0_3, %c0_4] : memref<1x64xf32, #tpu.memory_space<vmem>>, vector<1x64xf32>
    %5 = vector.broadcast %4 : vector<1x64xf32> to vector<8x64xf32>
    %6 = arith.addf %3, %5 : vector<8x64xf32>
    %cst_5 = arith.constant 0.000000e+00 : f32
    %7 = vector.broadcast %cst_5 : f32 to vector<8x64xf32>
    %8 = arith.maximumf %6, %7 : vector<8x64xf32>
    %9 = arith.truncf %8 : vector<8x64xf32> to vector<8x64xbf16>
    %c0_6 = arith.constant 0 : index
    %c0_7 = arith.constant 0 : index
    %10 = vector.load %arg4[%c0_6, %c0_7] : memref<64x32xbf16, #tpu.memory_space<vmem>>, vector<64x32xbf16>
    %cst_8 = arith.constant dense<0.000000e+00> : vector<8x32xf32>
    %11 = tpu.matmul %9, %10, %cst_8 {dimension_numbers = #tpu.dot_dimension_numbers<[1], [0], [0], [1], [0, 0, 1, 1], [], []>} : vector<8x64xbf16>, vector<64x32xbf16>, vector<8x32xf32> -> vector<8x32xf32>
    %c0_9 = arith.constant 0 : index
    %c0_10 = arith.constant 0 : index
    %12 = vector.load %arg5[%c0_9, %c0_10] : memref<1x32xf32, #tpu.memory_space<vmem>>, vector<1x32xf32>
    %13 = vector.broadcast %12 : vector<1x32xf32> to vector<8x32xf32>
    %14 = arith.addf %11, %13 : vector<8x32xf32>
    %15 = arith.addf %0, %14 : vector<8x32xf32>
    %c0_11 = arith.constant 0 : index
    %c0_12 = arith.constant 0 : index
    %16 = vector.load %arg6[%c0_11, %c0_12] : memref<1x32xf32, #tpu.memory_space<vmem>>, vector<1x32xf32>
    %c0_13 = arith.constant 0 : index
    %c0_14 = arith.constant 0 : index
    %17 = vector.load %arg7[%c0_13, %c0_14] : memref<1x32xf32, #tpu.memory_space<vmem>>, vector<1x32xf32>
    %cst_15 = arith.constant dense<0.000000e+00> : vector<8xf32>
    %18 = vector.multi_reduction <add>, %15, %cst_15 [1] : vector<8x32xf32> to vector<8xf32>
    %19 = vector.shape_cast %18 : vector<8xf32> to vector<8x1xf32>
    %cst_16 = arith.constant 3.200000e+01 : f32
    %20 = vector.broadcast %cst_16 : f32 to vector<8x1xf32>
    %21 = arith.divf %19, %20 : vector<8x1xf32>
    %22 = vector.broadcast %21 : vector<8x1xf32> to vector<8x32xf32>
    %23 = arith.subf %15, %22 : vector<8x32xf32>
    %24 = arith.mulf %23, %23 : vector<8x32xf32>
    %cst_17 = arith.constant dense<0.000000e+00> : vector<8xf32>
    %25 = vector.multi_reduction <add>, %24, %cst_17 [1] : vector<8x32xf32> to vector<8xf32>
    %26 = vector.shape_cast %25 : vector<8xf32> to vector<8x1xf32>
    %cst_18 = arith.constant 3.200000e+01 : f32
    %27 = vector.broadcast %cst_18 : f32 to vector<8x1xf32>
    %28 = arith.divf %26, %27 : vector<8x1xf32>
    %29 = vector.broadcast %21 : vector<8x1xf32> to vector<8x32xf32>
    %30 = arith.subf %15, %29 : vector<8x32xf32>
    %cst_19 = arith.constant 9.99999974E-6 : f32
    %31 = vector.broadcast %cst_19 : f32 to vector<8x1xf32>
    %32 = arith.addf %28, %31 : vector<8x1xf32>
    %33 = math.rsqrt %32 : vector<8x1xf32>
    %34 = vector.broadcast %33 : vector<8x1xf32> to vector<8x32xf32>
    %35 = arith.mulf %30, %34 : vector<8x32xf32>
    %36 = vector.broadcast %16 : vector<1x32xf32> to vector<8x32xf32>
    %37 = arith.mulf %35, %36 : vector<8x32xf32>
    %38 = vector.broadcast %17 : vector<1x32xf32> to vector<8x32xf32>
    %39 = arith.addf %37, %38 : vector<8x32xf32>
    %c0_20 = arith.constant 0 : index
    %c0_21 = arith.constant 0 : index
    %40 = vector.load %arg8[%c0_20, %c0_21] : memref<1x32xf32, #tpu.memory_space<vmem>>, vector<1x32xf32>
    %c0_22 = arith.constant 0 : index
    %c0_23 = arith.constant 0 : index
    %41 = vector.load %arg9[%c0_22, %c0_23] : memref<1x32xf32, #tpu.memory_space<vmem>>, vector<1x32xf32>
    %cst_24 = arith.constant dense<0.000000e+00> : vector<8xf32>
    %42 = vector.multi_reduction <add>, %39, %cst_24 [1] : vector<8x32xf32> to vector<8xf32>
    %43 = vector.shape_cast %42 : vector<8xf32> to vector<8x1xf32>
    %cst_25 = arith.constant 3.200000e+01 : f32
    %44 = vector.broadcast %cst_25 : f32 to vector<8x1xf32>
    %45 = arith.divf %43, %44 : vector<8x1xf32>
    %46 = vector.broadcast %45 : vector<8x1xf32> to vector<8x32xf32>
    %47 = arith.subf %39, %46 : vector<8x32xf32>
    %48 = arith.mulf %47, %47 : vector<8x32xf32>
    %cst_26 = arith.constant dense<0.000000e+00> : vector<8xf32>
    %49 = vector.multi_reduction <add>, %48, %cst_26 [1] : vector<8x32xf32> to vector<8xf32>
    %50 = vector.shape_cast %49 : vector<8xf32> to vector<8x1xf32>
    %cst_27 = arith.constant 3.200000e+01 : f32
    %51 = vector.broadcast %cst_27 : f32 to vector<8x1xf32>
    %52 = arith.divf %50, %51 : vector<8x1xf32>
    %53 = vector.broadcast %45 : vector<8x1xf32> to vector<8x32xf32>
    %54 = arith.subf %39, %53 : vector<8x32xf32>
    %cst_28 = arith.constant 9.99999974E-6 : f32
    %55 = vector.broadcast %cst_28 : f32 to vector<8x1xf32>
    %56 = arith.addf %52, %55 : vector<8x1xf32>
    %57 = math.rsqrt %56 : vector<8x1xf32>
    %58 = vector.broadcast %57 : vector<8x1xf32> to vector<8x32xf32>
    %59 = arith.mulf %54, %58 : vector<8x32xf32>
    %60 = vector.broadcast %40 : vector<1x32xf32> to vector<8x32xf32>
    %61 = arith.mulf %59, %60 : vector<8x32xf32>
    %62 = vector.broadcast %41 : vector<1x32xf32> to vector<8x32xf32>
    %63 = arith.addf %61, %62 : vector<8x32xf32>
    %c0_29 = arith.constant 0 : index
    %c0_30 = arith.constant 0 : index
    %64 = vector.load %arg10[%c0_29, %c0_30] : memref<8x32xf32, #tpu.memory_space<vmem>>, vector<8x32xf32>
    tpu.vector_store %arg10[%c0_29, %c0_30], %63 {strides = array<i32>} : memref<8x32xf32, #tpu.memory_space<vmem>>, vector<8x32xf32>,
    return
  }
  func.func @transform_0(%arg0: i32) -> (i32, i32) {
    %c0_i32 = arith.constant 0 : i32
    %c0_i32_0 = arith.constant 0 : i32
    return %arg0, %c0_i32 : i32, i32
  }
  func.func @transform_1(%arg0: i32) -> (i32, i32) {
    %c0_i32 = arith.constant 0 : i32
    %c0_i32_0 = arith.constant 0 : i32
    %c0_i32_1 = arith.constant 0 : i32
    return %c0_i32, %c0_i32_0 : i32, i32
  }
  func.func @transform_2(%arg0: i32) -> (i32, i32) {
    %c0_i32 = arith.constant 0 : i32
    %c0_i32_0 = arith.constant 0 : i32
    %c0_i32_1 = arith.constant 0 : i32
    return %c0_i32, %c0_i32_0 : i32, i32
  }
  func.func @transform_3(%arg0: i32) -> (i32, i32) {
    %c0_i32 = arith.constant 0 : i32
    %c0_i32_0 = arith.constant 0 : i32
    %c0_i32_1 = arith.constant 0 : i32
    return %c0_i32, %c0_i32_0 : i32, i32
  }
  func.func @transform_4(%arg0: i32) -> (i32, i32) {
    %c0_i32 = arith.constant 0 : i32
    %c0_i32_0 = arith.constant 0 : i32
    %c0_i32_1 = arith.constant 0 : i32
    return %c0_i32, %c0_i32_0 : i32, i32
  }
  func.func @transform_5(%arg0: i32) -> (i32, i32) {
    %c0_i32 = arith.constant 0 : i32
    %c0_i32_0 = arith.constant 0 : i32
    %c0_i32_1 = arith.constant 0 : i32
    return %c0_i32, %c0_i32_0 : i32, i32
  }
  func.func @transform_6(%arg0: i32) -> (i32, i32) {
    %c0_i32 = arith.constant 0 : i32
    %c0_i32_0 = arith.constant 0 : i32
    %c0_i32_1 = arith.constant 0 : i32
    return %c0_i32, %c0_i32_0 : i32, i32
  }
  func.func @transform_7(%arg0: i32) -> (i32, i32) {
    %c0_i32 = arith.constant 0 : i32
    %c0_i32_0 = arith.constant 0 : i32
    %c0_i32_1 = arith.constant 0 : i32
    return %c0_i32, %c0_i32_0 : i32, i32
  }
  func.func @transform_8(%arg0: i32) -> (i32, i32) {
    %c0_i32 = arith.constant 0 : i32
    %c0_i32_0 = arith.constant 0 : i32
    %c0_i32_1 = arith.constant 0 : i32
    return %c0_i32, %c0_i32_0 : i32, i32
  }
  func.func @transform_9(%arg0: i32) -> (i32, i32) {
    %c0_i32 = arith.constant 0 : i32
    %c0_i32_0 = arith.constant 0 : i32
    return %arg0, %c0_i32 : i32, i32
  }
}

module attributes {stable_mosaic.version = 11 : i64} {
  func.func @_self_attn_block_kernel(%arg0: i32, %arg1: i32, %arg2: memref<1x8x32xf32, #tpu.memory_space<vmem>>, %arg3: memref<32x32xbf16, #tpu.memory_space<vmem>>, %arg4: memref<1x32xf32, #tpu.memory_space<vmem>>, %arg5: memref<32x64xbf16, #tpu.memory_space<vmem>>, %arg6: memref<1x64xf32, #tpu.memory_space<vmem>>, %arg7: memref<32x32xbf16, #tpu.memory_space<vmem>>, %arg8: memref<1x32xf32, #tpu.memory_space<vmem>>, %arg9: memref<1x32xf32, #tpu.memory_space<vmem>>, %arg10: memref<1x32xf32, #tpu.memory_space<vmem>>, %arg11: memref<1x8x32xf32, #tpu.memory_space<vmem>>, %arg12: memref<4x8x8xbf16, #tpu.memory_space<vmem>>, %arg13: memref<4x8x8xbf16, #tpu.memory_space<vmem>>) attributes {dimension_semantics = [#tpu.dimension_semantics<parallel>, #tpu.dimension_semantics<arbitrary>], iteration_bounds = array<i64: 2, 1>, scalar_prefetch = 0 : i64, scratch_operands = 2 : i64, tpu.core_type = #tpu.core_type<tc>, window_params = [{transform_indices = @transform_0, window_bounds = array<i64: 1, 8, 32>}, {pipeline_mode = #tpu.pipeline_mode<synchronous>, transform_indices = @transform_1, window_bounds = array<i64: 32, 32>}, {pipeline_mode = #tpu.pipeline_mode<synchronous>, transform_indices = @transform_2, window_bounds = array<i64: 1, 32>}, {pipeline_mode = #tpu.pipeline_mode<synchronous>, transform_indices = @transform_3, window_bounds = array<i64: 32, 64>}, {pipeline_mode = #tpu.pipeline_mode<synchronous>, transform_indices = @transform_4, window_bounds = array<i64: 1, 64>}, {pipeline_mode = #tpu.pipeline_mode<synchronous>, transform_indices = @transform_5, window_bounds = array<i64: 32, 32>}, {pipeline_mode = #tpu.pipeline_mode<synchronous>, transform_indices = @transform_6, window_bounds = array<i64: 1, 32>}, {pipeline_mode = #tpu.pipeline_mode<synchronous>, transform_indices = @transform_7, window_bounds = array<i64: 1, 32>}, {pipeline_mode = #tpu.pipeline_mode<synchronous>, transform_indices = @transform_8, window_bounds = array<i64: 1, 32>}, {transform_indices = @transform_9, window_bounds = array<i64: 1, 8, 32>}]} {
    %c0_i32 = arith.constant 0 : i32
    %0 = arith.cmpi eq, %arg1, %c0_i32 : i32
    %1 = arith.extui %0 : i1 to i32
    %c0_i32_0 = arith.constant 0 : i32
    %2 = arith.cmpi ne, %1, %c0_i32_0 : i32
    scf.if %2 {
      %c0_71 = arith.constant 0 : index
      %c0_72 = arith.constant 0 : index
      %c0_73 = arith.constant 0 : index
      %146 = vector.load %arg2[%c0_71, %c0_72, %c0_73] : memref<1x8x32xf32, #tpu.memory_space<vmem>>, vector<1x8x32xf32>
      %147 = vector.shape_cast %146 : vector<1x8x32xf32> to vector<8x32xf32>
      %148 = arith.truncf %147 : vector<8x32xf32> to vector<8x32xbf16>
      %c0_74 = arith.constant 0 : index
      %c0_75 = arith.constant 0 : index
      %149 = vector.load %arg5[%c0_74, %c0_75] : memref<32x64xbf16, #tpu.memory_space<vmem>>, vector<32x64xbf16>
      %cst_76 = arith.constant dense<0.000000e+00> : vector<8x64xf32>
      %150 = tpu.matmul %148, %149, %cst_76 {dimension_numbers = #tpu.dot_dimension_numbers<[1], [0], [0], [1], [0, 0, 1, 1], [], []>} : vector<8x32xbf16>, vector<32x64xbf16>, vector<8x64xf32> -> vector<8x64xf32>
      %c0_77 = arith.constant 0 : index
      %c0_78 = arith.constant 0 : index
      %151 = vector.load %arg6[%c0_77, %c0_78] : memref<1x64xf32, #tpu.memory_space<vmem>>, vector<1x64xf32>
      %152 = vector.broadcast %151 : vector<1x64xf32> to vector<8x64xf32>
      %153 = arith.addf %150, %152 : vector<8x64xf32>
      %154 = vector.extract_strided_slice %153 {offsets = [0, 0], sizes = [8, 8], strides = [1, 1]} : vector<8x64xf32> to vector<8x8xf32>
      %155 = arith.truncf %154 : vector<8x8xf32> to vector<8x8xbf16>
      %c0_79 = arith.constant 0 : index
      %c0_80 = arith.constant 0 : index
      %c0_81 = arith.constant 0 : index
      %156 = vector.load %arg12[%c0_79, %c0_80, %c0_81] : memref<4x8x8xbf16, #tpu.memory_space<vmem>>, vector<1x8x8xbf16>
      %157 = vector.shape_cast %156 : vector<1x8x8xbf16> to vector<8x8xbf16>
      %158 = vector.shape_cast %155 : vector<8x8xbf16> to vector<1x8x8xbf16>
      tpu.vector_store %arg12[%c0_79, %c0_80, %c0_81], %158 {strides = array<i32>} : memref<4x8x8xbf16, #tpu.memory_space<vmem>>, vector<1x8x8xbf16>,
      %159 = vector.extract_strided_slice %153 {offsets = [0, 32], sizes = [8, 8], strides = [1, 1]} : vector<8x64xf32> to vector<8x8xf32>
      %160 = arith.truncf %159 : vector<8x8xf32> to vector<8x8xbf16>
      %c0_82 = arith.constant 0 : index
      %c0_83 = arith.constant 0 : index
      %c0_84 = arith.constant 0 : index
      %161 = vector.load %arg13[%c0_82, %c0_83, %c0_84] : memref<4x8x8xbf16, #tpu.memory_space<vmem>>, vector<1x8x8xbf16>
      %162 = vector.shape_cast %161 : vector<1x8x8xbf16> to vector<8x8xbf16>
      %163 = vector.shape_cast %160 : vector<8x8xbf16> to vector<1x8x8xbf16>
      tpu.vector_store %arg13[%c0_82, %c0_83, %c0_84], %163 {strides = array<i32>} : memref<4x8x8xbf16, #tpu.memory_space<vmem>>, vector<1x8x8xbf16>,
      %164 = vector.extract_strided_slice %153 {offsets = [0, 8], sizes = [8, 8], strides = [1, 1]} : vector<8x64xf32> to vector<8x8xf32>
      %165 = arith.truncf %164 : vector<8x8xf32> to vector<8x8xbf16>
      %c1_85 = arith.constant 1 : index
      %c0_86 = arith.constant 0 : index
      %c0_87 = arith.constant 0 : index
      %166 = vector.load %arg12[%c1_85, %c0_86, %c0_87] : memref<4x8x8xbf16, #tpu.memory_space<vmem>>, vector<1x8x8xbf16>
      %167 = vector.shape_cast %166 : vector<1x8x8xbf16> to vector<8x8xbf16>
      %168 = vector.shape_cast %165 : vector<8x8xbf16> to vector<1x8x8xbf16>
      tpu.vector_store %arg12[%c1_85, %c0_86, %c0_87], %168 {strides = array<i32>} : memref<4x8x8xbf16, #tpu.memory_space<vmem>>, vector<1x8x8xbf16>,
      %169 = vector.extract_strided_slice %153 {offsets = [0, 40], sizes = [8, 8], strides = [1, 1]} : vector<8x64xf32> to vector<8x8xf32>
      %170 = arith.truncf %169 : vector<8x8xf32> to vector<8x8xbf16>
      %c1_88 = arith.constant 1 : index
      %c0_89 = arith.constant 0 : index
      %c0_90 = arith.constant 0 : index
      %171 = vector.load %arg13[%c1_88, %c0_89, %c0_90] : memref<4x8x8xbf16, #tpu.memory_space<vmem>>, vector<1x8x8xbf16>
      %172 = vector.shape_cast %171 : vector<1x8x8xbf16> to vector<8x8xbf16>
      %173 = vector.shape_cast %170 : vector<8x8xbf16> to vector<1x8x8xbf16>
      tpu.vector_store %arg13[%c1_88, %c0_89, %c0_90], %173 {strides = array<i32>} : memref<4x8x8xbf16, #tpu.memory_space<vmem>>, vector<1x8x8xbf16>,
      %174 = vector.extract_strided_slice %153 {offsets = [0, 16], sizes = [8, 8], strides = [1, 1]} : vector<8x64xf32> to vector<8x8xf32>
      %175 = arith.truncf %174 : vector<8x8xf32> to vector<8x8xbf16>
      %c2_91 = arith.constant 2 : index
      %c0_92 = arith.constant 0 : index
      %c0_93 = arith.constant 0 : index
      %176 = vector.load %arg12[%c2_91, %c0_92, %c0_93] : memref<4x8x8xbf16, #tpu.memory_space<vmem>>, vector<1x8x8xbf16>
      %177 = vector.shape_cast %176 : vector<1x8x8xbf16> to vector<8x8xbf16>
      %178 = vector.shape_cast %175 : vector<8x8xbf16> to vector<1x8x8xbf16>
      tpu.vector_store %arg12[%c2_91, %c0_92, %c0_93], %178 {strides = array<i32>} : memref<4x8x8xbf16, #tpu.memory_space<vmem>>, vector<1x8x8xbf16>,
      %179 = vector.extract_strided_slice %153 {offsets = [0, 48], sizes = [8, 8], strides = [1, 1]} : vector<8x64xf32> to vector<8x8xf32>
      %180 = arith.truncf %179 : vector<8x8xf32> to vector<8x8xbf16>
      %c2_94 = arith.constant 2 : index
      %c0_95 = arith.constant 0 : index
      %c0_96 = arith.constant 0 : index
      %181 = vector.load %arg13[%c2_94, %c0_95, %c0_96] : memref<4x8x8xbf16, #tpu.memory_space<vmem>>, vector<1x8x8xbf16>
      %182 = vector.shape_cast %181 : vector<1x8x8xbf16> to vector<8x8xbf16>
      %183 = vector.shape_cast %180 : vector<8x8xbf16> to vector<1x8x8xbf16>
      tpu.vector_store %arg13[%c2_94, %c0_95, %c0_96], %183 {strides = array<i32>} : memref<4x8x8xbf16, #tpu.memory_space<vmem>>, vector<1x8x8xbf16>,
      %184 = vector.extract_strided_slice %153 {offsets = [0, 24], sizes = [8, 8], strides = [1, 1]} : vector<8x64xf32> to vector<8x8xf32>
      %185 = arith.truncf %184 : vector<8x8xf32> to vector<8x8xbf16>
      %c3_97 = arith.constant 3 : index
      %c0_98 = arith.constant 0 : index
      %c0_99 = arith.constant 0 : index
      %186 = vector.load %arg12[%c3_97, %c0_98, %c0_99] : memref<4x8x8xbf16, #tpu.memory_space<vmem>>, vector<1x8x8xbf16>
      %187 = vector.shape_cast %186 : vector<1x8x8xbf16> to vector<8x8xbf16>
      %188 = vector.shape_cast %185 : vector<8x8xbf16> to vector<1x8x8xbf16>
      tpu.vector_store %arg12[%c3_97, %c0_98, %c0_99], %188 {strides = array<i32>} : memref<4x8x8xbf16, #tpu.memory_space<vmem>>, vector<1x8x8xbf16>,
      %189 = vector.extract_strided_slice %153 {offsets = [0, 56], sizes = [8, 8], strides = [1, 1]} : vector<8x64xf32> to vector<8x8xf32>
      %190 = arith.truncf %189 : vector<8x8xf32> to vector<8x8xbf16>
      %c3_100 = arith.constant 3 : index
      %c0_101 = arith.constant 0 : index
      %c0_102 = arith.constant 0 : index
      %191 = vector.load %arg13[%c3_100, %c0_101, %c0_102] : memref<4x8x8xbf16, #tpu.memory_space<vmem>>, vector<1x8x8xbf16>
      %192 = vector.shape_cast %191 : vector<1x8x8xbf16> to vector<8x8xbf16>
      %193 = vector.shape_cast %190 : vector<8x8xbf16> to vector<1x8x8xbf16>
      tpu.vector_store %arg13[%c3_100, %c0_101, %c0_102], %193 {strides = array<i32>} : memref<4x8x8xbf16, #tpu.memory_space<vmem>>, vector<1x8x8xbf16>,
    } else {
    }
    %c8_i32 = arith.constant 8 : i32
    %3 = arith.muli %arg1, %c8_i32 : i32
    %4 = tpu.assume_multiple %3, 8 : i32
    %c0 = arith.constant 0 : index
    %5 = arith.index_cast %4 : i32 to index
    %c0_1 = arith.constant 0 : index
    %6 = vector.load %arg2[%c0, %5, %c0_1] : memref<1x8x32xf32, #tpu.memory_space<vmem>>, vector<1x8x32xf32>
    %7 = vector.shape_cast %6 : vector<1x8x32xf32> to vector<8x32xf32>
    %8 = arith.truncf %7 : vector<8x32xf32> to vector<8x32xbf16>
    %c0_2 = arith.constant 0 : index
    %c0_3 = arith.constant 0 : index
    %9 = vector.load %arg3[%c0_2, %c0_3] : memref<32x32xbf16, #tpu.memory_space<vmem>>, vector<32x32xbf16>
    %cst = arith.constant dense<0.000000e+00> : vector<8x32xf32>
    %10 = tpu.matmul %8, %9, %cst {dimension_numbers = #tpu.dot_dimension_numbers<[1], [0], [0], [1], [0, 0, 1, 1], [], []>} : vector<8x32xbf16>, vector<32x32xbf16>, vector<8x32xf32> -> vector<8x32xf32>
    %c0_4 = arith.constant 0 : index
    %c0_5 = arith.constant 0 : index
    %11 = vector.load %arg4[%c0_4, %c0_5] : memref<1x32xf32, #tpu.memory_space<vmem>>, vector<1x32xf32>
    %12 = vector.broadcast %11 : vector<1x32xf32> to vector<8x32xf32>
    %13 = arith.addf %10, %12 : vector<8x32xf32>
    %cst_6 = arith.constant 0.000000e+00 : f32
    %14 = vector.broadcast %cst_6 : f32 to vector<8x32xf32>
    %15 = vector.extract_strided_slice %13 {offsets = [0, 0], sizes = [8, 8], strides = [1, 1]} : vector<8x32xf32> to vector<8x8xf32>
    %cst_7 = arith.constant 0.353553385 : f32
    %16 = vector.broadcast %cst_7 : f32 to vector<8x8xf32>
    %17 = arith.mulf %15, %16 : vector<8x8xf32>
    %18 = arith.truncf %17 : vector<8x8xf32> to vector<8x8xbf16>
    %c0_8 = arith.constant 0 : index
    %c0_9 = arith.constant 0 : index
    %c0_10 = arith.constant 0 : index
    %19 = vector.load %arg12[%c0_8, %c0_9, %c0_10] : memref<4x8x8xbf16, #tpu.memory_space<vmem>>, vector<1x8x8xbf16>
    %20 = vector.shape_cast %19 : vector<1x8x8xbf16> to vector<8x8xbf16>
    %c0_11 = arith.constant 0 : index
    %c0_12 = arith.constant 0 : index
    %c0_13 = arith.constant 0 : index
    %21 = vector.load %arg13[%c0_11, %c0_12, %c0_13] : memref<4x8x8xbf16, #tpu.memory_space<vmem>>, vector<1x8x8xbf16>
    %22 = vector.shape_cast %21 : vector<1x8x8xbf16> to vector<8x8xbf16>
    %cst_14 = arith.constant dense<0.000000e+00> : vector<8x8xf32>
    %23 = tpu.matmul %18, %20, %cst_14 {dimension_numbers = #tpu.dot_dimension_numbers<[1], [1], [0], [0], [0, 0, 1, 0], [], []>} : vector<8x8xbf16>, vector<8x8xbf16>, vector<8x8xf32> -> vector<8x8xf32>
    %cst_15 = arith.constant dense<0xFF800000> : vector<8xf32>
    %24 = vector.multi_reduction <maximumf>, %23, %cst_15 [1] : vector<8x8xf32> to vector<8xf32>
    %25 = vector.shape_cast %24 : vector<8xf32> to vector<8x1xf32>
    %26 = vector.broadcast %25 : vector<8x1xf32> to vector<8x8xf32>
    %27 = arith.subf %23, %26 : vector<8x8xf32>
    %28 = math.exp %27 : vector<8x8xf32>
    %cst_16 = arith.constant dense<0.000000e+00> : vector<8xf32>
    %29 = vector.multi_reduction <add>, %28, %cst_16 [1] : vector<8x8xf32> to vector<8xf32>
    %30 = vector.shape_cast %29 : vector<8xf32> to vector<8x1xf32>
    %31 = arith.truncf %28 : vector<8x8xf32> to vector<8x8xbf16>
    %cst_17 = arith.constant dense<0.000000e+00> : vector<8x8xf32>
    %32 = tpu.matmul %31, %22, %cst_17 {dimension_numbers = #tpu.dot_dimension_numbers<[1], [0], [0], [1], [0, 0, 1, 1], [], []>} : vector<8x8xbf16>, vector<8x8xbf16>, vector<8x8xf32> -> vector<8x8xf32>
    %33 = tpu.reciprocal %30 {approx = true} : vector<8x1xf32> -> vector<8x1xf32>
    %34 = vector.broadcast %33 : vector<8x1xf32> to vector<8x8xf32>
    %35 = arith.mulf %32, %34 : vector<8x8xf32>
    %36 = arith.truncf %35 : vector<8x8xf32> to vector<8x8xbf16>
    %c0_18 = arith.constant 0 : index
    %c0_19 = arith.constant 0 : index
    %37 = vector.load %arg7[%c0_18, %c0_19] : memref<32x32xbf16, #tpu.memory_space<vmem>>, vector<8x32xbf16>
    %cst_20 = arith.constant dense<0.000000e+00> : vector<8x32xf32>
    %38 = tpu.matmul %36, %37, %cst_20 {dimension_numbers = #tpu.dot_dimension_numbers<[1], [0], [0], [1], [0, 0, 1, 1], [], []>} : vector<8x8xbf16>, vector<8x32xbf16>, vector<8x32xf32> -> vector<8x32xf32>
    %39 = arith.addf %14, %38 : vector<8x32xf32>
    %40 = vector.extract_strided_slice %13 {offsets = [0, 8], sizes = [8, 8], strides = [1, 1]} : vector<8x32xf32> to vector<8x8xf32>
    %cst_21 = arith.constant 0.353553385 : f32
    %41 = vector.broadcast %cst_21 : f32 to vector<8x8xf32>
    %42 = arith.mulf %40, %41 : vector<8x8xf32>
    %43 = arith.truncf %42 : vector<8x8xf32> to vector<8x8xbf16>
    %c1 = arith.constant 1 : index
    %c0_22 = arith.constant 0 : index
    %c0_23 = arith.constant 0 : index
    %44 = vector.load %arg12[%c1, %c0_22, %c0_23] : memref<4x8x8xbf16, #tpu.memory_space<vmem>>, vector<1x8x8xbf16>
    %45 = vector.shape_cast %44 : vector<1x8x8xbf16> to vector<8x8xbf16>
    %c1_24 = arith.constant 1 : index
    %c0_25 = arith.constant 0 : index
    %c0_26 = arith.constant 0 : index
    %46 = vector.load %arg13[%c1_24, %c0_25, %c0_26] : memref<4x8x8xbf16, #tpu.memory_space<vmem>>, vector<1x8x8xbf16>
    %47 = vector.shape_cast %46 : vector<1x8x8xbf16> to vector<8x8xbf16>
    %cst_27 = arith.constant dense<0.000000e+00> : vector<8x8xf32>
    %48 = tpu.matmul %43, %45, %cst_27 {dimension_numbers = #tpu.dot_dimension_numbers<[1], [1], [0], [0], [0, 0, 1, 0], [], []>} : vector<8x8xbf16>, vector<8x8xbf16>, vector<8x8xf32> -> vector<8x8xf32>
    %cst_28 = arith.constant dense<0xFF800000> : vector<8xf32>
    %49 = vector.multi_reduction <maximumf>, %48, %cst_28 [1] : vector<8x8xf32> to vector<8xf32>
    %50 = vector.shape_cast %49 : vector<8xf32> to vector<8x1xf32>
    %51 = vector.broadcast %50 : vector<8x1xf32> to vector<8x8xf32>
    %52 = arith.subf %48, %51 : vector<8x8xf32>
    %53 = math.exp %52 : vector<8x8xf32>
    %cst_29 = arith.constant dense<0.000000e+00> : vector<8xf32>
    %54 = vector.multi_reduction <add>, %53, %cst_29 [1] : vector<8x8xf32> to vector<8xf32>
    %55 = vector.shape_cast %54 : vector<8xf32> to vector<8x1xf32>
    %56 = arith.truncf %53 : vector<8x8xf32> to vector<8x8xbf16>
    %cst_30 = arith.constant dense<0.000000e+00> : vector<8x8xf32>
    %57 = tpu.matmul %56, %47, %cst_30 {dimension_numbers = #tpu.dot_dimension_numbers<[1], [0], [0], [1], [0, 0, 1, 1], [], []>} : vector<8x8xbf16>, vector<8x8xbf16>, vector<8x8xf32> -> vector<8x8xf32>
    %58 = tpu.reciprocal %55 {approx = true} : vector<8x1xf32> -> vector<8x1xf32>
    %59 = vector.broadcast %58 : vector<8x1xf32> to vector<8x8xf32>
    %60 = arith.mulf %57, %59 : vector<8x8xf32>
    %61 = arith.truncf %60 : vector<8x8xf32> to vector<8x8xbf16>
    %c8 = arith.constant 8 : index
    %c0_31 = arith.constant 0 : index
    %62 = vector.load %arg7[%c8, %c0_31] : memref<32x32xbf16, #tpu.memory_space<vmem>>, vector<8x32xbf16>
    %cst_32 = arith.constant dense<0.000000e+00> : vector<8x32xf32>
    %63 = tpu.matmul %61, %62, %cst_32 {dimension_numbers = #tpu.dot_dimension_numbers<[1], [0], [0], [1], [0, 0, 1, 1], [], []>} : vector<8x8xbf16>, vector<8x32xbf16>, vector<8x32xf32> -> vector<8x32xf32>
    %64 = arith.addf %39, %63 : vector<8x32xf32>
    %65 = vector.extract_strided_slice %13 {offsets = [0, 16], sizes = [8, 8], strides = [1, 1]} : vector<8x32xf32> to vector<8x8xf32>
    %cst_33 = arith.constant 0.353553385 : f32
    %66 = vector.broadcast %cst_33 : f32 to vector<8x8xf32>
    %67 = arith.mulf %65, %66 : vector<8x8xf32>
    %68 = arith.truncf %67 : vector<8x8xf32> to vector<8x8xbf16>
    %c2 = arith.constant 2 : index
    %c0_34 = arith.constant 0 : index
    %c0_35 = arith.constant 0 : index
    %69 = vector.load %arg12[%c2, %c0_34, %c0_35] : memref<4x8x8xbf16, #tpu.memory_space<vmem>>, vector<1x8x8xbf16>
    %70 = vector.shape_cast %69 : vector<1x8x8xbf16> to vector<8x8xbf16>
    %c2_36 = arith.constant 2 : index
    %c0_37 = arith.constant 0 : index
    %c0_38 = arith.constant 0 : index
    %71 = vector.load %arg13[%c2_36, %c0_37, %c0_38] : memref<4x8x8xbf16, #tpu.memory_space<vmem>>, vector<1x8x8xbf16>
    %72 = vector.shape_cast %71 : vector<1x8x8xbf16> to vector<8x8xbf16>
    %cst_39 = arith.constant dense<0.000000e+00> : vector<8x8xf32>
    %73 = tpu.matmul %68, %70, %cst_39 {dimension_numbers = #tpu.dot_dimension_numbers<[1], [1], [0], [0], [0, 0, 1, 0], [], []>} : vector<8x8xbf16>, vector<8x8xbf16>, vector<8x8xf32> -> vector<8x8xf32>
    %cst_40 = arith.constant dense<0xFF800000> : vector<8xf32>
    %74 = vector.multi_reduction <maximumf>, %73, %cst_40 [1] : vector<8x8xf32> to vector<8xf32>
    %75 = vector.shape_cast %74 : vector<8xf32> to vector<8x1xf32>
    %76 = vector.broadcast %75 : vector<8x1xf32> to vector<8x8xf32>
    %77 = arith.subf %73, %76 : vector<8x8xf32>
    %78 = math.exp %77 : vector<8x8xf32>
    %cst_41 = arith.constant dense<0.000000e+00> : vector<8xf32>
    %79 = vector.multi_reduction <add>, %78, %cst_41 [1] : vector<8x8xf32> to vector<8xf32>
    %80 = vector.shape_cast %79 : vector<8xf32> to vector<8x1xf32>
    %81 = arith.truncf %78 : vector<8x8xf32> to vector<8x8xbf16>
    %cst_42 = arith.constant dense<0.000000e+00> : vector<8x8xf32>
    %82 = tpu.matmul %81, %72, %cst_42 {dimension_numbers = #tpu.dot_dimension_numbers<[1], [0], [0], [1], [0, 0, 1, 1], [], []>} : vector<8x8xbf16>, vector<8x8xbf16>, vector<8x8xf32> -> vector<8x8xf32>
    %83 = tpu.reciprocal %80 {approx = true} : vector<8x1xf32> -> vector<8x1xf32>
    %84 = vector.broadcast %83 : vector<8x1xf32> to vector<8x8xf32>
    %85 = arith.mulf %82, %84 : vector<8x8xf32>
    %86 = arith.truncf %85 : vector<8x8xf32> to vector<8x8xbf16>
    %c16 = arith.constant 16 : index
    %c0_43 = arith.constant 0 : index
    %87 = vector.load %arg7[%c16, %c0_43] : memref<32x32xbf16, #tpu.memory_space<vmem>>, vector<8x32xbf16>
    %cst_44 = arith.constant dense<0.000000e+00> : vector<8x32xf32>
    %88 = tpu.matmul %86, %87, %cst_44 {dimension_numbers = #tpu.dot_dimension_numbers<[1], [0], [0], [1], [0, 0, 1, 1], [], []>} : vector<8x8xbf16>, vector<8x32xbf16>, vector<8x32xf32> -> vector<8x32xf32>
    %89 = arith.addf %64, %88 : vector<8x32xf32>
    %90 = vector.extract_strided_slice %13 {offsets = [0, 24], sizes = [8, 8], strides = [1, 1]} : vector<8x32xf32> to vector<8x8xf32>
    %cst_45 = arith.constant 0.353553385 : f32
    %91 = vector.broadcast %cst_45 : f32 to vector<8x8xf32>
    %92 = arith.mulf %90, %91 : vector<8x8xf32>
    %93 = arith.truncf %92 : vector<8x8xf32> to vector<8x8xbf16>
    %c3 = arith.constant 3 : index
    %c0_46 = arith.constant 0 : index
    %c0_47 = arith.constant 0 : index
    %94 = vector.load %arg12[%c3, %c0_46, %c0_47] : memref<4x8x8xbf16, #tpu.memory_space<vmem>>, vector<1x8x8xbf16>
    %95 = vector.shape_cast %94 : vector<1x8x8xbf16> to vector<8x8xbf16>
    %c3_48 = arith.constant 3 : index
    %c0_49 = arith.constant 0 : index
    %c0_50 = arith.constant 0 : index
    %96 = vector.load %arg13[%c3_48, %c0_49, %c0_50] : memref<4x8x8xbf16, #tpu.memory_space<vmem>>, vector<1x8x8xbf16>
    %97 = vector.shape_cast %96 : vector<1x8x8xbf16> to vector<8x8xbf16>
    %cst_51 = arith.constant dense<0.000000e+00> : vector<8x8xf32>
    %98 = tpu.matmul %93, %95, %cst_51 {dimension_numbers = #tpu.dot_dimension_numbers<[1], [1], [0], [0], [0, 0, 1, 0], [], []>} : vector<8x8xbf16>, vector<8x8xbf16>, vector<8x8xf32> -> vector<8x8xf32>
    %cst_52 = arith.constant dense<0xFF800000> : vector<8xf32>
    %99 = vector.multi_reduction <maximumf>, %98, %cst_52 [1] : vector<8x8xf32> to vector<8xf32>
    %100 = vector.shape_cast %99 : vector<8xf32> to vector<8x1xf32>
    %101 = vector.broadcast %100 : vector<8x1xf32> to vector<8x8xf32>
    %102 = arith.subf %98, %101 : vector<8x8xf32>
    %103 = math.exp %102 : vector<8x8xf32>
    %cst_53 = arith.constant dense<0.000000e+00> : vector<8xf32>
    %104 = vector.multi_reduction <add>, %103, %cst_53 [1] : vector<8x8xf32> to vector<8xf32>
    %105 = vector.shape_cast %104 : vector<8xf32> to vector<8x1xf32>
    %106 = arith.truncf %103 : vector<8x8xf32> to vector<8x8xbf16>
    %cst_54 = arith.constant dense<0.000000e+00> : vector<8x8xf32>
    %107 = tpu.matmul %106, %97, %cst_54 {dimension_numbers = #tpu.dot_dimension_numbers<[1], [0], [0], [1], [0, 0, 1, 1], [], []>} : vector<8x8xbf16>, vector<8x8xbf16>, vector<8x8xf32> -> vector<8x8xf32>
    %108 = tpu.reciprocal %105 {approx = true} : vector<8x1xf32> -> vector<8x1xf32>
    %109 = vector.broadcast %108 : vector<8x1xf32> to vector<8x8xf32>
    %110 = arith.mulf %107, %109 : vector<8x8xf32>
    %111 = arith.truncf %110 : vector<8x8xf32> to vector<8x8xbf16>
    %c24 = arith.constant 24 : index
    %c0_55 = arith.constant 0 : index
    %112 = vector.load %arg7[%c24, %c0_55] : memref<32x32xbf16, #tpu.memory_space<vmem>>, vector<8x32xbf16>
    %cst_56 = arith.constant dense<0.000000e+00> : vector<8x32xf32>
    %113 = tpu.matmul %111, %112, %cst_56 {dimension_numbers = #tpu.dot_dimension_numbers<[1], [0], [0], [1], [0, 0, 1, 1], [], []>} : vector<8x8xbf16>, vector<8x32xbf16>, vector<8x32xf32> -> vector<8x32xf32>
    %114 = arith.addf %89, %113 : vector<8x32xf32>
    %115 = arith.addf %7, %114 : vector<8x32xf32>
    %c0_57 = arith.constant 0 : index
    %c0_58 = arith.constant 0 : index
    %116 = vector.load %arg8[%c0_57, %c0_58] : memref<1x32xf32, #tpu.memory_space<vmem>>, vector<1x32xf32>
    %117 = vector.broadcast %116 : vector<1x32xf32> to vector<8x32xf32>
    %118 = arith.addf %115, %117 : vector<8x32xf32>
    %c0_59 = arith.constant 0 : index
    %c0_60 = arith.constant 0 : index
    %119 = vector.load %arg9[%c0_59, %c0_60] : memref<1x32xf32, #tpu.memory_space<vmem>>, vector<1x32xf32>
    %c0_61 = arith.constant 0 : index
    %c0_62 = arith.constant 0 : index
    %120 = vector.load %arg10[%c0_61, %c0_62] : memref<1x32xf32, #tpu.memory_space<vmem>>, vector<1x32xf32>
    %cst_63 = arith.constant dense<0.000000e+00> : vector<8xf32>
    %121 = vector.multi_reduction <add>, %118, %cst_63 [1] : vector<8x32xf32> to vector<8xf32>
    %122 = vector.shape_cast %121 : vector<8xf32> to vector<8x1xf32>
    %cst_64 = arith.constant 3.200000e+01 : f32
    %123 = vector.broadcast %cst_64 : f32 to vector<8x1xf32>
    %124 = arith.divf %122, %123 : vector<8x1xf32>
    %125 = vector.broadcast %124 : vector<8x1xf32> to vector<8x32xf32>
    %126 = arith.subf %118, %125 : vector<8x32xf32>
    %127 = arith.mulf %126, %126 : vector<8x32xf32>
    %cst_65 = arith.constant dense<0.000000e+00> : vector<8xf32>
    %128 = vector.multi_reduction <add>, %127, %cst_65 [1] : vector<8x32xf32> to vector<8xf32>
    %129 = vector.shape_cast %128 : vector<8xf32> to vector<8x1xf32>
    %cst_66 = arith.constant 3.200000e+01 : f32
    %130 = vector.broadcast %cst_66 : f32 to vector<8x1xf32>
    %131 = arith.divf %129, %130 : vector<8x1xf32>
    %132 = vector.broadcast %124 : vector<8x1xf32> to vector<8x32xf32>
    %133 = arith.subf %118, %132 : vector<8x32xf32>
    %cst_67 = arith.constant 9.99999974E-6 : f32
    %134 = vector.broadcast %cst_67 : f32 to vector<8x1xf32>
    %135 = arith.addf %131, %134 : vector<8x1xf32>
    %136 = math.rsqrt %135 : vector<8x1xf32>
    %137 = vector.broadcast %136 : vector<8x1xf32> to vector<8x32xf32>
    %138 = arith.mulf %133, %137 : vector<8x32xf32>
    %139 = vector.broadcast %119 : vector<1x32xf32> to vector<8x32xf32>
    %140 = arith.mulf %138, %139 : vector<8x32xf32>
    %141 = vector.broadcast %120 : vector<1x32xf32> to vector<8x32xf32>
    %142 = arith.addf %140, %141 : vector<8x32xf32>
    %c0_68 = arith.constant 0 : index
    %c0_69 = arith.constant 0 : index
    %c0_70 = arith.constant 0 : index
    %143 = vector.load %arg11[%c0_68, %c0_69, %c0_70] : memref<1x8x32xf32, #tpu.memory_space<vmem>>, vector<1x8x32xf32>
    %144 = vector.shape_cast %143 : vector<1x8x32xf32> to vector<8x32xf32>
    %145 = vector.shape_cast %142 : vector<8x32xf32> to vector<1x8x32xf32>
    tpu.vector_store %arg11[%c0_68, %c0_69, %c0_70], %145 {strides = array<i32>} : memref<1x8x32xf32, #tpu.memory_space<vmem>>, vector<1x8x32xf32>,
    return
  }
  func.func @transform_0(%arg0: i32, %arg1: i32) -> (i32, i32, i32) {
    %c0_i32 = arith.constant 0 : i32
    %c0_i32_0 = arith.constant 0 : i32
    %c0_i32_1 = arith.constant 0 : i32
    return %arg0, %c0_i32, %c0_i32_0 : i32, i32, i32
  }
  func.func @transform_1(%arg0: i32, %arg1: i32) -> (i32, i32) {
    %c0_i32 = arith.constant 0 : i32
    %c0_i32_0 = arith.constant 0 : i32
    %c0_i32_1 = arith.constant 0 : i32
    return %c0_i32, %c0_i32_0 : i32, i32
  }
  func.func @transform_2(%arg0: i32, %arg1: i32) -> (i32, i32) {
    %c0_i32 = arith.constant 0 : i32
    %c0_i32_0 = arith.constant 0 : i32
    %c0_i32_1 = arith.constant 0 : i32
    return %c0_i32, %c0_i32_0 : i32, i32
  }
  func.func @transform_3(%arg0: i32, %arg1: i32) -> (i32, i32) {
    %c0_i32 = arith.constant 0 : i32
    %c0_i32_0 = arith.constant 0 : i32
    %c0_i32_1 = arith.constant 0 : i32
    return %c0_i32, %c0_i32_0 : i32, i32
  }
  func.func @transform_4(%arg0: i32, %arg1: i32) -> (i32, i32) {
    %c0_i32 = arith.constant 0 : i32
    %c0_i32_0 = arith.constant 0 : i32
    %c0_i32_1 = arith.constant 0 : i32
    return %c0_i32, %c0_i32_0 : i32, i32
  }
  func.func @transform_5(%arg0: i32, %arg1: i32) -> (i32, i32) {
    %c0_i32 = arith.constant 0 : i32
    %c0_i32_0 = arith.constant 0 : i32
    %c0_i32_1 = arith.constant 0 : i32
    return %c0_i32, %c0_i32_0 : i32, i32
  }
  func.func @transform_6(%arg0: i32, %arg1: i32) -> (i32, i32) {
    %c0_i32 = arith.constant 0 : i32
    %c0_i32_0 = arith.constant 0 : i32
    %c0_i32_1 = arith.constant 0 : i32
    return %c0_i32, %c0_i32_0 : i32, i32
  }
  func.func @transform_7(%arg0: i32, %arg1: i32) -> (i32, i32) {
    %c0_i32 = arith.constant 0 : i32
    %c0_i32_0 = arith.constant 0 : i32
    %c0_i32_1 = arith.constant 0 : i32
    return %c0_i32, %c0_i32_0 : i32, i32
  }
  func.func @transform_8(%arg0: i32, %arg1: i32) -> (i32, i32) {
    %c0_i32 = arith.constant 0 : i32
    %c0_i32_0 = arith.constant 0 : i32
    %c0_i32_1 = arith.constant 0 : i32
    return %c0_i32, %c0_i32_0 : i32, i32
  }
  func.func @transform_9(%arg0: i32, %arg1: i32) -> (i32, i32, i32) {
    %c0_i32 = arith.constant 0 : i32
    %c0_i32_0 = arith.constant 0 : i32
    return %arg0, %arg1, %c0_i32 : i32, i32, i32
  }
}

module attributes {stable_mosaic.version = 11 : i64} {
  func.func @_cross_attn_block_kernel(%arg0: i32, %arg1: i32, %arg2: memref<1x8x32xf32, #tpu.memory_space<vmem>>, %arg3: memref<1x8x32xf32, #tpu.memory_space<vmem>>, %arg4: memref<32x32xbf16, #tpu.memory_space<vmem>>, %arg5: memref<1x32xf32, #tpu.memory_space<vmem>>, %arg6: memref<32x64xbf16, #tpu.memory_space<vmem>>, %arg7: memref<1x64xf32, #tpu.memory_space<vmem>>, %arg8: memref<32x32xbf16, #tpu.memory_space<vmem>>, %arg9: memref<1x32xf32, #tpu.memory_space<vmem>>, %arg10: memref<1x32xf32, #tpu.memory_space<vmem>>, %arg11: memref<1x32xf32, #tpu.memory_space<vmem>>, %arg12: memref<1x8x32xf32, #tpu.memory_space<vmem>>, %arg13: memref<4x8x8xbf16, #tpu.memory_space<vmem>>, %arg14: memref<4x8x8xbf16, #tpu.memory_space<vmem>>) attributes {dimension_semantics = [#tpu.dimension_semantics<parallel>, #tpu.dimension_semantics<arbitrary>], iteration_bounds = array<i64: 2, 1>, scalar_prefetch = 0 : i64, scratch_operands = 2 : i64, tpu.core_type = #tpu.core_type<tc>, window_params = [{transform_indices = @transform_0, window_bounds = array<i64: 1, 8, 32>}, {transform_indices = @transform_1, window_bounds = array<i64: 1, 8, 32>}, {pipeline_mode = #tpu.pipeline_mode<synchronous>, transform_indices = @transform_2, window_bounds = array<i64: 32, 32>}, {pipeline_mode = #tpu.pipeline_mode<synchronous>, transform_indices = @transform_3, window_bounds = array<i64: 1, 32>}, {pipeline_mode = #tpu.pipeline_mode<synchronous>, transform_indices = @transform_4, window_bounds = array<i64: 32, 64>}, {pipeline_mode = #tpu.pipeline_mode<synchronous>, transform_indices = @transform_5, window_bounds = array<i64: 1, 64>}, {pipeline_mode = #tpu.pipeline_mode<synchronous>, transform_indices = @transform_6, window_bounds = array<i64: 32, 32>}, {pipeline_mode = #tpu.pipeline_mode<synchronous>, transform_indices = @transform_7, window_bounds = array<i64: 1, 32>}, {pipeline_mode = #tpu.pipeline_mode<synchronous>, transform_indices = @transform_8, window_bounds = array<i64: 1, 32>}, {pipeline_mode = #tpu.pipeline_mode<synchronous>, transform_indices = @transform_9, window_bounds = array<i64: 1, 32>}, {transform_indices = @transform_10, window_bounds = array<i64: 1, 8, 32>}]} {
    %c0_i32 = arith.constant 0 : i32
    %0 = arith.cmpi eq, %arg1, %c0_i32 : i32
    %1 = arith.extui %0 : i1 to i32
    %c0_i32_0 = arith.constant 0 : i32
    %2 = arith.cmpi ne, %1, %c0_i32_0 : i32
    scf.if %2 {
      %c0_72 = arith.constant 0 : index
      %c0_73 = arith.constant 0 : index
      %c0_74 = arith.constant 0 : index
      %143 = vector.load %arg3[%c0_72, %c0_73, %c0_74] : memref<1x8x32xf32, #tpu.memory_space<vmem>>, vector<1x8x32xf32>
      %144 = vector.shape_cast %143 : vector<1x8x32xf32> to vector<8x32xf32>
      %145 = arith.truncf %144 : vector<8x32xf32> to vector<8x32xbf16>
      %c0_75 = arith.constant 0 : index
      %c0_76 = arith.constant 0 : index
      %146 = vector.load %arg6[%c0_75, %c0_76] : memref<32x64xbf16, #tpu.memory_space<vmem>>, vector<32x64xbf16>
      %cst_77 = arith.constant dense<0.000000e+00> : vector<8x64xf32>
      %147 = tpu.matmul %145, %146, %cst_77 {dimension_numbers = #tpu.dot_dimension_numbers<[1], [0], [0], [1], [0, 0, 1, 1], [], []>} : vector<8x32xbf16>, vector<32x64xbf16>, vector<8x64xf32> -> vector<8x64xf32>
      %c0_78 = arith.constant 0 : index
      %c0_79 = arith.constant 0 : index
      %148 = vector.load %arg7[%c0_78, %c0_79] : memref<1x64xf32, #tpu.memory_space<vmem>>, vector<1x64xf32>
      %149 = vector.broadcast %148 : vector<1x64xf32> to vector<8x64xf32>
      %150 = arith.addf %147, %149 : vector<8x64xf32>
      %151 = vector.extract_strided_slice %150 {offsets = [0, 0], sizes = [8, 8], strides = [1, 1]} : vector<8x64xf32> to vector<8x8xf32>
      %152 = arith.truncf %151 : vector<8x8xf32> to vector<8x8xbf16>
      %c0_80 = arith.constant 0 : index
      %c0_81 = arith.constant 0 : index
      %c0_82 = arith.constant 0 : index
      %153 = vector.load %arg13[%c0_80, %c0_81, %c0_82] : memref<4x8x8xbf16, #tpu.memory_space<vmem>>, vector<1x8x8xbf16>
      %154 = vector.shape_cast %153 : vector<1x8x8xbf16> to vector<8x8xbf16>
      %155 = vector.shape_cast %152 : vector<8x8xbf16> to vector<1x8x8xbf16>
      tpu.vector_store %arg13[%c0_80, %c0_81, %c0_82], %155 {strides = array<i32>} : memref<4x8x8xbf16, #tpu.memory_space<vmem>>, vector<1x8x8xbf16>,
      %156 = vector.extract_strided_slice %150 {offsets = [0, 32], sizes = [8, 8], strides = [1, 1]} : vector<8x64xf32> to vector<8x8xf32>
      %157 = arith.truncf %156 : vector<8x8xf32> to vector<8x8xbf16>
      %c0_83 = arith.constant 0 : index
      %c0_84 = arith.constant 0 : index
      %c0_85 = arith.constant 0 : index
      %158 = vector.load %arg14[%c0_83, %c0_84, %c0_85] : memref<4x8x8xbf16, #tpu.memory_space<vmem>>, vector<1x8x8xbf16>
      %159 = vector.shape_cast %158 : vector<1x8x8xbf16> to vector<8x8xbf16>
      %160 = vector.shape_cast %157 : vector<8x8xbf16> to vector<1x8x8xbf16>
      tpu.vector_store %arg14[%c0_83, %c0_84, %c0_85], %160 {strides = array<i32>} : memref<4x8x8xbf16, #tpu.memory_space<vmem>>, vector<1x8x8xbf16>,
      %161 = vector.extract_strided_slice %150 {offsets = [0, 8], sizes = [8, 8], strides = [1, 1]} : vector<8x64xf32> to vector<8x8xf32>
      %162 = arith.truncf %161 : vector<8x8xf32> to vector<8x8xbf16>
      %c1_86 = arith.constant 1 : index
      %c0_87 = arith.constant 0 : index
      %c0_88 = arith.constant 0 : index
      %163 = vector.load %arg13[%c1_86, %c0_87, %c0_88] : memref<4x8x8xbf16, #tpu.memory_space<vmem>>, vector<1x8x8xbf16>
      %164 = vector.shape_cast %163 : vector<1x8x8xbf16> to vector<8x8xbf16>
      %165 = vector.shape_cast %162 : vector<8x8xbf16> to vector<1x8x8xbf16>
      tpu.vector_store %arg13[%c1_86, %c0_87, %c0_88], %165 {strides = array<i32>} : memref<4x8x8xbf16, #tpu.memory_space<vmem>>, vector<1x8x8xbf16>,
      %166 = vector.extract_strided_slice %150 {offsets = [0, 40], sizes = [8, 8], strides = [1, 1]} : vector<8x64xf32> to vector<8x8xf32>
      %167 = arith.truncf %166 : vector<8x8xf32> to vector<8x8xbf16>
      %c1_89 = arith.constant 1 : index
      %c0_90 = arith.constant 0 : index
      %c0_91 = arith.constant 0 : index
      %168 = vector.load %arg14[%c1_89, %c0_90, %c0_91] : memref<4x8x8xbf16, #tpu.memory_space<vmem>>, vector<1x8x8xbf16>
      %169 = vector.shape_cast %168 : vector<1x8x8xbf16> to vector<8x8xbf16>
      %170 = vector.shape_cast %167 : vector<8x8xbf16> to vector<1x8x8xbf16>
      tpu.vector_store %arg14[%c1_89, %c0_90, %c0_91], %170 {strides = array<i32>} : memref<4x8x8xbf16, #tpu.memory_space<vmem>>, vector<1x8x8xbf16>,
      %171 = vector.extract_strided_slice %150 {offsets = [0, 16], sizes = [8, 8], strides = [1, 1]} : vector<8x64xf32> to vector<8x8xf32>
      %172 = arith.truncf %171 : vector<8x8xf32> to vector<8x8xbf16>
      %c2_92 = arith.constant 2 : index
      %c0_93 = arith.constant 0 : index
      %c0_94 = arith.constant 0 : index
      %173 = vector.load %arg13[%c2_92, %c0_93, %c0_94] : memref<4x8x8xbf16, #tpu.memory_space<vmem>>, vector<1x8x8xbf16>
      %174 = vector.shape_cast %173 : vector<1x8x8xbf16> to vector<8x8xbf16>
      %175 = vector.shape_cast %172 : vector<8x8xbf16> to vector<1x8x8xbf16>
      tpu.vector_store %arg13[%c2_92, %c0_93, %c0_94], %175 {strides = array<i32>} : memref<4x8x8xbf16, #tpu.memory_space<vmem>>, vector<1x8x8xbf16>,
      %176 = vector.extract_strided_slice %150 {offsets = [0, 48], sizes = [8, 8], strides = [1, 1]} : vector<8x64xf32> to vector<8x8xf32>
      %177 = arith.truncf %176 : vector<8x8xf32> to vector<8x8xbf16>
      %c2_95 = arith.constant 2 : index
      %c0_96 = arith.constant 0 : index
      %c0_97 = arith.constant 0 : index
      %178 = vector.load %arg14[%c2_95, %c0_96, %c0_97] : memref<4x8x8xbf16, #tpu.memory_space<vmem>>, vector<1x8x8xbf16>
      %179 = vector.shape_cast %178 : vector<1x8x8xbf16> to vector<8x8xbf16>
      %180 = vector.shape_cast %177 : vector<8x8xbf16> to vector<1x8x8xbf16>
      tpu.vector_store %arg14[%c2_95, %c0_96, %c0_97], %180 {strides = array<i32>} : memref<4x8x8xbf16, #tpu.memory_space<vmem>>, vector<1x8x8xbf16>,
      %181 = vector.extract_strided_slice %150 {offsets = [0, 24], sizes = [8, 8], strides = [1, 1]} : vector<8x64xf32> to vector<8x8xf32>
      %182 = arith.truncf %181 : vector<8x8xf32> to vector<8x8xbf16>
      %c3_98 = arith.constant 3 : index
      %c0_99 = arith.constant 0 : index
      %c0_100 = arith.constant 0 : index
      %183 = vector.load %arg13[%c3_98, %c0_99, %c0_100] : memref<4x8x8xbf16, #tpu.memory_space<vmem>>, vector<1x8x8xbf16>
      %184 = vector.shape_cast %183 : vector<1x8x8xbf16> to vector<8x8xbf16>
      %185 = vector.shape_cast %182 : vector<8x8xbf16> to vector<1x8x8xbf16>
      tpu.vector_store %arg13[%c3_98, %c0_99, %c0_100], %185 {strides = array<i32>} : memref<4x8x8xbf16, #tpu.memory_space<vmem>>, vector<1x8x8xbf16>,
      %186 = vector.extract_strided_slice %150 {offsets = [0, 56], sizes = [8, 8], strides = [1, 1]} : vector<8x64xf32> to vector<8x8xf32>
      %187 = arith.truncf %186 : vector<8x8xf32> to vector<8x8xbf16>
      %c3_101 = arith.constant 3 : index
      %c0_102 = arith.constant 0 : index
      %c0_103 = arith.constant 0 : index
      %188 = vector.load %arg14[%c3_101, %c0_102, %c0_103] : memref<4x8x8xbf16, #tpu.memory_space<vmem>>, vector<1x8x8xbf16>
      %189 = vector.shape_cast %188 : vector<1x8x8xbf16> to vector<8x8xbf16>
      %190 = vector.shape_cast %187 : vector<8x8xbf16> to vector<1x8x8xbf16>
      tpu.vector_store %arg14[%c3_101, %c0_102, %c0_103], %190 {strides = array<i32>} : memref<4x8x8xbf16, #tpu.memory_space<vmem>>, vector<1x8x8xbf16>,
    } else {
    }
    %c0 = arith.constant 0 : index
    %c0_1 = arith.constant 0 : index
    %c0_2 = arith.constant 0 : index
    %3 = vector.load %arg2[%c0, %c0_1, %c0_2] : memref<1x8x32xf32, #tpu.memory_space<vmem>>, vector<1x8x32xf32>
    %4 = vector.shape_cast %3 : vector<1x8x32xf32> to vector<8x32xf32>
    %5 = arith.truncf %4 : vector<8x32xf32> to vector<8x32xbf16>
    %c0_3 = arith.constant 0 : index
    %c0_4 = arith.constant 0 : index
    %6 = vector.load %arg4[%c0_3, %c0_4] : memref<32x32xbf16, #tpu.memory_space<vmem>>, vector<32x32xbf16>
    %cst = arith.constant dense<0.000000e+00> : vector<8x32xf32>
    %7 = tpu.matmul %5, %6, %cst {dimension_numbers = #tpu.dot_dimension_numbers<[1], [0], [0], [1], [0, 0, 1, 1], [], []>} : vector<8x32xbf16>, vector<32x32xbf16>, vector<8x32xf32> -> vector<8x32xf32>
    %c0_5 = arith.constant 0 : index
    %c0_6 = arith.constant 0 : index
    %8 = vector.load %arg5[%c0_5, %c0_6] : memref<1x32xf32, #tpu.memory_space<vmem>>, vector<1x32xf32>
    %9 = vector.broadcast %8 : vector<1x32xf32> to vector<8x32xf32>
    %10 = arith.addf %7, %9 : vector<8x32xf32>
    %cst_7 = arith.constant 0.000000e+00 : f32
    %11 = vector.broadcast %cst_7 : f32 to vector<8x32xf32>
    %12 = vector.extract_strided_slice %10 {offsets = [0, 0], sizes = [8, 8], strides = [1, 1]} : vector<8x32xf32> to vector<8x8xf32>
    %cst_8 = arith.constant 0.353553385 : f32
    %13 = vector.broadcast %cst_8 : f32 to vector<8x8xf32>
    %14 = arith.mulf %12, %13 : vector<8x8xf32>
    %15 = arith.truncf %14 : vector<8x8xf32> to vector<8x8xbf16>
    %c0_9 = arith.constant 0 : index
    %c0_10 = arith.constant 0 : index
    %c0_11 = arith.constant 0 : index
    %16 = vector.load %arg13[%c0_9, %c0_10, %c0_11] : memref<4x8x8xbf16, #tpu.memory_space<vmem>>, vector<1x8x8xbf16>
    %17 = vector.shape_cast %16 : vector<1x8x8xbf16> to vector<8x8xbf16>
    %c0_12 = arith.constant 0 : index
    %c0_13 = arith.constant 0 : index
    %c0_14 = arith.constant 0 : index
    %18 = vector.load %arg14[%c0_12, %c0_13, %c0_14] : memref<4x8x8xbf16, #tpu.memory_space<vmem>>, vector<1x8x8xbf16>
    %19 = vector.shape_cast %18 : vector<1x8x8xbf16> to vector<8x8xbf16>
    %cst_15 = arith.constant dense<0.000000e+00> : vector<8x8xf32>
    %20 = tpu.matmul %15, %17, %cst_15 {dimension_numbers = #tpu.dot_dimension_numbers<[1], [1], [0], [0], [0, 0, 1, 0], [], []>} : vector<8x8xbf16>, vector<8x8xbf16>, vector<8x8xf32> -> vector<8x8xf32>
    %cst_16 = arith.constant dense<0xFF800000> : vector<8xf32>
    %21 = vector.multi_reduction <maximumf>, %20, %cst_16 [1] : vector<8x8xf32> to vector<8xf32>
    %22 = vector.shape_cast %21 : vector<8xf32> to vector<8x1xf32>
    %23 = vector.broadcast %22 : vector<8x1xf32> to vector<8x8xf32>
    %24 = arith.subf %20, %23 : vector<8x8xf32>
    %25 = math.exp %24 : vector<8x8xf32>
    %cst_17 = arith.constant dense<0.000000e+00> : vector<8xf32>
    %26 = vector.multi_reduction <add>, %25, %cst_17 [1] : vector<8x8xf32> to vector<8xf32>
    %27 = vector.shape_cast %26 : vector<8xf32> to vector<8x1xf32>
    %28 = arith.truncf %25 : vector<8x8xf32> to vector<8x8xbf16>
    %cst_18 = arith.constant dense<0.000000e+00> : vector<8x8xf32>
    %29 = tpu.matmul %28, %19, %cst_18 {dimension_numbers = #tpu.dot_dimension_numbers<[1], [0], [0], [1], [0, 0, 1, 1], [], []>} : vector<8x8xbf16>, vector<8x8xbf16>, vector<8x8xf32> -> vector<8x8xf32>
    %30 = tpu.reciprocal %27 {approx = true} : vector<8x1xf32> -> vector<8x1xf32>
    %31 = vector.broadcast %30 : vector<8x1xf32> to vector<8x8xf32>
    %32 = arith.mulf %29, %31 : vector<8x8xf32>
    %33 = arith.truncf %32 : vector<8x8xf32> to vector<8x8xbf16>
    %c0_19 = arith.constant 0 : index
    %c0_20 = arith.constant 0 : index
    %34 = vector.load %arg8[%c0_19, %c0_20] : memref<32x32xbf16, #tpu.memory_space<vmem>>, vector<8x32xbf16>
    %cst_21 = arith.constant dense<0.000000e+00> : vector<8x32xf32>
    %35 = tpu.matmul %33, %34, %cst_21 {dimension_numbers = #tpu.dot_dimension_numbers<[1], [0], [0], [1], [0, 0, 1, 1], [], []>} : vector<8x8xbf16>, vector<8x32xbf16>, vector<8x32xf32> -> vector<8x32xf32>
    %36 = arith.addf %11, %35 : vector<8x32xf32>
    %37 = vector.extract_strided_slice %10 {offsets = [0, 8], sizes = [8, 8], strides = [1, 1]} : vector<8x32xf32> to vector<8x8xf32>
    %cst_22 = arith.constant 0.353553385 : f32
    %38 = vector.broadcast %cst_22 : f32 to vector<8x8xf32>
    %39 = arith.mulf %37, %38 : vector<8x8xf32>
    %40 = arith.truncf %39 : vector<8x8xf32> to vector<8x8xbf16>
    %c1 = arith.constant 1 : index
    %c0_23 = arith.constant 0 : index
    %c0_24 = arith.constant 0 : index
    %41 = vector.load %arg13[%c1, %c0_23, %c0_24] : memref<4x8x8xbf16, #tpu.memory_space<vmem>>, vector<1x8x8xbf16>
    %42 = vector.shape_cast %41 : vector<1x8x8xbf16> to vector<8x8xbf16>
    %c1_25 = arith.constant 1 : index
    %c0_26 = arith.constant 0 : index
    %c0_27 = arith.constant 0 : index
    %43 = vector.load %arg14[%c1_25, %c0_26, %c0_27] : memref<4x8x8xbf16, #tpu.memory_space<vmem>>, vector<1x8x8xbf16>
    %44 = vector.shape_cast %43 : vector<1x8x8xbf16> to vector<8x8xbf16>
    %cst_28 = arith.constant dense<0.000000e+00> : vector<8x8xf32>
    %45 = tpu.matmul %40, %42, %cst_28 {dimension_numbers = #tpu.dot_dimension_numbers<[1], [1], [0], [0], [0, 0, 1, 0], [], []>} : vector<8x8xbf16>, vector<8x8xbf16>, vector<8x8xf32> -> vector<8x8xf32>
    %cst_29 = arith.constant dense<0xFF800000> : vector<8xf32>
    %46 = vector.multi_reduction <maximumf>, %45, %cst_29 [1] : vector<8x8xf32> to vector<8xf32>
    %47 = vector.shape_cast %46 : vector<8xf32> to vector<8x1xf32>
    %48 = vector.broadcast %47 : vector<8x1xf32> to vector<8x8xf32>
    %49 = arith.subf %45, %48 : vector<8x8xf32>
    %50 = math.exp %49 : vector<8x8xf32>
    %cst_30 = arith.constant dense<0.000000e+00> : vector<8xf32>
    %51 = vector.multi_reduction <add>, %50, %cst_30 [1] : vector<8x8xf32> to vector<8xf32>
    %52 = vector.shape_cast %51 : vector<8xf32> to vector<8x1xf32>
    %53 = arith.truncf %50 : vector<8x8xf32> to vector<8x8xbf16>
    %cst_31 = arith.constant dense<0.000000e+00> : vector<8x8xf32>
    %54 = tpu.matmul %53, %44, %cst_31 {dimension_numbers = #tpu.dot_dimension_numbers<[1], [0], [0], [1], [0, 0, 1, 1], [], []>} : vector<8x8xbf16>, vector<8x8xbf16>, vector<8x8xf32> -> vector<8x8xf32>
    %55 = tpu.reciprocal %52 {approx = true} : vector<8x1xf32> -> vector<8x1xf32>
    %56 = vector.broadcast %55 : vector<8x1xf32> to vector<8x8xf32>
    %57 = arith.mulf %54, %56 : vector<8x8xf32>
    %58 = arith.truncf %57 : vector<8x8xf32> to vector<8x8xbf16>
    %c8 = arith.constant 8 : index
    %c0_32 = arith.constant 0 : index
    %59 = vector.load %arg8[%c8, %c0_32] : memref<32x32xbf16, #tpu.memory_space<vmem>>, vector<8x32xbf16>
    %cst_33 = arith.constant dense<0.000000e+00> : vector<8x32xf32>
    %60 = tpu.matmul %58, %59, %cst_33 {dimension_numbers = #tpu.dot_dimension_numbers<[1], [0], [0], [1], [0, 0, 1, 1], [], []>} : vector<8x8xbf16>, vector<8x32xbf16>, vector<8x32xf32> -> vector<8x32xf32>
    %61 = arith.addf %36, %60 : vector<8x32xf32>
    %62 = vector.extract_strided_slice %10 {offsets = [0, 16], sizes = [8, 8], strides = [1, 1]} : vector<8x32xf32> to vector<8x8xf32>
    %cst_34 = arith.constant 0.353553385 : f32
    %63 = vector.broadcast %cst_34 : f32 to vector<8x8xf32>
    %64 = arith.mulf %62, %63 : vector<8x8xf32>
    %65 = arith.truncf %64 : vector<8x8xf32> to vector<8x8xbf16>
    %c2 = arith.constant 2 : index
    %c0_35 = arith.constant 0 : index
    %c0_36 = arith.constant 0 : index
    %66 = vector.load %arg13[%c2, %c0_35, %c0_36] : memref<4x8x8xbf16, #tpu.memory_space<vmem>>, vector<1x8x8xbf16>
    %67 = vector.shape_cast %66 : vector<1x8x8xbf16> to vector<8x8xbf16>
    %c2_37 = arith.constant 2 : index
    %c0_38 = arith.constant 0 : index
    %c0_39 = arith.constant 0 : index
    %68 = vector.load %arg14[%c2_37, %c0_38, %c0_39] : memref<4x8x8xbf16, #tpu.memory_space<vmem>>, vector<1x8x8xbf16>
    %69 = vector.shape_cast %68 : vector<1x8x8xbf16> to vector<8x8xbf16>
    %cst_40 = arith.constant dense<0.000000e+00> : vector<8x8xf32>
    %70 = tpu.matmul %65, %67, %cst_40 {dimension_numbers = #tpu.dot_dimension_numbers<[1], [1], [0], [0], [0, 0, 1, 0], [], []>} : vector<8x8xbf16>, vector<8x8xbf16>, vector<8x8xf32> -> vector<8x8xf32>
    %cst_41 = arith.constant dense<0xFF800000> : vector<8xf32>
    %71 = vector.multi_reduction <maximumf>, %70, %cst_41 [1] : vector<8x8xf32> to vector<8xf32>
    %72 = vector.shape_cast %71 : vector<8xf32> to vector<8x1xf32>
    %73 = vector.broadcast %72 : vector<8x1xf32> to vector<8x8xf32>
    %74 = arith.subf %70, %73 : vector<8x8xf32>
    %75 = math.exp %74 : vector<8x8xf32>
    %cst_42 = arith.constant dense<0.000000e+00> : vector<8xf32>
    %76 = vector.multi_reduction <add>, %75, %cst_42 [1] : vector<8x8xf32> to vector<8xf32>
    %77 = vector.shape_cast %76 : vector<8xf32> to vector<8x1xf32>
    %78 = arith.truncf %75 : vector<8x8xf32> to vector<8x8xbf16>
    %cst_43 = arith.constant dense<0.000000e+00> : vector<8x8xf32>
    %79 = tpu.matmul %78, %69, %cst_43 {dimension_numbers = #tpu.dot_dimension_numbers<[1], [0], [0], [1], [0, 0, 1, 1], [], []>} : vector<8x8xbf16>, vector<8x8xbf16>, vector<8x8xf32> -> vector<8x8xf32>
    %80 = tpu.reciprocal %77 {approx = true} : vector<8x1xf32> -> vector<8x1xf32>
    %81 = vector.broadcast %80 : vector<8x1xf32> to vector<8x8xf32>
    %82 = arith.mulf %79, %81 : vector<8x8xf32>
    %83 = arith.truncf %82 : vector<8x8xf32> to vector<8x8xbf16>
    %c16 = arith.constant 16 : index
    %c0_44 = arith.constant 0 : index
    %84 = vector.load %arg8[%c16, %c0_44] : memref<32x32xbf16, #tpu.memory_space<vmem>>, vector<8x32xbf16>
    %cst_45 = arith.constant dense<0.000000e+00> : vector<8x32xf32>
    %85 = tpu.matmul %83, %84, %cst_45 {dimension_numbers = #tpu.dot_dimension_numbers<[1], [0], [0], [1], [0, 0, 1, 1], [], []>} : vector<8x8xbf16>, vector<8x32xbf16>, vector<8x32xf32> -> vector<8x32xf32>
    %86 = arith.addf %61, %85 : vector<8x32xf32>
    %87 = vector.extract_strided_slice %10 {offsets = [0, 24], sizes = [8, 8], strides = [1, 1]} : vector<8x32xf32> to vector<8x8xf32>
    %cst_46 = arith.constant 0.353553385 : f32
    %88 = vector.broadcast %cst_46 : f32 to vector<8x8xf32>
    %89 = arith.mulf %87, %88 : vector<8x8xf32>
    %90 = arith.truncf %89 : vector<8x8xf32> to vector<8x8xbf16>
    %c3 = arith.constant 3 : index
    %c0_47 = arith.constant 0 : index
    %c0_48 = arith.constant 0 : index
    %91 = vector.load %arg13[%c3, %c0_47, %c0_48] : memref<4x8x8xbf16, #tpu.memory_space<vmem>>, vector<1x8x8xbf16>
    %92 = vector.shape_cast %91 : vector<1x8x8xbf16> to vector<8x8xbf16>
    %c3_49 = arith.constant 3 : index
    %c0_50 = arith.constant 0 : index
    %c0_51 = arith.constant 0 : index
    %93 = vector.load %arg14[%c3_49, %c0_50, %c0_51] : memref<4x8x8xbf16, #tpu.memory_space<vmem>>, vector<1x8x8xbf16>
    %94 = vector.shape_cast %93 : vector<1x8x8xbf16> to vector<8x8xbf16>
    %cst_52 = arith.constant dense<0.000000e+00> : vector<8x8xf32>
    %95 = tpu.matmul %90, %92, %cst_52 {dimension_numbers = #tpu.dot_dimension_numbers<[1], [1], [0], [0], [0, 0, 1, 0], [], []>} : vector<8x8xbf16>, vector<8x8xbf16>, vector<8x8xf32> -> vector<8x8xf32>
    %cst_53 = arith.constant dense<0xFF800000> : vector<8xf32>
    %96 = vector.multi_reduction <maximumf>, %95, %cst_53 [1] : vector<8x8xf32> to vector<8xf32>
    %97 = vector.shape_cast %96 : vector<8xf32> to vector<8x1xf32>
    %98 = vector.broadcast %97 : vector<8x1xf32> to vector<8x8xf32>
    %99 = arith.subf %95, %98 : vector<8x8xf32>
    %100 = math.exp %99 : vector<8x8xf32>
    %cst_54 = arith.constant dense<0.000000e+00> : vector<8xf32>
    %101 = vector.multi_reduction <add>, %100, %cst_54 [1] : vector<8x8xf32> to vector<8xf32>
    %102 = vector.shape_cast %101 : vector<8xf32> to vector<8x1xf32>
    %103 = arith.truncf %100 : vector<8x8xf32> to vector<8x8xbf16>
    %cst_55 = arith.constant dense<0.000000e+00> : vector<8x8xf32>
    %104 = tpu.matmul %103, %94, %cst_55 {dimension_numbers = #tpu.dot_dimension_numbers<[1], [0], [0], [1], [0, 0, 1, 1], [], []>} : vector<8x8xbf16>, vector<8x8xbf16>, vector<8x8xf32> -> vector<8x8xf32>
    %105 = tpu.reciprocal %102 {approx = true} : vector<8x1xf32> -> vector<8x1xf32>
    %106 = vector.broadcast %105 : vector<8x1xf32> to vector<8x8xf32>
    %107 = arith.mulf %104, %106 : vector<8x8xf32>
    %108 = arith.truncf %107 : vector<8x8xf32> to vector<8x8xbf16>
    %c24 = arith.constant 24 : index
    %c0_56 = arith.constant 0 : index
    %109 = vector.load %arg8[%c24, %c0_56] : memref<32x32xbf16, #tpu.memory_space<vmem>>, vector<8x32xbf16>
    %cst_57 = arith.constant dense<0.000000e+00> : vector<8x32xf32>
    %110 = tpu.matmul %108, %109, %cst_57 {dimension_numbers = #tpu.dot_dimension_numbers<[1], [0], [0], [1], [0, 0, 1, 1], [], []>} : vector<8x8xbf16>, vector<8x32xbf16>, vector<8x32xf32> -> vector<8x32xf32>
    %111 = arith.addf %86, %110 : vector<8x32xf32>
    %112 = arith.addf %4, %111 : vector<8x32xf32>
    %c0_58 = arith.constant 0 : index
    %c0_59 = arith.constant 0 : index
    %113 = vector.load %arg9[%c0_58, %c0_59] : memref<1x32xf32, #tpu.memory_space<vmem>>, vector<1x32xf32>
    %114 = vector.broadcast %113 : vector<1x32xf32> to vector<8x32xf32>
    %115 = arith.addf %112, %114 : vector<8x32xf32>
    %c0_60 = arith.constant 0 : index
    %c0_61 = arith.constant 0 : index
    %116 = vector.load %arg10[%c0_60, %c0_61] : memref<1x32xf32, #tpu.memory_space<vmem>>, vector<1x32xf32>
    %c0_62 = arith.constant 0 : index
    %c0_63 = arith.constant 0 : index
    %117 = vector.load %arg11[%c0_62, %c0_63] : memref<1x32xf32, #tpu.memory_space<vmem>>, vector<1x32xf32>
    %cst_64 = arith.constant dense<0.000000e+00> : vector<8xf32>
    %118 = vector.multi_reduction <add>, %115, %cst_64 [1] : vector<8x32xf32> to vector<8xf32>
    %119 = vector.shape_cast %118 : vector<8xf32> to vector<8x1xf32>
    %cst_65 = arith.constant 3.200000e+01 : f32
    %120 = vector.broadcast %cst_65 : f32 to vector<8x1xf32>
    %121 = arith.divf %119, %120 : vector<8x1xf32>
    %122 = vector.broadcast %121 : vector<8x1xf32> to vector<8x32xf32>
    %123 = arith.subf %115, %122 : vector<8x32xf32>
    %124 = arith.mulf %123, %123 : vector<8x32xf32>
    %cst_66 = arith.constant dense<0.000000e+00> : vector<8xf32>
    %125 = vector.multi_reduction <add>, %124, %cst_66 [1] : vector<8x32xf32> to vector<8xf32>
    %126 = vector.shape_cast %125 : vector<8xf32> to vector<8x1xf32>
    %cst_67 = arith.constant 3.200000e+01 : f32
    %127 = vector.broadcast %cst_67 : f32 to vector<8x1xf32>
    %128 = arith.divf %126, %127 : vector<8x1xf32>
    %129 = vector.broadcast %121 : vector<8x1xf32> to vector<8x32xf32>
    %130 = arith.subf %115, %129 : vector<8x32xf32>
    %cst_68 = arith.constant 9.99999974E-6 : f32
    %131 = vector.broadcast %cst_68 : f32 to vector<8x1xf32>
    %132 = arith.addf %128, %131 : vector<8x1xf32>
    %133 = math.rsqrt %132 : vector<8x1xf32>
    %134 = vector.broadcast %133 : vector<8x1xf32> to vector<8x32xf32>
    %135 = arith.mulf %130, %134 : vector<8x32xf32>
    %136 = vector.broadcast %116 : vector<1x32xf32> to vector<8x32xf32>
    %137 = arith.mulf %135, %136 : vector<8x32xf32>
    %138 = vector.broadcast %117 : vector<1x32xf32> to vector<8x32xf32>
    %139 = arith.addf %137, %138 : vector<8x32xf32>
    %c0_69 = arith.constant 0 : index
    %c0_70 = arith.constant 0 : index
    %c0_71 = arith.constant 0 : index
    %140 = vector.load %arg12[%c0_69, %c0_70, %c0_71] : memref<1x8x32xf32, #tpu.memory_space<vmem>>, vector<1x8x32xf32>
    %141 = vector.shape_cast %140 : vector<1x8x32xf32> to vector<8x32xf32>
    %142 = vector.shape_cast %139 : vector<8x32xf32> to vector<1x8x32xf32>
    tpu.vector_store %arg12[%c0_69, %c0_70, %c0_71], %142 {strides = array<i32>} : memref<1x8x32xf32, #tpu.memory_space<vmem>>, vector<1x8x32xf32>,
    return
  }
  func.func @transform_0(%arg0: i32, %arg1: i32) -> (i32, i32, i32) {
    %c0_i32 = arith.constant 0 : i32
    %c0_i32_0 = arith.constant 0 : i32
    return %arg0, %arg1, %c0_i32 : i32, i32, i32
  }
  func.func @transform_1(%arg0: i32, %arg1: i32) -> (i32, i32, i32) {
    %c0_i32 = arith.constant 0 : i32
    %c0_i32_0 = arith.constant 0 : i32
    %c0_i32_1 = arith.constant 0 : i32
    return %arg0, %c0_i32, %c0_i32_0 : i32, i32, i32
  }
  func.func @transform_2(%arg0: i32, %arg1: i32) -> (i32, i32) {
    %c0_i32 = arith.constant 0 : i32
    %c0_i32_0 = arith.constant 0 : i32
    %c0_i32_1 = arith.constant 0 : i32
    return %c0_i32, %c0_i32_0 : i32, i32
  }
  func.func @transform_3(%arg0: i32, %arg1: i32) -> (i32, i32) {
    %c0_i32 = arith.constant 0 : i32
    %c0_i32_0 = arith.constant 0 : i32
    %c0_i32_1 = arith.constant 0 : i32
    return %c0_i32, %c0_i32_0 : i32, i32
  }
  func.func @transform_4(%arg0: i32, %arg1: i32) -> (i32, i32) {
    %c0_i32 = arith.constant 0 : i32
    %c0_i32_0 = arith.constant 0 : i32
    %c0_i32_1 = arith.constant 0 : i32
    return %c0_i32, %c0_i32_0 : i32, i32
  }
  func.func @transform_5(%arg0: i32, %arg1: i32) -> (i32, i32) {
    %c0_i32 = arith.constant 0 : i32
    %c0_i32_0 = arith.constant 0 : i32
    %c0_i32_1 = arith.constant 0 : i32
    return %c0_i32, %c0_i32_0 : i32, i32
  }
  func.func @transform_6(%arg0: i32, %arg1: i32) -> (i32, i32) {
    %c0_i32 = arith.constant 0 : i32
    %c0_i32_0 = arith.constant 0 : i32
    %c0_i32_1 = arith.constant 0 : i32
    return %c0_i32, %c0_i32_0 : i32, i32
  }
  func.func @transform_7(%arg0: i32, %arg1: i32) -> (i32, i32) {
    %c0_i32 = arith.constant 0 : i32
    %c0_i32_0 = arith.constant 0 : i32
    %c0_i32_1 = arith.constant 0 : i32
    return %c0_i32, %c0_i32_0 : i32, i32
  }
  func.func @transform_8(%arg0: i32, %arg1: i32) -> (i32, i32) {
    %c0_i32 = arith.constant 0 : i32
    %c0_i32_0 = arith.constant 0 : i32
    %c0_i32_1 = arith.constant 0 : i32
    return %c0_i32, %c0_i32_0 : i32, i32
  }
  func.func @transform_9(%arg0: i32, %arg1: i32) -> (i32, i32) {
    %c0_i32 = arith.constant 0 : i32
    %c0_i32_0 = arith.constant 0 : i32
    %c0_i32_1 = arith.constant 0 : i32
    return %c0_i32, %c0_i32_0 : i32, i32
  }
  func.func @transform_10(%arg0: i32, %arg1: i32) -> (i32, i32, i32) {
    %c0_i32 = arith.constant 0 : i32
    %c0_i32_0 = arith.constant 0 : i32
    return %arg0, %arg1, %c0_i32 : i32, i32, i32
  }
}

module attributes {stable_mosaic.version = 11 : i64} {
  func.func @_ffn_block_kernel(%arg0: i32, %arg1: memref<8x32xf32, #tpu.memory_space<vmem>>, %arg2: memref<32x64xbf16, #tpu.memory_space<vmem>>, %arg3: memref<1x64xf32, #tpu.memory_space<vmem>>, %arg4: memref<64x32xbf16, #tpu.memory_space<vmem>>, %arg5: memref<1x32xf32, #tpu.memory_space<vmem>>, %arg6: memref<1x32xf32, #tpu.memory_space<vmem>>, %arg7: memref<1x32xf32, #tpu.memory_space<vmem>>, %arg8: memref<8x32xf32, #tpu.memory_space<vmem>>) attributes {dimension_semantics = [#tpu.dimension_semantics<parallel>], iteration_bounds = array<i64: 2>, scalar_prefetch = 0 : i64, scratch_operands = 0 : i64, tpu.core_type = #tpu.core_type<tc>, window_params = [{transform_indices = @transform_0, window_bounds = array<i64: 8, 32>}, {pipeline_mode = #tpu.pipeline_mode<synchronous>, transform_indices = @transform_1, window_bounds = array<i64: 32, 64>}, {pipeline_mode = #tpu.pipeline_mode<synchronous>, transform_indices = @transform_2, window_bounds = array<i64: 1, 64>}, {pipeline_mode = #tpu.pipeline_mode<synchronous>, transform_indices = @transform_3, window_bounds = array<i64: 64, 32>}, {pipeline_mode = #tpu.pipeline_mode<synchronous>, transform_indices = @transform_4, window_bounds = array<i64: 1, 32>}, {pipeline_mode = #tpu.pipeline_mode<synchronous>, transform_indices = @transform_5, window_bounds = array<i64: 1, 32>}, {pipeline_mode = #tpu.pipeline_mode<synchronous>, transform_indices = @transform_6, window_bounds = array<i64: 1, 32>}, {transform_indices = @transform_7, window_bounds = array<i64: 8, 32>}]} {
    %c0 = arith.constant 0 : index
    %c0_0 = arith.constant 0 : index
    %0 = vector.load %arg1[%c0, %c0_0] : memref<8x32xf32, #tpu.memory_space<vmem>>, vector<8x32xf32>
    %1 = arith.truncf %0 : vector<8x32xf32> to vector<8x32xbf16>
    %c0_1 = arith.constant 0 : index
    %c0_2 = arith.constant 0 : index
    %2 = vector.load %arg2[%c0_1, %c0_2] : memref<32x64xbf16, #tpu.memory_space<vmem>>, vector<32x64xbf16>
    %cst = arith.constant dense<0.000000e+00> : vector<8x64xf32>
    %3 = tpu.matmul %1, %2, %cst {dimension_numbers = #tpu.dot_dimension_numbers<[1], [0], [0], [1], [0, 0, 1, 1], [], []>} : vector<8x32xbf16>, vector<32x64xbf16>, vector<8x64xf32> -> vector<8x64xf32>
    %c0_3 = arith.constant 0 : index
    %c0_4 = arith.constant 0 : index
    %4 = vector.load %arg3[%c0_3, %c0_4] : memref<1x64xf32, #tpu.memory_space<vmem>>, vector<1x64xf32>
    %5 = vector.broadcast %4 : vector<1x64xf32> to vector<8x64xf32>
    %6 = arith.addf %3, %5 : vector<8x64xf32>
    %cst_5 = arith.constant 0.000000e+00 : f32
    %7 = vector.broadcast %cst_5 : f32 to vector<8x64xf32>
    %8 = arith.maximumf %6, %7 : vector<8x64xf32>
    %9 = arith.truncf %8 : vector<8x64xf32> to vector<8x64xbf16>
    %c0_6 = arith.constant 0 : index
    %c0_7 = arith.constant 0 : index
    %10 = vector.load %arg4[%c0_6, %c0_7] : memref<64x32xbf16, #tpu.memory_space<vmem>>, vector<64x32xbf16>
    %cst_8 = arith.constant dense<0.000000e+00> : vector<8x32xf32>
    %11 = tpu.matmul %9, %10, %cst_8 {dimension_numbers = #tpu.dot_dimension_numbers<[1], [0], [0], [1], [0, 0, 1, 1], [], []>} : vector<8x64xbf16>, vector<64x32xbf16>, vector<8x32xf32> -> vector<8x32xf32>
    %c0_9 = arith.constant 0 : index
    %c0_10 = arith.constant 0 : index
    %12 = vector.load %arg5[%c0_9, %c0_10] : memref<1x32xf32, #tpu.memory_space<vmem>>, vector<1x32xf32>
    %13 = vector.broadcast %12 : vector<1x32xf32> to vector<8x32xf32>
    %14 = arith.addf %11, %13 : vector<8x32xf32>
    %15 = arith.addf %0, %14 : vector<8x32xf32>
    %c0_11 = arith.constant 0 : index
    %c0_12 = arith.constant 0 : index
    %16 = vector.load %arg6[%c0_11, %c0_12] : memref<1x32xf32, #tpu.memory_space<vmem>>, vector<1x32xf32>
    %c0_13 = arith.constant 0 : index
    %c0_14 = arith.constant 0 : index
    %17 = vector.load %arg7[%c0_13, %c0_14] : memref<1x32xf32, #tpu.memory_space<vmem>>, vector<1x32xf32>
    %cst_15 = arith.constant dense<0.000000e+00> : vector<8xf32>
    %18 = vector.multi_reduction <add>, %15, %cst_15 [1] : vector<8x32xf32> to vector<8xf32>
    %19 = vector.shape_cast %18 : vector<8xf32> to vector<8x1xf32>
    %cst_16 = arith.constant 3.200000e+01 : f32
    %20 = vector.broadcast %cst_16 : f32 to vector<8x1xf32>
    %21 = arith.divf %19, %20 : vector<8x1xf32>
    %22 = vector.broadcast %21 : vector<8x1xf32> to vector<8x32xf32>
    %23 = arith.subf %15, %22 : vector<8x32xf32>
    %24 = arith.mulf %23, %23 : vector<8x32xf32>
    %cst_17 = arith.constant dense<0.000000e+00> : vector<8xf32>
    %25 = vector.multi_reduction <add>, %24, %cst_17 [1] : vector<8x32xf32> to vector<8xf32>
    %26 = vector.shape_cast %25 : vector<8xf32> to vector<8x1xf32>
    %cst_18 = arith.constant 3.200000e+01 : f32
    %27 = vector.broadcast %cst_18 : f32 to vector<8x1xf32>
    %28 = arith.divf %26, %27 : vector<8x1xf32>
    %29 = vector.broadcast %21 : vector<8x1xf32> to vector<8x32xf32>
    %30 = arith.subf %15, %29 : vector<8x32xf32>
    %cst_19 = arith.constant 9.99999974E-6 : f32
    %31 = vector.broadcast %cst_19 : f32 to vector<8x1xf32>
    %32 = arith.addf %28, %31 : vector<8x1xf32>
    %33 = math.rsqrt %32 : vector<8x1xf32>
    %34 = vector.broadcast %33 : vector<8x1xf32> to vector<8x32xf32>
    %35 = arith.mulf %30, %34 : vector<8x32xf32>
    %36 = vector.broadcast %16 : vector<1x32xf32> to vector<8x32xf32>
    %37 = arith.mulf %35, %36 : vector<8x32xf32>
    %38 = vector.broadcast %17 : vector<1x32xf32> to vector<8x32xf32>
    %39 = arith.addf %37, %38 : vector<8x32xf32>
    %c0_20 = arith.constant 0 : index
    %c0_21 = arith.constant 0 : index
    %40 = vector.load %arg8[%c0_20, %c0_21] : memref<8x32xf32, #tpu.memory_space<vmem>>, vector<8x32xf32>
    tpu.vector_store %arg8[%c0_20, %c0_21], %39 {strides = array<i32>} : memref<8x32xf32, #tpu.memory_space<vmem>>, vector<8x32xf32>,
    return
  }
  func.func @transform_0(%arg0: i32) -> (i32, i32) {
    %c0_i32 = arith.constant 0 : i32
    %c0_i32_0 = arith.constant 0 : i32
    return %arg0, %c0_i32 : i32, i32
  }
  func.func @transform_1(%arg0: i32) -> (i32, i32) {
    %c0_i32 = arith.constant 0 : i32
    %c0_i32_0 = arith.constant 0 : i32
    %c0_i32_1 = arith.constant 0 : i32
    return %c0_i32, %c0_i32_0 : i32, i32
  }
  func.func @transform_2(%arg0: i32) -> (i32, i32) {
    %c0_i32 = arith.constant 0 : i32
    %c0_i32_0 = arith.constant 0 : i32
    %c0_i32_1 = arith.constant 0 : i32
    return %c0_i32, %c0_i32_0 : i32, i32
  }
  func.func @transform_3(%arg0: i32) -> (i32, i32) {
    %c0_i32 = arith.constant 0 : i32
    %c0_i32_0 = arith.constant 0 : i32
    %c0_i32_1 = arith.constant 0 : i32
    return %c0_i32, %c0_i32_0 : i32, i32
  }
  func.func @transform_4(%arg0: i32) -> (i32, i32) {
    %c0_i32 = arith.constant 0 : i32
    %c0_i32_0 = arith.constant 0 : i32
    %c0_i32_1 = arith.constant 0 : i32
    return %c0_i32, %c0_i32_0 : i32, i32
  }
  func.func @transform_5(%arg0: i32) -> (i32, i32) {
    %c0_i32 = arith.constant 0 : i32
    %c0_i32_0 = arith.constant 0 : i32
    %c0_i32_1 = arith.constant 0 : i32
    return %c0_i32, %c0_i32_0 : i32, i32
  }
  func.func @transform_6(%arg0: i32) -> (i32, i32) {
    %c0_i32 = arith.constant 0 : i32
    %c0_i32_0 = arith.constant 0 : i32
    %c0_i32_1 = arith.constant 0 : i32
    return %c0_i32, %c0_i32_0 : i32, i32
  }
  func.func @transform_7(%arg0: i32) -> (i32, i32) {
    %c0_i32 = arith.constant 0 : i32
    %c0_i32_0 = arith.constant 0 : i32
    return %arg0, %c0_i32 : i32, i32
  }
}

module attributes {stable_mosaic.version = 11 : i64} {
  func.func @_linear_kernel(%arg0: i32, %arg1: i32, %arg2: memref<8x32xf32, #tpu.memory_space<vmem>>, %arg3: memref<32x128xbf16, #tpu.memory_space<vmem>>, %arg4: memref<1x128xf32, #tpu.memory_space<vmem>>, %arg5: memref<8x128xf32, #tpu.memory_space<vmem>>) attributes {dimension_semantics = [#tpu.dimension_semantics<parallel>, #tpu.dimension_semantics<parallel>], iteration_bounds = array<i64: 2, 1>, scalar_prefetch = 0 : i64, scratch_operands = 0 : i64, tpu.core_type = #tpu.core_type<tc>, window_params = [{transform_indices = @transform_0, window_bounds = array<i64: 8, 32>}, {transform_indices = @transform_1, window_bounds = array<i64: 32, 128>}, {transform_indices = @transform_2, window_bounds = array<i64: 1, 128>}, {transform_indices = @transform_3, window_bounds = array<i64: 8, 128>}]} {
    %c0 = arith.constant 0 : index
    %c0_0 = arith.constant 0 : index
    %0 = vector.load %arg2[%c0, %c0_0] : memref<8x32xf32, #tpu.memory_space<vmem>>, vector<8x32xf32>
    %1 = arith.truncf %0 : vector<8x32xf32> to vector<8x32xbf16>
    %c0_1 = arith.constant 0 : index
    %c0_2 = arith.constant 0 : index
    %2 = vector.load %arg3[%c0_1, %c0_2] : memref<32x128xbf16, #tpu.memory_space<vmem>>, vector<32x128xbf16>
    %cst = arith.constant dense<0.000000e+00> : vector<8x128xf32>
    %3 = tpu.matmul %1, %2, %cst {dimension_numbers = #tpu.dot_dimension_numbers<[1], [0], [0], [1], [0, 0, 1, 1], [], []>} : vector<8x32xbf16>, vector<32x128xbf16>, vector<8x128xf32> -> vector<8x128xf32>
    %c0_3 = arith.constant 0 : index
    %c0_4 = arith.constant 0 : index
    %4 = vector.load %arg4[%c0_3, %c0_4] : memref<1x128xf32, #tpu.memory_space<vmem>>, vector<1x128xf32>
    %5 = vector.broadcast %4 : vector<1x128xf32> to vector<8x128xf32>
    %6 = arith.addf %3, %5 : vector<8x128xf32>
    %c0_5 = arith.constant 0 : index
    %c0_6 = arith.constant 0 : index
    %7 = vector.load %arg5[%c0_5, %c0_6] : memref<8x128xf32, #tpu.memory_space<vmem>>, vector<8x128xf32>
    tpu.vector_store %arg5[%c0_5, %c0_6], %6 {strides = array<i32>} : memref<8x128xf32, #tpu.memory_space<vmem>>, vector<8x128xf32>,
    return
  }
  func.func @transform_0(%arg0: i32, %arg1: i32) -> (i32, i32) {
    %c0_i32 = arith.constant 0 : i32
    %c0_i32_0 = arith.constant 0 : i32
    return %arg0, %c0_i32 : i32, i32
  }
  func.func @transform_1(%arg0: i32, %arg1: i32) -> (i32, i32) {
    %c0_i32 = arith.constant 0 : i32
    %c0_i32_0 = arith.constant 0 : i32
    return %c0_i32, %arg1 : i32, i32
  }
  func.func @transform_2(%arg0: i32, %arg1: i32) -> (i32, i32) {
    %c0_i32 = arith.constant 0 : i32
    %c0_i32_0 = arith.constant 0 : i32
    return %c0_i32, %arg1 : i32, i32
  }
  func.func @transform_3(%arg0: i32, %arg1: i32) -> (i32, i32) {
    %c0_i32 = arith.constant 0 : i32
    return %arg0, %arg1 : i32, i32
  }
}

</mosaic_0001>

<bundles_post_ra>
// kernel: transformer_seq2seq_forward.12
= control target key start
LH: loop header
LB: loop body
LE: loop exit
PB: predicated region body
PF: predicated region fallthrough
CT: control target
= control target key end

     0   :  { %s570_s24 = smov 0   ;;  %s628_s0 = inlined_call_operand.vmem [shape: f32[16,32], index: 0, kind: input, shape index: {}]   ;;  %s629_s1 = inlined_call_operand.vmem [shape: bf16[32,64], index: 1, kind: input, shape index: {}]   ;;  %s630_s2 = inlined_call_operand.vmem [shape: f32[1,64], index: 2, kind: input, shape index: {}]   ;;  %s631_s3 = inlined_call_operand.vmem [shape: bf16[64,32], index: 3, kind: input, shape index: {}]   ;;  %s632_s4 = inlined_call_operand.vmem [shape: f32[1,32], index: 4, kind: input, shape index: {}]   ;;  %s633_s5 = inlined_call_operand.vmem [shape: f32[1,32], index: 5, kind: input, shape index: {}]   ;;  %s634_s6 = inlined_call_operand.vmem [shape: f32[1,32], index: 6, kind: input, shape index: {}]   ;;  %s635_s7 = inlined_call_operand.vmem [shape: f32[16,32], index: 7, kind: output, shape index: {}]  }
   0x1 LB: > { %s463_s25 = sadd.s32 4294967295, %s527_s24   ;;  %p467_p0 = scmp.ge.s32.totalorder %s527_s24, 1  ;;  %s527_s24 = sphi %s570_s24, %s17_s24  }
   0x2   : > { %p236_p1 = scmp.lt.s32.totalorder %s527_s24, 3 }
   0x4   : > { %p237_p2 = pnand %p467_p0, %p236_p1 }
   0x5   : > { %p266_p3 = scmp.lt.s32.totalorder (!%p237_p2), %s463_s25, 1 }
   0x6   : > { %240 = sbr.rel (%p237_p2) target bundleno = 550 (0x226), region = 48 }
   0xb   : > { %v499_v0 = vld [vmem:[%s629_s1 + $0x8] sm:$0xff]  ;;  %v503_v1 = vld [vmem:[%s631_s3 + $0x18] sm:$0xff]  ;;  %v498_v2 = vld [vmem:[%s629_s1] sm:$0xff]  ;;  %s637_s25 = smov (!%p266_p3, %s463_s25), 1  ;;  %vm297_vm0 = vcmask 261120   ;;  %vm352_vm1 = vcmask 523264  }
   0xc   : > { %307 = vmatpush.bf16.msra.mxu0 %v499_v0  ;;  %360 = vmatpush.bf16.msra.mxu1 %v503_v1  ;;  %v502_v3 = vld [vmem:[%s631_s3 + $0x10] sm:$0xff]  ;;  %s468_s11 = sshll.u32 %s637_s25, 3  ;;  %v501_v6 = vld [vmem:[%s631_s3 + $0x8] sm:$0xff]  ;;  %v500_v7 = vld [vmem:[%s631_s3] sm:$0xff]  ;;  %v529_v20 = vmov 32.0  }
   0xd   : > { %s269_s14 = scalar_lea.vmem %s628_s0, %s468_s11  ;;  %v513_v8 = vld [vmem:[%s630_s2] ss:$0 sm:$0xff]  ;;  %517 = vrcp.f32 %v529_v20  ;;  %s273_s8 = scalar_lea.vmem %s635_s7, %s468_s11 }
   0xe   : > { %v275_v4 = vld [vmem:[%s269_s14] sm:$0xff] }
   0xf   : > { %v276_v5 = vpack.c.bf16 %v275_v4, %v275_v4  ;;  %v514_v14 = vld [vmem:[%s632_s4] ss:$0 sm:$0xff] }
  0x10   : > { %308 = vmatpush.bf16.msra.mxu0 %v498_v2  ;;  %361 = vmatpush.bf16.msra.mxu1 %v502_v3  ;;  %v515_v41 = vld [vmem:[%s633_s5] ss:$0 sm:$0xff] }
  0x11   : > { %v516_v43 = vld [vmem:[%s634_s6] ss:$0 sm:$0xff] }
  0x13   : > { %478 = vmatmul.msk.bf16.vlgmr.msra.gmra.mxu0 %vm297_vm0, %v276_v5  ;;  %v518_v21 = vpop.eup %517 }
  0x14   : > { %362 = vmatpush.bf16.msra.mxu1 %v501_v6  ;;  %v376_v22 = vmul.f32 32.0, %v518_v21  ;;  %vm380_vm2 = vweird.f32 %v518_v21 }
  0x16   : > { %v377_v23 = vsub.f32 1.0, %v376_v22 }
  0x18   : > { %363 = vmatpush.bf16.msra.mxu1 %v500_v7  ;;  %v378_v24 = vmul.f32 %v518_v21, %v377_v23 }
  0x1a   : > { %v379_v25 = vadd.f32 %v518_v21, %v378_v24 }
  0x1c   : > { %v381_v26 = vsel %vm380_vm2, %v518_v21, %v379_v25 }
  0x90   : > { %v310_v9 = vpop.f32.mrf.mxu0 }
  0x91   : > { %v311_v10 = vadd.f32 %v513_v8, %v310_v9 }
  0x93   : > { %v314_v11 = vmax.f32 %v311_v10, 0.0 }
  0x95   : > { %v315_v12 = vpack.c.bf16 %v314_v11, %v314_v11 }
  0x97   : > { %495 = vmatmul.msk.bf16.vlgmr.msra.gmra.mxu1 %vm352_vm1, %v315_v12 }
  0x98   : > { %v312_v13 = vpop.f32.mrf.mxu0 }
 0x114   : > { %v365_v15 = vpop.f32.mrf.mxu1 }
 0x115   : > { %v366_v16 = vadd.f32 %v514_v14, %v365_v15 }
 0x117   : > { %v369_v17 = vadd.f32 %v366_v16, %v275_v4 }
 0x119   : > { %v372_v18 = vsel %vm297_vm0, %v369_v17, 0.0 }
 0x11a   : > { %373 = vadd.xlane.f32.xlu0 %v372_v18 }
 0x11c   : > { %v367_v19 = vpop.f32.mrf.mxu1 }
 0x18d   : > { %v374_v27 = vpop.xlane.xlu0 %373 }
 0x18e   : > { %v382_v28 = vmul.f32 %v381_v26, %v374_v27 }
 0x190   : > { %v383_v29 = vsub.f32 %v369_v17, %v382_v28 }
 0x192   : > { %v384_v30 = vmul.f32 %v383_v29, %v383_v29 }
 0x194   : > { %v385_v31 = vsel %vm297_vm0, %v384_v30, 0.0 }
 0x195   : > { %386 = vadd.xlane.f32.xlu0 %v385_v31 }
 0x208   : > { %v387_v32 = vpop.xlane.xlu0 %386 }
 0x209   : > { %v388_v33 = vmul.f32 %v387_v32, %v381_v26 }
 0x20b   : > { %v389_v34 = vadd.f32 1e-05, %v388_v33 }
 0x20d   : > { %519 = vrsqrt.f32 %v389_v34  ;;  %vm396_vm4 = vweird.f32 %v389_v34 }
 0x213   : > { %v520_v35 = vpop.eup %519 }
 0x214   : > { %v391_v36 = vmul.f32 %v520_v35, %v389_v34  ;;  %vm397_vm3 = vweird.f32 %v520_v35 }
 0x215   : > { %vm398_vm5 = vmor %vm396_vm4, %vm397_vm3 }
 0x216   : > { %v392_v37 = vmul.f32 %v520_v35, %v391_v36 }
 0x218   : > { %v393_v38 = vmul.f32 0.5, %v392_v37 }
 0x21a   : > { %v394_v39 = vsub.f32 1.5, %v393_v38 }
 0x21c   : > { %v395_v40 = vmul.f32 %v520_v35, %v394_v39 }
 0x21e   : > { %v399_v42 = vsel %vm398_vm5, %v520_v35, %v395_v40 }
 0x21f   : > { %v400_v44 = vmul.f32 %v399_v42, %v383_v29 }
 0x221   : > { %v404_v45 = vmul.f32 %v515_v41, %v400_v44 }
 0x223   : > { %v408_v46 = vadd.f32 %v516_v43, %v404_v45 }
 0x225   : > { %409 = vst.msk [vmem:[%s273_s8] sm:$0xff] %vm297_vm0, %v408_v46 }
 0x226 PF: > { %s17_s24 = sadd.s32 1, %s527_s24  }
 0x227   : > { %p14_p4 = scmp.ge.s32.totalorder %s17_s24, 4  }
 0x229   :  { %16 = sbr.rel (!%p14_p4) target bundleno = 1 (0x1), region = 78 }

// kernel: transformer_seq2seq_forward.14
= control target key start
LH: loop header
LB: loop body
LE: loop exit
PB: predicated region body
PF: predicated region fallthrough
CT: control target
= control target key end

     0   :  { %14 = vsyncpa [#allocation3], 0  ;;  %s745_s30 = smov 0   ;;  %s811_s0 = inlined_call_operand.vmem [shape: f32[16,32], index: 0, kind: input, shape index: {}]   ;;  %s812_s1 = inlined_call_operand.vmem [shape: bf16[32,64], index: 1, kind: input, shape index: {}]   ;;  %s813_s2 = inlined_call_operand.vmem [shape: f32[1,64], index: 2, kind: input, shape index: {}]   ;;  %s814_s3 = inlined_call_operand.vmem [shape: bf16[64,32], index: 3, kind: input, shape index: {}]   ;;  %s815_s4 = inlined_call_operand.vmem [shape: f32[1,32], index: 4, kind: input, shape index: {}]   ;;  %s816_s5 = inlined_call_operand.vmem [shape: f32[1,32], index: 5, kind: input, shape index: {}]   ;;  %s817_s6 = inlined_call_operand.vmem [shape: f32[1,32], index: 6, kind: input, shape index: {}]   ;;  %s818_s7 = inlined_call_operand.vmem [shape: f32[1,32], index: 7, kind: input, shape index: {}]   ;;  %s819_s8 = inlined_call_operand.hbm [shape: f32[1,32], index: 8, kind: input, shape index: {}]   ;;  %s820_s9 = inlined_call_operand.vmem [shape: f32[16,32], index: 9, kind: output, shape index: {}]  }
   0x1 LB: > { %s576_s10 = sadd.s32 4294967295, %s691_s30   ;;  %p578_p0 = scmp.ge.s32.totalorder %s691_s30, 1  ;;  %s691_s30 = sphi %s745_s30, %s20_s30  }
   0x2   : > { %p245_p1 = scmp.lt.s32.totalorder %s691_s30, 3  ;;  %s278_s13 = sshll.u32 %s819_s8, 4  ;;  %s279_s13 = int_to_ptr.hbm [resolvable:$true] %s278_s13 }
   0x3   : > { %p627_p3 = scmp.eq.s32.totalorder %s576_s10, 0  ;;  %s693_s14 = smov [#allocation2]  }
   0x4   : > { %p246_p2 = pnand %p578_p0, %p245_p1  ;;  %s280_s15 = sshll.u32 %s693_s14, 4  ;;  %s281_s15 = int_to_ptr.vmem [resolvable:$true] %s280_s15 }
   0x6   : > { %p623_p4 = pneg %p246_p2  ;;  %300 = sbr.rel (%p246_p2) target bundleno = 819 (0x333), region = 56 }
   0x8   : > { %p624_p5 = pnand %p627_p3, %p623_p4 }
   0xa   : > { %626 = dma.hbm_to_vmem [thread:$0]  (!%p624_p5), %s279_s13, 16, %s281_s15, [#allocation3]  }
   0xb   : > { %686 = dma.done.wait (%p627_p3), [#allocation3], 16  }
   0xc   : > { %688 = vsyncadd (%p627_p3), [#allocation3], 4294967280  ;;  %p335_p6 = scmp.lt.s32.totalorder %s576_s10, 1  ;;  %v614_v0 = vld [vmem:[%s812_s1 + $0x8] sm:$0xff]  ;;  %v613_v1 = vld [vmem:[%s812_s1] sm:$0xff]  ;;  %vm366_vm0 = vcmask 261120  }
   0xd   : > { %v618_v3 = vld [vmem:[%s814_s3 + $0x18] sm:$0xff]  ;;  %376 = vmatpush.bf16.msra.mxu0 %v614_v0  ;;  %v617_v4 = vld [vmem:[%s814_s3 + $0x10] sm:$0xff]  ;;  %v616_v6 = vld [vmem:[%s814_s3 + $0x8] sm:$0xff]  ;;  %vm421_vm1 = vcmask 523264   ;;  %v694_v20 = vmov 32.0  }
   0xe   : > { %s822_s10 = smov (!%p335_p6, %s576_s10), 1  ;;  %429 = vmatpush.bf16.msra.mxu1 %v618_v3  ;;  %v615_v7 = vld [vmem:[%s814_s3] sm:$0xff]  ;;  %645 = vrcp.f32 %v694_v20 }
   0xf   : > { %s583_s16 = sshll.u32 %s822_s10, 3  ;;  %v639_v8 = vld [vmem:[%s813_s2] ss:$0 sm:$0xff] }
  0x10   : > { %s338_s19 = scalar_lea.vmem %s811_s0, %s583_s16  ;;  %v640_v14 = vld [vmem:[%s815_s4] ss:$0 sm:$0xff]  ;;  %s342_s26 = scalar_lea.vmem %s820_s9, %s583_s16 }
  0x11   : > { %v344_v2 = vld [vmem:[%s338_s19] sm:$0xff]  ;;  %377 = vmatpush.bf16.msra.mxu0 %v613_v1 }
  0x12   : > { %v345_v5 = vpack.c.bf16 %v344_v2, %v344_v2  ;;  %430 = vmatpush.bf16.msra.mxu1 %v617_v4  ;;  %v641_v41 = vld [vmem:[%s816_s5] ss:$0 sm:$0xff] }
  0x13   : > { %v642_v44 = vld [vmem:[%s817_s6] ss:$0 sm:$0xff] }
  0x14   : > { %593 = vmatmul.msk.bf16.vlgmr.msra.gmra.mxu0 %vm366_vm0, %v345_v5  ;;  %v646_v21 = vpop.eup %645  ;;  %v643_v62 = vld [vmem:[%s818_s7] ss:$0 sm:$0xff] }
  0x15   : > { %v445_v22 = vmul.f32 32.0, %v646_v21  ;;  %vm449_vm2 = vweird.f32 %v646_v21  ;;  %v644_v0 = vld [vmem:[#allocation2] ss:$0 sm:$0xff] }
  0x16   : > { %431 = vmatpush.bf16.msra.mxu1 %v616_v6 }
  0x17   : > { %v446_v23 = vsub.f32 1.0, %v445_v22 }
  0x19   : > { %v447_v24 = vmul.f32 %v646_v21, %v446_v23 }
  0x1a   : > { %432 = vmatpush.bf16.msra.mxu1 %v615_v7 }
  0x1b   : > { %v448_v25 = vadd.f32 %v646_v21, %v447_v24 }
  0x1d   : > { %v450_v26 = vsel %vm449_vm2, %v646_v21, %v448_v25 }
  0x91   : > { %v379_v9 = vpop.f32.mrf.mxu0 }
  0x92   : > { %v380_v10 = vadd.f32 %v639_v8, %v379_v9 }
  0x94   : > { %v383_v11 = vmax.f32 %v380_v10, 0.0 }
  0x96   : > { %v384_v12 = vpack.c.bf16 %v383_v11, %v383_v11 }
  0x98   : > { %610 = vmatmul.msk.bf16.vlgmr.msra.gmra.mxu1 %vm421_vm1, %v384_v12 }
  0x99   : > { %v381_v13 = vpop.f32.mrf.mxu0 }
 0x115   : > { %v434_v15 = vpop.f32.mrf.mxu1 }
 0x116   : > { %v435_v16 = vadd.f32 %v640_v14, %v434_v15 }
 0x118   : > { %v438_v17 = vadd.f32 %v435_v16, %v344_v2 }
 0x11a   : > { %v441_v18 = vsel %vm366_vm0, %v438_v17, 0.0 }
 0x11b   : > { %442 = vadd.xlane.f32.xlu0 %v441_v18 }
 0x11d   : > { %v436_v19 = vpop.f32.mrf.mxu1 }
 0x18e   : > { %v443_v27 = vpop.xlane.xlu0 %442 }
 0x18f   : > { %v451_v28 = vmul.f32 %v450_v26, %v443_v27 }
 0x191   : > { %v452_v29 = vsub.f32 %v438_v17, %v451_v28 }
 0x193   : > { %v453_v30 = vmul.f32 %v452_v29, %v452_v29 }
 0x195   : > { %v454_v31 = vsel %vm366_vm0, %v453_v30, 0.0 }
 0x196   : > { %455 = vadd.xlane.f32.xlu0 %v454_v31 }
 0x209   : > { %v456_v32 = vpop.xlane.xlu0 %455 }
 0x20a   : > { %v457_v33 = vmul.f32 %v456_v32, %v450_v26 }
 0x20c   : > { %v458_v34 = vadd.f32 1e-05, %v457_v33 }
 0x20e   : > { %647 = vrsqrt.f32 %v458_v34  ;;  %vm465_vm4 = vweird.f32 %v458_v34 }
 0x214   : > { %v648_v35 = vpop.eup %647 }
 0x215   : > { %v460_v36 = vmul.f32 %v648_v35, %v458_v34  ;;  %vm466_vm3 = vweird.f32 %v648_v35 }
 0x216   : > { %vm467_vm5 = vmor %vm465_vm4, %vm466_vm3 }
 0x217   : > { %v461_v37 = vmul.f32 %v648_v35, %v460_v36 }
 0x219   : > { %v462_v38 = vmul.f32 0.5, %v461_v37 }
 0x21b   : > { %v463_v39 = vsub.f32 1.5, %v462_v38 }
 0x21d   : > { %v464_v40 = vmul.f32 %v648_v35, %v463_v39 }
 0x21f   : > { %v468_v42 = vsel %vm467_vm5, %v648_v35, %v464_v40 }
 0x220   : > { %v469_v43 = vmul.f32 %v468_v42, %v452_v29 }
 0x222   : > { %v473_v45 = vmul.f32 %v641_v41, %v469_v43 }
 0x224   : > { %v477_v46 = vadd.f32 %v642_v44, %v473_v45 }
 0x226   : > { %v480_v47 = vsel %vm366_vm0, %v477_v46, 0.0 }
 0x227   : > { %481 = vadd.xlane.f32.xlu1 %v480_v47 }
 0x29a   : > { %v482_v48 = vpop.xlane.xlu1 %481 }
 0x29b   : > { %v483_v49 = vmul.f32 %v482_v48, %v450_v26 }
 0x29d   : > { %v484_v50 = vsub.f32 %v477_v46, %v483_v49 }
 0x29f   : > { %v485_v51 = vmul.f32 %v484_v50, %v484_v50 }
 0x2a1   : > { %v486_v52 = vsel %vm366_vm0, %v485_v51, 0.0 }
 0x2a2   : > { %487 = vadd.xlane.f32.xlu1 %v486_v52 }
 0x315   : > { %v488_v53 = vpop.xlane.xlu1 %487 }
 0x316   : > { %v489_v54 = vmul.f32 %v488_v53, %v450_v26 }
 0x318   : > { %v490_v55 = vadd.f32 1e-05, %v489_v54 }
 0x31a   : > { %649 = vrsqrt.f32 %v490_v55  ;;  %vm497_vm7 = vweird.f32 %v490_v55 }
 0x320   : > { %v650_v56 = vpop.eup %649 }
 0x321   : > { %v492_v57 = vmul.f32 %v650_v56, %v490_v55  ;;  %vm498_vm6 = vweird.f32 %v650_v56 }
 0x322   : > { %vm499_vm8 = vmor %vm497_vm7, %vm498_vm6 }
 0x323   : > { %v493_v58 = vmul.f32 %v650_v56, %v492_v57 }
 0x325   : > { %v494_v59 = vmul.f32 0.5, %v493_v58 }
 0x327   : > { %v495_v60 = vsub.f32 1.5, %v494_v59 }
 0x329   : > { %v496_v61 = vmul.f32 %v650_v56, %v495_v60 }
 0x32b   : > { %v500_v63 = vsel %vm499_vm8, %v650_v56, %v496_v61 }
 0x32c   : > { %v501_v1 = vmul.f32 %v500_v63, %v484_v50 }
 0x32e   : > { %v505_v2 = vmul.f32 %v643_v62, %v501_v1 }
 0x330   : > { %v509_v3 = vadd.f32 %v644_v0, %v505_v2 }
 0x332   : > { %510 = vst.msk [vmem:[%s342_s26] sm:$0xff] %vm366_vm0, %v509_v3 }
 0x333 PF: > { %s20_s30 = sadd.s32 1, %s691_s30  }
 0x334   : > { %p17_p7 = scmp.ge.s32.totalorder %s20_s30, 4  }
 0x336   :  { %19 = sbr.rel (!%p17_p7) target bundleno = 1 (0x1), region = 91 }
 0x33b   :  { %530 = vsyncpa [#allocation3], 1 }
 0x33c   :  { %532 = vsyncpa [#allocation3 + $0x1], 1 }

// kernel: transformer_seq2seq_forward.15
= control target key start
LH: loop header
LB: loop body
LE: loop exit
PB: predicated region body
PF: predicated region fallthrough
CT: control target
= control target key end

     0   :  { %14 = vsyncpa [#allocation5], 0  ;;  %s1619_s0 = inlined_call_operand.vmem [shape: f32[2,8,32], index: 0, kind: input, shape index: {}]   ;;  %s1620_s1 = inlined_call_operand.vmem [shape: bf16[32,32], index: 1, kind: input, shape index: {}]   ;;  %s1621_s2 = inlined_call_operand.hbm [shape: f32[1,32], index: 2, kind: input, shape index: {}]   ;;  %s1622_s3 = inlined_call_operand.vmem [shape: bf16[32,64], index: 3, kind: input, shape index: {}]   ;;  %s1623_s4 = inlined_call_operand.hbm [shape: f32[1,64], index: 4, kind: input, shape index: {}]   ;;  %s1624_s5 = inlined_call_operand.vmem [shape: bf16[32,32], index: 5, kind: input, shape index: {}]   ;;  %s1625_s6 = inlined_call_operand.hbm [shape: f32[1,32], index: 6, kind: input, shape index: {}]   ;;  %s1626_s7 = inlined_call_operand.hbm [shape: f32[1,32], index: 7, kind: input, shape index: {}]   ;;  %s1627_s8 = inlined_call_operand.hbm [shape: f32[1,32], index: 8, kind: input, shape index: {}]   ;;  %s1628_s9 = inlined_call_operand.vmem [shape: f32[2,8,32], index: 9, kind: output, shape index: {}]  }
   0x1   :  { %15 = vsyncpa [#allocation7], 0 }
   0x2   :  { %16 = vsyncpa [#allocation10], 0  ;;  %s1435_s30 = smov 0   ;;  %s1437_s10 = smov 0  }
   0x3   :  { %s1439_s11 = smov 0  }
   0x4 LB: > { %s291_s14 = sshll.u32 %s1623_s4, 4  ;;  %s1025_s15 = sadd.s32 4294967295, %s1370_s11   ;;  %s1370_s11 = sphi %s1439_s11, %s22_s11   ;;  %s1366_s10 = sphi %s1437_s10, %s1633_s10   ;;  %s1362_s30 = sphi %s1435_s30, %s1632_s30   ;;  %s292_s14 = int_to_ptr.hbm [resolvable:$true] %s291_s14 }
   0x5   : > { %p1027_p0 = scmp.ge.s32.totalorder %s1370_s11, 1  ;;  %p261_p1 = scmp.lt.s32.totalorder %s1370_s11, 3 }
   0x6   : > { %p1456_p2 = scmp.eq.s32.totalorder %s1025_s15, 0  ;;  %s1372_s18 = smov [#allocation6]  }
   0x7   : > { %p1460_p3 = pnand %p1027_p0, %p261_p1  ;;  %s293_s19 = sshll.u32 %s1372_s18, 4  ;;  %s294_s19 = int_to_ptr.vmem [resolvable:$true] %s293_s19 }
   0x8   : > { %s318_s22 = sshll.u32 %s1626_s7, 4  ;;  %s1373_s24 = smov [#allocation9]   ;;  %s319_s22 = int_to_ptr.hbm [resolvable:$true] %s318_s22 }
   0x9   : > { %p1098_p4 = pneg %p1460_p3  ;;  %s320_s25 = sshll.u32 %s1373_s24, 4  ;;  %s321_s25 = int_to_ptr.vmem [resolvable:$true] %s320_s25 }
   0xa   : > { %s34_s26 = sadd.s32 1, %s1366_s10  ;;  %s276_s29 = sshll.u32 %s1621_s2, 4  ;;  %s277_s29 = int_to_ptr.hbm [resolvable:$true] %s276_s29 }
   0xb   : > { %p1471_p5 = pnand %p1456_p2, %p1098_p4  ;;  %p36_p6 = scmp.ge.s32.totalorder %s34_s26, 2 }
   0xc   : > { %s1374_s12 = smov [#allocation4]   ;;  %s306_s20 = sshll.u32 %s1625_s6, 4  ;;  %s307_s20 = int_to_ptr.hbm [resolvable:$true] %s306_s20 }
   0xd   : > { %1104 = dma.hbm_to_vmem [thread:$0]  (!%p1471_p5), %s292_s14, 16, %s294_s19, [#allocation7]  }
   0xe   : > { %1110 = dma.hbm_to_vmem [thread:$0]  (!%p1471_p5), %s319_s22, 16, %s321_s25, [#allocation10]  }
   0xf   : > { %s1635_s26 = smov (%p36_p6, %s34_s26), 0  ;;  %s278_s13 = sshll.u32 %s1374_s12, 4  ;;  %s279_s13 = int_to_ptr.vmem [resolvable:$true] %s278_s13 }
  0x10   : > { %1101 = dma.hbm_to_vmem [thread:$0]  (!%p1471_p5), %s277_s29, 16, %s279_s13, [#allocation5]  }
  0x11   : > { %s330_s21 = sshll.u32 %s1627_s8, 4  ;;  %s1375_s22 = smov [#allocation8]   ;;  %s331_s21 = int_to_ptr.hbm [resolvable:$true] %s330_s21 }
  0x12   : > { %s308_s24 = sshll.u32 %s1375_s22, 4  ;;  %s1376_s25 = smov [#allocation11]   ;;  %s309_s24 = int_to_ptr.vmem [resolvable:$true] %s308_s24 }
  0x13   : > { %1107 = dma.hbm_to_vmem [thread:$0]  (!%p1471_p5), %s307_s20, 16, %s309_s24, [#allocation7]  }
  0x14   : > { %s332_s27 = sshll.u32 %s1376_s25, 4  ;;  %352 = sbr.rel (%p1460_p3) target bundleno = 1415 (0x587), region = 56  ;;  %s333_s27 = int_to_ptr.vmem [resolvable:$true] %s332_s27 }
  0x15   : > { %1113 = dma.hbm_to_vmem [thread:$0]  (!%p1471_p5), %s331_s21, 16, %s333_s27, [#allocation10]  }
  0x19   : > { %1349 = dma.done.wait (%p1456_p2), [#allocation5], 16  }
  0x1a   : > { %1351 = vsyncadd (%p1456_p2), [#allocation5], 4294967280 }
  0x1b   : > { %1353 = dma.done.wait (%p1456_p2), [#allocation7], 32  }
  0x1c   : > { %1355 = vsyncadd (%p1456_p2), [#allocation7], 4294967264 }
  0x1d   : > { %1357 = dma.done.wait (%p1456_p2), [#allocation10], 32  }
  0x1e   : > { %1359 = vsyncadd (%p1456_p2), [#allocation10], 4294967264  ;;  %p410_p7 = scmp.lt.s32.totalorder %s1362_s30, 1  ;;  %v1075_v0 = vld [vmem:[%s1622_s3 + $0x8] sm:$0xff]  ;;  %v1074_v2 = vld [vmem:[%s1622_s3] sm:$0xff]  ;;  %vm448_vm0 = vcmask 261120  }
  0x1f   : > { %v1077_v1 = vld [vmem:[%s1620_s1 + $0x8] sm:$0xff]  ;;  %458 = vmatpush.bf16.msra.mxu0 %v1075_v0  ;;  %v1076_v4 = vld [vmem:[%s1620_s1] sm:$0xff]  ;;  %vm466_vm1 = vcmask 60416   ;;  %s1377_s21 = smov 104   ;;  %s1378_s22 = smov 120   ;;  %vm548_vm2 = vcmask 64512  }
  0x20   : > { %s1637_s30 = smov (!%p410_p7, %s1362_s30), 1  ;;  %537 = vmatpush.bf16.msra.mxu1 %v1077_v1  ;;  %v1161_v6 = vld [vmem:[#allocation6] ss:$0 sm:$0xff]  ;;  %v1162_v11 = vld [vmem:[#allocation4] ss:$0 sm:$0xff]  ;;  %s1379_s24 = smov 112  }
  0x21   : > { %s1040_s17 = sshll.u32 %s1637_s30, 3  ;;  %vm581_vm3 = vcmask 1043456   ;;  %v601_v19 = vld [vmem:[%s1624_s5] sm:$0xf]  ;;  %s1380_s23 = smov 96  }
  0x22   : > { %s413_s29 = scalar_lea.vmem %s1619_s0, %s1040_s17  ;;  %v684_v20 = vsel %vm581_vm3, %v601_v19, 0  ;;  %s1381_s28 = smov 88  }
  0x23   : > { %v1530_v3 = vld [vmem:[%s413_s29] sm:$0xff]  ;;  %459 = vmatpush.bf16.msra.mxu0 %v1074_v2  ;;  %s1382_s29 = smov 72   ;;  %s1383_s12 = smov 80  }
  0x24   : > { %v427_v5 = vpack.c.bf16 %v1530_v3, %v1530_v3  ;;  %538 = vmatpush.bf16.msra.mxu1 %v1076_v4 }
  0x26   : > { %1050 = vmatmul.msk.bf16.vlgmr.msra.gmra.mxu0 %vm448_vm0, %v427_v5 }
  0x27   : > { %1059 = vmatmul.msk.bf16.vlgmr.msra.gmra.mxu1 %vm448_vm0, %v427_v5 }
  0xa3   : > { %v461_v7 = vpop.f32.mrf.mxu0 }
  0xa4   : > { %v540_v8 = vpop.f32.mrf.mxu1  ;;  %v462_v9 = vadd.f32 %v1161_v6, %v461_v7 }
  0xa5   : > { %v541_v14 = vadd.f32 %v1162_v11, %v540_v8 }
  0xa6   : > { %v1539_v10 = vpack.c.bf16 %v462_v9, %v462_v9 }
  0xa7   : > { %v544_v16 = vmul.f32 0.35355338, %v541_v14 }
  0xa8   : > { %493 = vrot.lane.b32.xlu2 %v1539_v10, %s1377_s21  ;;  %473 = vrot.lane.b32.xlu1 %v1539_v10, %s1378_s22  ;;  %467 = vst.msk [vmem:[#allocation2] sm:$0xf] %vm466_vm1, %v1539_v10 }
  0xa9   : > { %v545_v18 = vpack.c.bf16 %v544_v16, %v544_v16 }
  0xab   : > { %v463_v12 = vpop.f32.mrf.mxu0 }
  0xac   : > { %v542_v13 = vpop.f32.mrf.mxu1 }
  0xaf   : > { %v546_v15 = vld [vmem:[#allocation2] sm:$0xf] }
  0xb0   : > { %483 = vrot.lane.b32.xlu2 %v1539_v10, %s1379_s24  ;;  %v553_v17 = vsel %vm548_vm2, %v546_v15, 0 }
  0xb1   : > { %562 = vmatpush.bf16.xpose.msra.mxu2 %v553_v17 }
  0xb8   : > { %607 = vrot.lane.b32.xlu2 %v545_v18, %s1378_s22  ;;  %1060 = vmatmul.msk.bf16.vlgmr.msra.gmra.mxu2 %vm548_vm2, %v545_v18  ;;  %s420_s22 = scalar_lea.vmem %s1628_s9, %s1040_s17 }
  0xb9   : > { %693 = vmatpush.bf16.msrb.mxu2 %v684_v20  ;;  %v660_v20 = vld [vmem:[%s1624_s5 + $0x4] sm:$0xf] }
  0xc0   : > { %781 = vrot.lane.b32.xlu2 %v545_v18, %s1377_s21 }
 0x102   : > { %v494_v21 = vpop.permute.xlu2 %493 }
 0x103   : > { %497 = vst.msk [vmem:[#allocation2 + $0xc] sm:$0xf] %vm466_vm1, %v494_v21  ;;  %v665_v21 = vsel %vm581_vm3, %v660_v20, 0  ;;  %v1164_v20 = vld [vmem:[#allocation9] ss:$0 sm:$0xff] }
 0x104   : > { %674 = vmatpush.bf16.msrb.mxu1 %v665_v21 }
 0x10a   : > { %v484_v22 = vpop.permute.xlu2 %483  ;;  %v778_v23 = vld [vmem:[#allocation2 + $0xc] sm:$0xf] }
 0x10b   : > { %487 = vst.msk [vmem:[#allocation2 + $0x8] sm:$0xf] %vm466_vm1, %v484_v22  ;;  %v787_v24 = vsel %vm548_vm2, %v778_v23, 0  ;;  %v756_v22 = vld [vmem:[%s1624_s5 + $0x8] sm:$0xf] }
 0x10c   : > { %796 = vmatpush.bf16.xpose.msra.mxu2 %v787_v24  ;;  %v761_v23 = vsel %vm581_vm3, %v756_v22, 0  ;;  %v1165_v22 = vld [vmem:[#allocation11] ss:$0 sm:$0xff] }
 0x10d   : > { %770 = vmatpush.bf16.msra.mxu1 %v761_v23 }
 0x112   : > { %v700_v40 = vld [vmem:[#allocation2 + $0x8] sm:$0xf]  ;;  %v608_v46 = vpop.permute.xlu2 %607 }
 0x113   : > { %v709_v42 = vsel %vm548_vm2, %v700_v40, 0 }
 0x11a   : > { %v474_v25 = vpop.permute.xlu1 %473  ;;  %v782_v61 = vpop.permute.xlu2 %781 }
 0x11b   : > { %477 = vst.msk [vmem:[#allocation2 + $0x4] sm:$0xf] %vm466_vm1, %v474_v25 }
 0x122   : > { %v603_v35 = vld [vmem:[#allocation2 + $0x4] sm:$0xf] }
 0x123   : > { %v613_v39 = vsel %vm548_vm2, %v603_v35, 0 }
 0x13b   : > { %v564_v26 = vpop.f32.mrf.mxu2 }
 0x13c   : > { %v568_v27 = vsel %vm548_vm2, %v564_v26, -inf }
 0x13d   : > { %569 = vmax.xlane.f32.xlu0 %v568_v27 }
 0x143   : > { %v566_v28 = vpop.f32.mrf.mxu2 }
 0x151   : > { %469 = vrot.lane.b32.xlu0 %v1539_v10, %s1380_s23 }
 0x159   : > { %703 = vrot.lane.b32.xlu0 %v545_v18, %s1379_s24 }
 0x161   : > { %478 = vrot.lane.b32.xlu0 %v1539_v10, %s1381_s28 }
 0x1b0   : > { %v570_v29 = vpop.xlane.xlu0 %569 }
 0x1b1   : > { %v571_v30 = vsub.f32 %v564_v26, %v570_v29 }
 0x1b3   : > { %v572_v31 = vmul.f32 1.442695, %v571_v30 }
 0x1b5   : > { %1166 = vpow2.f32 %v572_v31 }
 0x1bb   : > { %v1167_v32 = vpop.eup %1166 }
 0x1bc   : > { %v574_v33 = vsel %vm548_vm2, %v1167_v32, 0.0  ;;  %v577_v41 = vpack.c.bf16 %v1167_v32, %v1167_v32 }
 0x1bd   : > { %575 = vadd.xlane.f32.xlu1 %v574_v33 }
 0x1c3   : > { %v470_v34 = vpop.permute.xlu0 %469 }
 0x1c4   : > { %472 = vst.msk [vmem:[#allocation3] sm:$0xf] %vm466_vm1, %v470_v34 }
 0x1cb   : > { %v704_v36 = vpop.permute.xlu0 %703  ;;  %v547_v37 = vld [vmem:[#allocation3] sm:$0xf] }
 0x1cc   : > { %v583_v38 = vsel %vm581_vm3, %v547_v37, 0 }
 0x1cd   : > { %592 = vmatpush.bf16.msra.mxu3 %v583_v38 }
 0x1d0   : > { %1061 = vmatmul.msk.bf16.vlgmr.msra.gmra.mxu3 %vm548_vm2, %v577_v41 }
 0x1d1   : > { %622 = vmatpush.bf16.xpose.msrb.mxu3 %v613_v39 }
 0x1d3   : > { %v479_v43 = vpop.permute.xlu0 %478 }
 0x1d4   : > { %482 = vst.msk [vmem:[#allocation3 + $0x4] sm:$0xf] %vm466_vm1, %v479_v43 }
 0x1d6   : > { %498 = vrot.lane.b32.xlu1 %v1539_v10, %s1382_s29 }
 0x1d9   : > { %718 = vmatpush.bf16.xpose.msra.mxu3 %v709_v42  ;;  %v834_v42 = vld [vmem:[%s1624_s5 + $0xc] sm:$0xf] }
 0x1da   : > { %v839_v43 = vsel %vm581_vm3, %v834_v42, 0 }
 0x1db   : > { %v605_v44 = vld [vmem:[#allocation3 + $0x4] sm:$0xf] }
 0x1dc   : > { %v642_v45 = vsel %vm581_vm3, %v605_v44, 0 }
 0x1dd   : > { %651 = vmatpush.bf16.msrb.mxu0 %v642_v45 }
 0x1de   : > { %488 = vrot.lane.b32.xlu1 %v1539_v10, %s1383_s12 }
 0x1e0   : > { %1062 = vmatmul.msk.bf16.vlgmr.msrb.gmra.mxu3 %vm548_vm2, %v608_v46 }
 0x1f0   : > { %1066 = vmatmul.msk.bf16.vlgmr.msra.gmra.mxu3 %vm548_vm2, %v704_v36 }
 0x230   : > { %v576_v47 = vpop.xlane.xlu1 %575 }
 0x231   : > { %1168 = vrcp.f32 %v576_v47 }
 0x237   : > { %v1169_v52 = vpop.eup %1168 }
 0x248   : > { %v499_v48 = vpop.permute.xlu1 %498 }
 0x249   : > { %502 = vst.msk [vmem:[#allocation3 + $0xc] sm:$0xf] %vm466_vm1, %v499_v48 }
 0x250   : > { %v489_v49 = vpop.permute.xlu1 %488  ;;  %v780_v50 = vld [vmem:[#allocation3 + $0xc] sm:$0xf] }
 0x251   : > { %492 = vst.msk [vmem:[#allocation3 + $0x8] sm:$0xf] %vm466_vm1, %v489_v49  ;;  %v816_v51 = vsel %vm581_vm3, %v780_v50, 0 }
 0x252   : > { %825 = vmatpush.bf16.msrb.mxu3 %v816_v51 }
 0x253   : > { %v594_v53 = vpop.f32.mrf.mxu3 }
 0x254   : > { %v599_v54 = vmul.f32 %v1169_v52, %v594_v53 }
 0x256   : > { %v600_v55 = vpack.c.bf16 %v599_v54, %v599_v54 }
 0x258   : > { %1065 = vmatmul.msk.bf16.vlgmr.msrb.gmra.mxu2 %vm548_vm2, %v600_v55  ;;  %v702_v56 = vld [vmem:[#allocation3 + $0x8] sm:$0xf] }
 0x259   : > { %v738_v57 = vsel %vm581_vm3, %v702_v56, 0 }
 0x25a   : > { %747 = vmatpush.bf16.msra.mxu0 %v738_v57 }
 0x25b   : > { %v596_v58 = vpop.f32.mrf.mxu3 }
 0x25c   : > { %v1163_v58 = vld [vmem:[#allocation8] ss:$0 sm:$0xff] }
 0x263   : > { %v624_v59 = vpop.f32.mrf.mxu3 }
 0x264   : > { %v628_v60 = vsel %vm548_vm2, %v624_v59, -inf }
 0x265   : > { %629 = vmax.xlane.f32.xlu2 %v628_v60 }
 0x268   : > { %1069 = vmatmul.msk.bf16.vlgmr.msra.gmra.mxu2 %vm548_vm2, %v782_v61 }
 0x26b   : > { %v626_v62 = vpop.f32.mrf.mxu3 }
 0x273   : > { %v720_v63 = vpop.f32.mrf.mxu3 }
 0x274   : > { %v724_v0 = vsel %vm548_vm2, %v720_v63, -inf }
 0x275   : > { %725 = vmax.xlane.f32.xlu2 %v724_v0 }
 0x27b   : > { %v722_v1 = vpop.f32.mrf.mxu3 }
 0x2d8   : > { %v630_v2 = vpop.xlane.xlu2 %629 }
 0x2d9   : > { %v631_v4 = vsub.f32 %v624_v59, %v630_v2 }
 0x2db   : > { %v632_v5 = vmul.f32 1.442695, %v631_v4  ;;  %v695_v6 = vpop.f32.mrf.mxu2 }
 0x2dd   : > { %1170 = vpow2.f32 %v632_v5 }
 0x2e3   : > { %v1171_v7 = vpop.eup %1170  ;;  %v697_v8 = vpop.f32.mrf.mxu2 }
 0x2e4   : > { %v634_v9 = vsel %vm548_vm2, %v1171_v7, 0.0  ;;  %v637_v10 = vpack.c.bf16 %v1171_v7, %v1171_v7 }
 0x2e5   : > { %635 = vadd.xlane.f32.xlu2 %v634_v9 }
 0x2e6   : > { %1063 = vmatmul.msk.bf16.vlgmr.msrb.gmra.mxu0 %vm548_vm2, %v637_v10 }
 0x2e7   : > { %848 = vmatpush.bf16.msrb.mxu0 %v839_v43 }
 0x2e8   : > { %v726_v11 = vpop.xlane.xlu2 %725 }
 0x2e9   : > { %v727_v12 = vsub.f32 %v720_v63, %v726_v11  ;;  %v1384_v63 = vmov 32.0  }
 0x2eb   : > { %v728_v13 = vmul.f32 1.442695, %v727_v12  ;;  %v798_v14 = vpop.f32.mrf.mxu2 }
 0x2ec   : > { %v802_v15 = vsel %vm548_vm2, %v798_v14, -inf }
 0x2ed   : > { %1172 = vpow2.f32 %v728_v13  ;;  %803 = vmax.xlane.f32.xlu0 %v802_v15 }
 0x2f3   : > { %v1173_v16 = vpop.eup %1172  ;;  %v800_v17 = vpop.f32.mrf.mxu2 }
 0x2f4   : > { %v733_v18 = vpack.c.bf16 %v1173_v16, %v1173_v16  ;;  %v730_v19 = vsel %vm548_vm2, %v1173_v16, 0.0 }
 0x2f5   : > { %731 = vadd.xlane.f32.xlu1 %v730_v19 }
 0x2f6   : > { %1067 = vmatmul.msk.bf16.vlgmr.msra.gmra.mxu0 %vm548_vm2, %v733_v18 }
 0x358   : > { %v636_v24 = vpop.xlane.xlu2 %635 }
 0x359   : > { %1174 = vrcp.f32 %v636_v24 }
 0x35f   : > { %v1175_v27 = vpop.eup %1174 }
 0x360   : > { %v804_v25 = vpop.xlane.xlu0 %803 }
 0x361   : > { %v805_v26 = vsub.f32 %v798_v14, %v804_v25 }
 0x363   : > { %v806_v28 = vmul.f32 1.442695, %v805_v26  ;;  %v653_v29 = vpop.f32.mrf.mxu0 }
 0x364   : > { %v658_v30 = vmul.f32 %v1175_v27, %v653_v29 }
 0x365   : > { %1176 = vpow2.f32 %v806_v28 }
 0x366   : > { %v659_v31 = vpack.c.bf16 %v658_v30, %v658_v30 }
 0x368   : > { %1064 = vmatmul.msk.bf16.vlgmr.msrb.gmra.mxu1 %vm548_vm2, %v659_v31  ;;  %v732_v32 = vpop.xlane.xlu1 %731 }
 0x369   : > { %1178 = vrcp.f32 %v732_v32 }
 0x36b   : > { %v1177_v33 = vpop.eup %1176  ;;  %v655_v34 = vpop.f32.mrf.mxu0 }
 0x36c   : > { %v811_v35 = vpack.c.bf16 %v1177_v33, %v1177_v33  ;;  %v808_v36 = vsel %vm548_vm2, %v1177_v33, 0.0 }
 0x36d   : > { %809 = vadd.xlane.f32.xlu0 %v808_v36 }
 0x36e   : > { %1070 = vmatmul.msk.bf16.vlgmr.msrb.gmra.mxu3 %vm548_vm2, %v811_v35 }
 0x36f   : > { %v1179_v37 = vpop.eup %1178 }
 0x373   : > { %v749_v38 = vpop.f32.mrf.mxu0 }
 0x374   : > { %v754_v39 = vmul.f32 %v1179_v37, %v749_v38 }
 0x376   : > { %v755_v40 = vpack.c.bf16 %v754_v39, %v754_v39 }
 0x378   : > { %1068 = vmatmul.msk.bf16.vlgmr.msra.gmra.mxu1 %vm548_vm2, %v755_v40 }
 0x37b   : > { %v751_v41 = vpop.f32.mrf.mxu0 }
 0x3e0   : > { %v810_v45 = vpop.xlane.xlu0 %809 }
 0x3e1   : > { %1180 = vrcp.f32 %v810_v45 }
 0x3e2   : > { %1182 = vrcp.f32 %v1384_v63 }
 0x3e5   : > { %v676_v44 = vpop.f32.mrf.mxu1 }
 0x3e6   : > { %v696_v50 = vadd.f32 %v695_v6, %v676_v44 }
 0x3e7   : > { %v1181_v47 = vpop.eup %1180 }
 0x3e8   : > { %v1183_v0 = vpop.eup %1182 }
 0x3e9   : > { %v867_v1 = vmul.f32 32.0, %v1183_v0  ;;  %vm871_vm4 = vweird.f32 %v1183_v0 }
 0x3eb   : > { %v868_v2 = vsub.f32 1.0, %v867_v1 }
 0x3ed   : > { %v678_v46 = vpop.f32.mrf.mxu1  ;;  %v869_v4 = vmul.f32 %v1183_v0, %v868_v2 }
 0x3ef   : > { %v870_v5 = vadd.f32 %v1183_v0, %v869_v4 }
 0x3f1   : > { %v827_v48 = vpop.f32.mrf.mxu3  ;;  %v872_v6 = vsel %vm871_vm4, %v1183_v0, %v870_v5 }
 0x3f2   : > { %v832_v49 = vmul.f32 %v1181_v47, %v827_v48 }
 0x3f4   : > { %v833_v51 = vpack.c.bf16 %v832_v49, %v832_v49 }
 0x3f5   : > { %v772_v52 = vpop.f32.mrf.mxu1 }
 0x3f6   : > { %v776_v53 = vadd.f32 %v772_v52, %v696_v50  ;;  %1071 = vmatmul.msk.bf16.vlgmr.msrb.gmra.mxu0 %vm548_vm2, %v833_v51 }
 0x3f9   : > { %v829_v54 = vpop.f32.mrf.mxu3 }
 0x3fd   : > { %v774_v55 = vpop.f32.mrf.mxu1 }
 0x473   : > { %v850_v56 = vpop.f32.mrf.mxu0 }
 0x474   : > { %v854_v57 = vadd.f32 %v850_v56, %v776_v53 }
 0x476   : > { %v855_v59 = vadd.f32 %v854_v57, %v1530_v3 }
 0x478   : > { %v860_v60 = vadd.f32 %v1163_v58, %v855_v59 }
 0x47a   : > { %v863_v61 = vsel %vm448_vm0, %v860_v60, 0.0 }
 0x47b   : > { %v852_v62 = vpop.f32.mrf.mxu0  ;;  %864 = vadd.xlane.f32.xlu2 %v863_v61 }
 0x4ee   : > { %v865_v7 = vpop.xlane.xlu2 %864 }
 0x4ef   : > { %v873_v8 = vmul.f32 %v872_v6, %v865_v7 }
 0x4f1   : > { %v874_v9 = vsub.f32 %v860_v60, %v873_v8 }
 0x4f3   : > { %v875_v10 = vmul.f32 %v874_v9, %v874_v9 }
 0x4f5   : > { %v876_v3 = vsel %vm448_vm0, %v875_v10, 0.0 }
 0x4f6   : > { %877 = vadd.xlane.f32.xlu0 %v876_v3 }
 0x569   : > { %v878_v11 = vpop.xlane.xlu0 %877 }
 0x56a   : > { %v879_v12 = vmul.f32 %v878_v11, %v872_v6 }
 0x56c   : > { %v880_v13 = vadd.f32 1e-05, %v879_v12 }
 0x56e   : > { %1184 = vrsqrt.f32 %v880_v13  ;;  %vm887_vm6 = vweird.f32 %v880_v13 }
 0x574   : > { %v1185_v14 = vpop.eup %1184 }
 0x575   : > { %v882_v15 = vmul.f32 %v1185_v14, %v880_v13  ;;  %vm888_vm5 = vweird.f32 %v1185_v14 }
 0x576   : > { %vm889_vm7 = vmor %vm887_vm6, %vm888_vm5 }
 0x577   : > { %v883_v16 = vmul.f32 %v1185_v14, %v882_v15 }
 0x579   : > { %v884_v17 = vmul.f32 0.5, %v883_v16 }
 0x57b   : > { %v885_v18 = vsub.f32 1.5, %v884_v17 }
 0x57d   : > { %v886_v19 = vmul.f32 %v1185_v14, %v885_v18 }
 0x57f   : > { %v890_v21 = vsel %vm889_vm7, %v1185_v14, %v886_v19 }
 0x580   : > { %v891_v23 = vmul.f32 %v890_v21, %v874_v9 }
 0x582   : > { %v895_v24 = vmul.f32 %v1164_v20, %v891_v23 }
 0x584   : > { %v899_v25 = vadd.f32 %v1165_v22, %v895_v24 }
 0x586   : > { %900 = vst.msk [vmem:[%s420_s22] sm:$0xff] %vm448_vm0, %v899_v25 }
 0x587 PF: > { %s22_s11 = sadd.s32 1, %s1370_s11   ;;  %s1632_s30 = smov %s1366_s10 }
 0x588   : > { %p19_p8 = scmp.ge.s32.totalorder %s22_s11, 4   ;;  %s1633_s10 = smov %s1635_s26 }
 0x58a   :  { %21 = sbr.rel (!%p19_p8) target bundleno = 4 (0x4), region = 124 }
 0x58f   :  { %926 = vsyncpa [#allocation5], 1 }
 0x590   :  { %928 = vsyncpa [#allocation5 + $0x1], 1 }
 0x591   :  { %929 = vsyncpa [#allocation7], 1 }
 0x592   :  { %930 = vsyncpa [#allocation10], 1 }

// kernel: transformer_seq2seq_forward.11
= control target key start
LH: loop header
LB: loop body
LE: loop exit
PB: predicated region body
PF: predicated region fallthrough
CT: control target
= control target key end

     0   :  { %s1083_s30 = smov 0   ;;  %s1085_s10 = smov 0   ;;  %s1222_s0 = inlined_call_operand.vmem [shape: f32[2,8,32], index: 0, kind: input, shape index: {}]   ;;  %s1223_s1 = inlined_call_operand.vmem [shape: bf16[32,32], index: 1, kind: input, shape index: {}]   ;;  %s1224_s2 = inlined_call_operand.vmem [shape: f32[1,32], index: 2, kind: input, shape index: {}]   ;;  %s1225_s3 = inlined_call_operand.vmem [shape: bf16[32,64], index: 3, kind: input, shape index: {}]   ;;  %s1226_s4 = inlined_call_operand.vmem [shape: f32[1,64], index: 4, kind: input, shape index: {}]   ;;  %s1227_s5 = inlined_call_operand.vmem [shape: bf16[32,32], index: 5, kind: input, shape index: {}]   ;;  %s1228_s6 = inlined_call_operand.vmem [shape: f32[1,32], index: 6, kind: input, shape index: {}]   ;;  %s1229_s7 = inlined_call_operand.vmem [shape: f32[1,32], index: 7, kind: input, shape index: {}]   ;;  %s1230_s8 = inlined_call_operand.vmem [shape: f32[1,32], index: 8, kind: input, shape index: {}]   ;;  %s1231_s9 = inlined_call_operand.vmem [shape: f32[2,8,32], index: 9, kind: output, shape index: {}]  }
   0x1   :  { %s1087_s11 = smov 0  }
   0x2 LB: > { %s31_s12 = sadd.s32 1, %s1019_s10  ;;  %p905_p0 = scmp.ge.s32.totalorder %s1023_s11, 1  ;;  %s1023_s11 = sphi %s1087_s11, %s19_s11   ;;  %s1019_s10 = sphi %s1085_s10, %s1233_s10   ;;  %s1015_s30 = sphi %s1083_s30, %s1232_s30  }
   0x3   : > { %p33_p1 = scmp.ge.s32.totalorder %s31_s12, 2  ;;  %p300_p2 = scmp.lt.s32.totalorder %s1023_s11, 3 }
   0x5   : > { %s1235_s12 = smov (%p33_p1, %s31_s12), 0  ;;  %p301_p3 = pnand %p905_p0, %p300_p2 }
   0x6   : > { %p337_p4 = scmp.lt.s32.totalorder (!%p301_p3), %s1015_s30, 1  ;;  %s1025_s27 = smov (!%p301_p3), 104  }
   0x7   : > { %304 = sbr.rel (%p301_p3) target bundleno = 1397 (0x575), region = 56  ;;  %s1026_s28 = smov (!%p301_p3), 120  }
   0x8   : > { %s1027_s14 = smov (!%p301_p3), 112   ;;  %s1028_s17 = smov (!%p301_p3), 96  }
   0x9   : > { %s1029_s18 = smov (!%p301_p3), 88   ;;  %s1030_s19 = smov (!%p301_p3), 72  }
   0xa   : > { %s1031_s20 = smov (!%p301_p3), 80  }
   0xc   : > { %v941_v0 = vld [vmem:[%s1225_s3 + $0x8] sm:$0xff]  ;;  %v940_v2 = vld [vmem:[%s1225_s3] sm:$0xff]  ;;  %s1237_s30 = smov (!%p337_p4, %s1015_s30), 1  ;;  %vm375_vm0 = vcmask 261120   ;;  %vm393_vm1 = vcmask 60416   ;;  %vm475_vm2 = vcmask 64512  }
   0xd   : > { %v943_v1 = vld [vmem:[%s1223_s1 + $0x8] sm:$0xff]  ;;  %385 = vmatpush.bf16.msra.mxu0 %v941_v0  ;;  %v942_v3 = vld [vmem:[%s1223_s1] sm:$0xff]  ;;  %s906_s21 = sshll.u32 %s1237_s30, 3  ;;  %vm508_vm3 = vcmask 1043456  }
   0xe   : > { %464 = vmatpush.bf16.msra.mxu1 %v943_v1  ;;  %s340_s24 = scalar_lea.vmem %s1222_s0, %s906_s21  ;;  %v976_v6 = vld [vmem:[%s1226_s4] ss:$0 sm:$0xff] }
   0xf   : > { %v1121_v4 = vld [vmem:[%s340_s24] sm:$0xff] }
  0x10   : > { %v354_v5 = vpack.c.bf16 %v1121_v4, %v1121_v4  ;;  %v977_v11 = vld [vmem:[%s1224_s2] ss:$0 sm:$0xff] }
  0x11   : > { %386 = vmatpush.bf16.msra.mxu0 %v940_v2  ;;  %v528_v19 = vld [vmem:[%s1227_s5] sm:$0xf] }
  0x12   : > { %465 = vmatpush.bf16.msra.mxu1 %v942_v3  ;;  %v611_v20 = vsel %vm508_vm3, %v528_v19, 0 }
  0x14   : > { %916 = vmatmul.msk.bf16.vlgmr.msra.gmra.mxu0 %vm375_vm0, %v354_v5 }
  0x15   : > { %925 = vmatmul.msk.bf16.vlgmr.msra.gmra.mxu1 %vm375_vm0, %v354_v5 }
  0x91   : > { %v388_v7 = vpop.f32.mrf.mxu0 }
  0x92   : > { %v467_v8 = vpop.f32.mrf.mxu1  ;;  %v389_v9 = vadd.f32 %v976_v6, %v388_v7 }
  0x93   : > { %v468_v14 = vadd.f32 %v977_v11, %v467_v8 }
  0x94   : > { %v1130_v10 = vpack.c.bf16 %v389_v9, %v389_v9 }
  0x95   : > { %v471_v16 = vmul.f32 0.35355338, %v468_v14 }
  0x96   : > { %420 = vrot.lane.b32.xlu2 %v1130_v10, %s1025_s27  ;;  %400 = vrot.lane.b32.xlu1 %v1130_v10, %s1026_s28  ;;  %394 = vst.msk [vmem:[#allocation2] sm:$0xf] %vm393_vm1, %v1130_v10 }
  0x97   : > { %v472_v18 = vpack.c.bf16 %v471_v16, %v471_v16 }
  0x99   : > { %v390_v12 = vpop.f32.mrf.mxu0 }
  0x9a   : > { %v469_v13 = vpop.f32.mrf.mxu1 }
  0x9d   : > { %v473_v15 = vld [vmem:[#allocation2] sm:$0xf] }
  0x9e   : > { %410 = vrot.lane.b32.xlu2 %v1130_v10, %s1027_s14  ;;  %v480_v17 = vsel %vm475_vm2, %v473_v15, 0 }
  0x9f   : > { %489 = vmatpush.bf16.xpose.msra.mxu2 %v480_v17 }
  0xa6   : > { %534 = vrot.lane.b32.xlu2 %v472_v18, %s1026_s28  ;;  %926 = vmatmul.msk.bf16.vlgmr.msra.gmra.mxu2 %vm475_vm2, %v472_v18 }
  0xa7   : > { %620 = vmatpush.bf16.msrb.mxu2 %v611_v20  ;;  %v587_v20 = vld [vmem:[%s1227_s5 + $0x4] sm:$0xf] }
  0xae   : > { %708 = vrot.lane.b32.xlu2 %v472_v18, %s1025_s27 }
  0xf0   : > { %v421_v21 = vpop.permute.xlu2 %420 }
  0xf1   : > { %424 = vst.msk [vmem:[#allocation2 + $0xc] sm:$0xf] %vm393_vm1, %v421_v21  ;;  %v592_v21 = vsel %vm508_vm3, %v587_v20, 0  ;;  %v979_v20 = vld [vmem:[%s1229_s7] ss:$0 sm:$0xff] }
  0xf2   : > { %601 = vmatpush.bf16.msrb.mxu1 %v592_v21 }
  0xf8   : > { %v411_v22 = vpop.permute.xlu2 %410  ;;  %v705_v23 = vld [vmem:[#allocation2 + $0xc] sm:$0xf] }
  0xf9   : > { %414 = vst.msk [vmem:[#allocation2 + $0x8] sm:$0xf] %vm393_vm1, %v411_v22  ;;  %v714_v24 = vsel %vm475_vm2, %v705_v23, 0  ;;  %v683_v22 = vld [vmem:[%s1227_s5 + $0x8] sm:$0xf] }
  0xfa   : > { %723 = vmatpush.bf16.xpose.msra.mxu2 %v714_v24  ;;  %v688_v23 = vsel %vm508_vm3, %v683_v22, 0  ;;  %v980_v22 = vld [vmem:[%s1230_s8] ss:$0 sm:$0xff] }
  0xfb   : > { %697 = vmatpush.bf16.msra.mxu1 %v688_v23 }
 0x100   : > { %v627_v40 = vld [vmem:[#allocation2 + $0x8] sm:$0xf]  ;;  %v535_v46 = vpop.permute.xlu2 %534 }
 0x101   : > { %v636_v42 = vsel %vm475_vm2, %v627_v40, 0 }
 0x108   : > { %v401_v25 = vpop.permute.xlu1 %400  ;;  %v709_v61 = vpop.permute.xlu2 %708 }
 0x109   : > { %404 = vst.msk [vmem:[#allocation2 + $0x4] sm:$0xf] %vm393_vm1, %v401_v25 }
 0x110   : > { %v530_v35 = vld [vmem:[#allocation2 + $0x4] sm:$0xf] }
 0x111   : > { %v540_v39 = vsel %vm475_vm2, %v530_v35, 0 }
 0x129   : > { %v491_v26 = vpop.f32.mrf.mxu2 }
 0x12a   : > { %v495_v27 = vsel %vm475_vm2, %v491_v26, -inf }
 0x12b   : > { %496 = vmax.xlane.f32.xlu0 %v495_v27 }
 0x131   : > { %v493_v28 = vpop.f32.mrf.mxu2 }
 0x13f   : > { %396 = vrot.lane.b32.xlu0 %v1130_v10, %s1028_s17 }
 0x147   : > { %630 = vrot.lane.b32.xlu0 %v472_v18, %s1027_s14 }
 0x14f   : > { %405 = vrot.lane.b32.xlu0 %v1130_v10, %s1029_s18 }
 0x19e   : > { %v497_v29 = vpop.xlane.xlu0 %496 }
 0x19f   : > { %v498_v30 = vsub.f32 %v491_v26, %v497_v29 }
 0x1a1   : > { %v499_v31 = vmul.f32 1.442695, %v498_v30 }
 0x1a3   : > { %981 = vpow2.f32 %v499_v31 }
 0x1a9   : > { %v982_v32 = vpop.eup %981 }
 0x1aa   : > { %v501_v33 = vsel %vm475_vm2, %v982_v32, 0.0  ;;  %v504_v41 = vpack.c.bf16 %v982_v32, %v982_v32 }
 0x1ab   : > { %502 = vadd.xlane.f32.xlu1 %v501_v33 }
 0x1b1   : > { %v397_v34 = vpop.permute.xlu0 %396 }
 0x1b2   : > { %399 = vst.msk [vmem:[#allocation3] sm:$0xf] %vm393_vm1, %v397_v34 }
 0x1b9   : > { %v631_v36 = vpop.permute.xlu0 %630  ;;  %v474_v37 = vld [vmem:[#allocation3] sm:$0xf] }
 0x1ba   : > { %v510_v38 = vsel %vm508_vm3, %v474_v37, 0 }
 0x1bb   : > { %519 = vmatpush.bf16.msra.mxu3 %v510_v38 }
 0x1be   : > { %927 = vmatmul.msk.bf16.vlgmr.msra.gmra.mxu3 %vm475_vm2, %v504_v41 }
 0x1bf   : > { %549 = vmatpush.bf16.xpose.msrb.mxu3 %v540_v39 }
 0x1c1   : > { %v406_v43 = vpop.permute.xlu0 %405 }
 0x1c2   : > { %409 = vst.msk [vmem:[#allocation3 + $0x4] sm:$0xf] %vm393_vm1, %v406_v43 }
 0x1c4   : > { %425 = vrot.lane.b32.xlu1 %v1130_v10, %s1030_s19  ;;  %s347_s19 = scalar_lea.vmem %s1231_s9, %s906_s21 }
 0x1c7   : > { %645 = vmatpush.bf16.xpose.msra.mxu3 %v636_v42  ;;  %v761_v42 = vld [vmem:[%s1227_s5 + $0xc] sm:$0xf] }
 0x1c8   : > { %v766_v43 = vsel %vm508_vm3, %v761_v42, 0 }
 0x1c9   : > { %v532_v44 = vld [vmem:[#allocation3 + $0x4] sm:$0xf] }
 0x1ca   : > { %v569_v45 = vsel %vm508_vm3, %v532_v44, 0 }
 0x1cb   : > { %578 = vmatpush.bf16.msrb.mxu0 %v569_v45 }
 0x1cc   : > { %415 = vrot.lane.b32.xlu1 %v1130_v10, %s1031_s20 }
 0x1ce   : > { %928 = vmatmul.msk.bf16.vlgmr.msrb.gmra.mxu3 %vm475_vm2, %v535_v46 }
 0x1de   : > { %932 = vmatmul.msk.bf16.vlgmr.msra.gmra.mxu3 %vm475_vm2, %v631_v36 }
 0x21e   : > { %v503_v47 = vpop.xlane.xlu1 %502 }
 0x21f   : > { %983 = vrcp.f32 %v503_v47 }
 0x225   : > { %v984_v52 = vpop.eup %983 }
 0x236   : > { %v426_v48 = vpop.permute.xlu1 %425 }
 0x237   : > { %429 = vst.msk [vmem:[#allocation3 + $0xc] sm:$0xf] %vm393_vm1, %v426_v48 }
 0x23e   : > { %v416_v49 = vpop.permute.xlu1 %415  ;;  %v707_v50 = vld [vmem:[#allocation3 + $0xc] sm:$0xf] }
 0x23f   : > { %419 = vst.msk [vmem:[#allocation3 + $0x8] sm:$0xf] %vm393_vm1, %v416_v49  ;;  %v743_v51 = vsel %vm508_vm3, %v707_v50, 0 }
 0x240   : > { %752 = vmatpush.bf16.msrb.mxu3 %v743_v51 }
 0x241   : > { %v521_v53 = vpop.f32.mrf.mxu3 }
 0x242   : > { %v526_v54 = vmul.f32 %v984_v52, %v521_v53 }
 0x244   : > { %v527_v55 = vpack.c.bf16 %v526_v54, %v526_v54 }
 0x246   : > { %931 = vmatmul.msk.bf16.vlgmr.msrb.gmra.mxu2 %vm475_vm2, %v527_v55  ;;  %v629_v56 = vld [vmem:[#allocation3 + $0x8] sm:$0xf] }
 0x247   : > { %v665_v57 = vsel %vm508_vm3, %v629_v56, 0 }
 0x248   : > { %674 = vmatpush.bf16.msra.mxu0 %v665_v57 }
 0x249   : > { %v523_v58 = vpop.f32.mrf.mxu3 }
 0x24a   : > { %v978_v58 = vld [vmem:[%s1228_s6] ss:$0 sm:$0xff] }
 0x251   : > { %v551_v59 = vpop.f32.mrf.mxu3 }
 0x252   : > { %v555_v60 = vsel %vm475_vm2, %v551_v59, -inf }
 0x253   : > { %556 = vmax.xlane.f32.xlu2 %v555_v60 }
 0x256   : > { %935 = vmatmul.msk.bf16.vlgmr.msra.gmra.mxu2 %vm475_vm2, %v709_v61 }
 0x259   : > { %v553_v62 = vpop.f32.mrf.mxu3 }
 0x261   : > { %v647_v63 = vpop.f32.mrf.mxu3 }
 0x262   : > { %v651_v0 = vsel %vm475_vm2, %v647_v63, -inf }
 0x263   : > { %652 = vmax.xlane.f32.xlu2 %v651_v0 }
 0x269   : > { %v649_v1 = vpop.f32.mrf.mxu3 }
 0x2c6   : > { %v557_v2 = vpop.xlane.xlu2 %556 }
 0x2c7   : > { %v558_v3 = vsub.f32 %v551_v59, %v557_v2 }
 0x2c9   : > { %v559_v5 = vmul.f32 1.442695, %v558_v3  ;;  %v622_v6 = vpop.f32.mrf.mxu2 }
 0x2cb   : > { %985 = vpow2.f32 %v559_v5 }
 0x2d1   : > { %v986_v7 = vpop.eup %985  ;;  %v624_v8 = vpop.f32.mrf.mxu2 }
 0x2d2   : > { %v561_v9 = vsel %vm475_vm2, %v986_v7, 0.0  ;;  %v564_v10 = vpack.c.bf16 %v986_v7, %v986_v7 }
 0x2d3   : > { %562 = vadd.xlane.f32.xlu2 %v561_v9 }
 0x2d4   : > { %929 = vmatmul.msk.bf16.vlgmr.msrb.gmra.mxu0 %vm475_vm2, %v564_v10 }
 0x2d5   : > { %775 = vmatpush.bf16.msrb.mxu0 %v766_v43 }
 0x2d6   : > { %v653_v11 = vpop.xlane.xlu2 %652 }
 0x2d7   : > { %v654_v12 = vsub.f32 %v647_v63, %v653_v11  ;;  %v1032_v63 = vmov 32.0  }
 0x2d9   : > { %v655_v13 = vmul.f32 1.442695, %v654_v12  ;;  %v725_v14 = vpop.f32.mrf.mxu2 }
 0x2da   : > { %v729_v15 = vsel %vm475_vm2, %v725_v14, -inf }
 0x2db   : > { %987 = vpow2.f32 %v655_v13  ;;  %730 = vmax.xlane.f32.xlu0 %v729_v15 }
 0x2e1   : > { %v988_v16 = vpop.eup %987  ;;  %v727_v17 = vpop.f32.mrf.mxu2 }
 0x2e2   : > { %v660_v18 = vpack.c.bf16 %v988_v16, %v988_v16  ;;  %v657_v19 = vsel %vm475_vm2, %v988_v16, 0.0 }
 0x2e3   : > { %658 = vadd.xlane.f32.xlu1 %v657_v19 }
 0x2e4   : > { %933 = vmatmul.msk.bf16.vlgmr.msra.gmra.mxu0 %vm475_vm2, %v660_v18 }
 0x346   : > { %v563_v24 = vpop.xlane.xlu2 %562 }
 0x347   : > { %989 = vrcp.f32 %v563_v24 }
 0x34d   : > { %v990_v27 = vpop.eup %989 }
 0x34e   : > { %v731_v25 = vpop.xlane.xlu0 %730 }
 0x34f   : > { %v732_v26 = vsub.f32 %v725_v14, %v731_v25 }
 0x351   : > { %v733_v28 = vmul.f32 1.442695, %v732_v26  ;;  %v580_v29 = vpop.f32.mrf.mxu0 }
 0x352   : > { %v585_v30 = vmul.f32 %v990_v27, %v580_v29 }
 0x353   : > { %991 = vpow2.f32 %v733_v28 }
 0x354   : > { %v586_v31 = vpack.c.bf16 %v585_v30, %v585_v30 }
 0x356   : > { %930 = vmatmul.msk.bf16.vlgmr.msrb.gmra.mxu1 %vm475_vm2, %v586_v31  ;;  %v659_v32 = vpop.xlane.xlu1 %658 }
 0x357   : > { %993 = vrcp.f32 %v659_v32 }
 0x359   : > { %v992_v33 = vpop.eup %991  ;;  %v582_v34 = vpop.f32.mrf.mxu0 }
 0x35a   : > { %v738_v35 = vpack.c.bf16 %v992_v33, %v992_v33  ;;  %v735_v36 = vsel %vm475_vm2, %v992_v33, 0.0 }
 0x35b   : > { %736 = vadd.xlane.f32.xlu0 %v735_v36 }
 0x35c   : > { %936 = vmatmul.msk.bf16.vlgmr.msrb.gmra.mxu3 %vm475_vm2, %v738_v35 }
 0x35d   : > { %v994_v37 = vpop.eup %993 }
 0x361   : > { %v676_v38 = vpop.f32.mrf.mxu0 }
 0x362   : > { %v681_v39 = vmul.f32 %v994_v37, %v676_v38 }
 0x364   : > { %v682_v40 = vpack.c.bf16 %v681_v39, %v681_v39 }
 0x366   : > { %934 = vmatmul.msk.bf16.vlgmr.msra.gmra.mxu1 %vm475_vm2, %v682_v40 }
 0x369   : > { %v678_v41 = vpop.f32.mrf.mxu0 }
 0x3ce   : > { %v737_v45 = vpop.xlane.xlu0 %736 }
 0x3cf   : > { %995 = vrcp.f32 %v737_v45 }
 0x3d0   : > { %997 = vrcp.f32 %v1032_v63 }
 0x3d3   : > { %v603_v44 = vpop.f32.mrf.mxu1 }
 0x3d4   : > { %v623_v50 = vadd.f32 %v622_v6, %v603_v44 }
 0x3d5   : > { %v996_v47 = vpop.eup %995 }
 0x3d6   : > { %v998_v0 = vpop.eup %997 }
 0x3d7   : > { %v794_v1 = vmul.f32 32.0, %v998_v0  ;;  %vm798_vm4 = vweird.f32 %v998_v0 }
 0x3d9   : > { %v795_v2 = vsub.f32 1.0, %v794_v1 }
 0x3db   : > { %v605_v46 = vpop.f32.mrf.mxu1  ;;  %v796_v3 = vmul.f32 %v998_v0, %v795_v2 }
 0x3dd   : > { %v797_v5 = vadd.f32 %v998_v0, %v796_v3 }
 0x3df   : > { %v754_v48 = vpop.f32.mrf.mxu3  ;;  %v799_v6 = vsel %vm798_vm4, %v998_v0, %v797_v5 }
 0x3e0   : > { %v759_v49 = vmul.f32 %v996_v47, %v754_v48 }
 0x3e2   : > { %v760_v51 = vpack.c.bf16 %v759_v49, %v759_v49 }
 0x3e3   : > { %v699_v52 = vpop.f32.mrf.mxu1 }
 0x3e4   : > { %v703_v53 = vadd.f32 %v699_v52, %v623_v50  ;;  %937 = vmatmul.msk.bf16.vlgmr.msrb.gmra.mxu0 %vm475_vm2, %v760_v51 }
 0x3e7   : > { %v756_v54 = vpop.f32.mrf.mxu3 }
 0x3eb   : > { %v701_v55 = vpop.f32.mrf.mxu1 }
 0x461   : > { %v777_v56 = vpop.f32.mrf.mxu0 }
 0x462   : > { %v781_v57 = vadd.f32 %v777_v56, %v703_v53 }
 0x464   : > { %v782_v59 = vadd.f32 %v781_v57, %v1121_v4 }
 0x466   : > { %v787_v60 = vadd.f32 %v978_v58, %v782_v59 }
 0x468   : > { %v790_v61 = vsel %vm375_vm0, %v787_v60, 0.0 }
 0x469   : > { %v779_v62 = vpop.f32.mrf.mxu0  ;;  %791 = vadd.xlane.f32.xlu2 %v790_v61 }
 0x4dc   : > { %v792_v7 = vpop.xlane.xlu2 %791 }
 0x4dd   : > { %v800_v8 = vmul.f32 %v799_v6, %v792_v7 }
 0x4df   : > { %v801_v9 = vsub.f32 %v787_v60, %v800_v8 }
 0x4e1   : > { %v802_v10 = vmul.f32 %v801_v9, %v801_v9 }
 0x4e3   : > { %v803_v4 = vsel %vm375_vm0, %v802_v10, 0.0 }
 0x4e4   : > { %804 = vadd.xlane.f32.xlu0 %v803_v4 }
 0x557   : > { %v805_v11 = vpop.xlane.xlu0 %804 }
 0x558   : > { %v806_v12 = vmul.f32 %v805_v11, %v799_v6 }
 0x55a   : > { %v807_v13 = vadd.f32 1e-05, %v806_v12 }
 0x55c   : > { %999 = vrsqrt.f32 %v807_v13  ;;  %vm814_vm6 = vweird.f32 %v807_v13 }
 0x562   : > { %v1000_v14 = vpop.eup %999 }
 0x563   : > { %v809_v15 = vmul.f32 %v1000_v14, %v807_v13  ;;  %vm815_vm5 = vweird.f32 %v1000_v14 }
 0x564   : > { %vm816_vm7 = vmor %vm814_vm6, %vm815_vm5 }
 0x565   : > { %v810_v16 = vmul.f32 %v1000_v14, %v809_v15 }
 0x567   : > { %v811_v17 = vmul.f32 0.5, %v810_v16 }
 0x569   : > { %v812_v18 = vsub.f32 1.5, %v811_v17 }
 0x56b   : > { %v813_v19 = vmul.f32 %v1000_v14, %v812_v18 }
 0x56d   : > { %v817_v21 = vsel %vm816_vm7, %v1000_v14, %v813_v19 }
 0x56e   : > { %v818_v23 = vmul.f32 %v817_v21, %v801_v9 }
 0x570   : > { %v822_v24 = vmul.f32 %v979_v20, %v818_v23 }
 0x572   : > { %v826_v25 = vadd.f32 %v980_v22, %v822_v24 }
 0x574   : > { %827 = vst.msk [vmem:[%s347_s19] sm:$0xff] %vm375_vm0, %v826_v25 }
 0x575 PF: > { %s19_s11 = sadd.s32 1, %s1023_s11   ;;  %s1232_s30 = smov %s1019_s10 }
 0x576   : > { %p16_p5 = scmp.ge.s32.totalorder %s19_s11, 4   ;;  %s1233_s10 = smov %s1235_s12 }
 0x578   :  { %18 = sbr.rel (!%p16_p5) target bundleno = 2 (0x2), region = 103 }

// kernel: transformer_seq2seq_forward.20
= control target key start
LH: loop header
LB: loop body
LE: loop exit
PB: predicated region body
PF: predicated region fallthrough
CT: control target
= control target key end

     0   :  { %s670_s30 = smov 0   ;;  %s736_s0 = inlined_call_operand.vmem [shape: f32[16,32], index: 0, kind: input, shape index: {}]   ;;  %s737_s1 = inlined_call_operand.vmem [shape: bf16[32,64], index: 1, kind: input, shape index: {}]   ;;  %s738_s2 = inlined_call_operand.vmem [shape: f32[1,64], index: 2, kind: input, shape index: {}]   ;;  %s739_s3 = inlined_call_operand.vmem [shape: bf16[64,32], index: 3, kind: input, shape index: {}]   ;;  %s740_s4 = inlined_call_operand.vmem [shape: f32[1,32], index: 4, kind: input, shape index: {}]   ;;  %s741_s5 = inlined_call_operand.vmem [shape: f32[1,32], index: 5, kind: input, shape index: {}]   ;;  %s742_s6 = inlined_call_operand.vmem [shape: f32[1,32], index: 6, kind: input, shape index: {}]   ;;  %s743_s7 = inlined_call_operand.vmem [shape: f32[1,32], index: 7, kind: input, shape index: {}]   ;;  %s744_s8 = inlined_call_operand.vmem [shape: f32[1,32], index: 8, kind: input, shape index: {}]   ;;  %s745_s9 = inlined_call_operand.vmem [shape: f32[16,32], index: 9, kind: output, shape index: {}]  }
   0x1 LB: > { %s549_s10 = sadd.s32 4294967295, %s617_s30   ;;  %p553_p0 = scmp.ge.s32.totalorder %s617_s30, 1  ;;  %s617_s30 = sphi %s670_s30, %s19_s30  }
   0x2   : > { %p286_p1 = scmp.lt.s32.totalorder %s617_s30, 3 }
   0x4   : > { %p287_p2 = pnand %p553_p0, %p286_p1 }
   0x5   : > { %p320_p3 = scmp.lt.s32.totalorder (!%p287_p2), %s549_s10, 1 }
   0x6   : > { %290 = sbr.rel (%p287_p2) target bundleno = 818 (0x332), region = 56 }
   0xb   : > { %v585_v0 = vld [vmem:[%s737_s1 + $0x8] sm:$0xff]  ;;  %v589_v1 = vld [vmem:[%s739_s3 + $0x18] sm:$0xff]  ;;  %v584_v2 = vld [vmem:[%s737_s1] sm:$0xff]  ;;  %s747_s10 = smov (!%p320_p3, %s549_s10), 1  ;;  %vm351_vm0 = vcmask 261120   ;;  %vm406_vm1 = vcmask 523264  }
   0xc   : > { %361 = vmatpush.bf16.msra.mxu0 %v585_v0  ;;  %414 = vmatpush.bf16.msra.mxu1 %v589_v1  ;;  %v588_v3 = vld [vmem:[%s739_s3 + $0x10] sm:$0xff]  ;;  %s554_s19 = sshll.u32 %s747_s10, 3  ;;  %v587_v6 = vld [vmem:[%s739_s3 + $0x8] sm:$0xff]  ;;  %v586_v7 = vld [vmem:[%s739_s3] sm:$0xff]  ;;  %v619_v20 = vmov 32.0  }
   0xd   : > { %s323_s22 = scalar_lea.vmem %s736_s0, %s554_s19  ;;  %v599_v8 = vld [vmem:[%s738_s2] ss:$0 sm:$0xff]  ;;  %605 = vrcp.f32 %v619_v20  ;;  %s327_s23 = scalar_lea.vmem %s745_s9, %s554_s19 }
   0xe   : > { %v329_v4 = vld [vmem:[%s323_s22] sm:$0xff] }
   0xf   : > { %v330_v5 = vpack.c.bf16 %v329_v4, %v329_v4  ;;  %v600_v14 = vld [vmem:[%s740_s4] ss:$0 sm:$0xff] }
  0x10   : > { %362 = vmatpush.bf16.msra.mxu0 %v584_v2  ;;  %415 = vmatpush.bf16.msra.mxu1 %v588_v3  ;;  %v601_v41 = vld [vmem:[%s741_s5] ss:$0 sm:$0xff] }
  0x11   : > { %v602_v44 = vld [vmem:[%s742_s6] ss:$0 sm:$0xff] }
  0x12   : > { %v603_v62 = vld [vmem:[%s743_s7] ss:$0 sm:$0xff] }
  0x13   : > { %564 = vmatmul.msk.bf16.vlgmr.msra.gmra.mxu0 %vm351_vm0, %v330_v5  ;;  %v606_v21 = vpop.eup %605  ;;  %v604_v0 = vld [vmem:[%s744_s8] ss:$0 sm:$0xff] }
  0x14   : > { %416 = vmatpush.bf16.msra.mxu1 %v587_v6  ;;  %v430_v22 = vmul.f32 32.0, %v606_v21  ;;  %vm434_vm2 = vweird.f32 %v606_v21 }
  0x16   : > { %v431_v23 = vsub.f32 1.0, %v430_v22 }
  0x18   : > { %417 = vmatpush.bf16.msra.mxu1 %v586_v7  ;;  %v432_v24 = vmul.f32 %v606_v21, %v431_v23 }
  0x1a   : > { %v433_v25 = vadd.f32 %v606_v21, %v432_v24 }
  0x1c   : > { %v435_v26 = vsel %vm434_vm2, %v606_v21, %v433_v25 }
  0x90   : > { %v364_v9 = vpop.f32.mrf.mxu0 }
  0x91   : > { %v365_v10 = vadd.f32 %v599_v8, %v364_v9 }
  0x93   : > { %v368_v11 = vmax.f32 %v365_v10, 0.0 }
  0x95   : > { %v369_v12 = vpack.c.bf16 %v368_v11, %v368_v11 }
  0x97   : > { %581 = vmatmul.msk.bf16.vlgmr.msra.gmra.mxu1 %vm406_vm1, %v369_v12 }
  0x98   : > { %v366_v13 = vpop.f32.mrf.mxu0 }
 0x114   : > { %v419_v15 = vpop.f32.mrf.mxu1 }
 0x115   : > { %v420_v16 = vadd.f32 %v600_v14, %v419_v15 }
 0x117   : > { %v423_v17 = vadd.f32 %v420_v16, %v329_v4 }
 0x119   : > { %v426_v18 = vsel %vm351_vm0, %v423_v17, 0.0 }
 0x11a   : > { %427 = vadd.xlane.f32.xlu0 %v426_v18 }
 0x11c   : > { %v421_v19 = vpop.f32.mrf.mxu1 }
 0x18d   : > { %v428_v27 = vpop.xlane.xlu0 %427 }
 0x18e   : > { %v436_v28 = vmul.f32 %v435_v26, %v428_v27 }
 0x190   : > { %v437_v29 = vsub.f32 %v423_v17, %v436_v28 }
 0x192   : > { %v438_v30 = vmul.f32 %v437_v29, %v437_v29 }
 0x194   : > { %v439_v31 = vsel %vm351_vm0, %v438_v30, 0.0 }
 0x195   : > { %440 = vadd.xlane.f32.xlu0 %v439_v31 }
 0x208   : > { %v441_v32 = vpop.xlane.xlu0 %440 }
 0x209   : > { %v442_v33 = vmul.f32 %v441_v32, %v435_v26 }
 0x20b   : > { %v443_v34 = vadd.f32 1e-05, %v442_v33 }
 0x20d   : > { %607 = vrsqrt.f32 %v443_v34  ;;  %vm450_vm4 = vweird.f32 %v443_v34 }
 0x213   : > { %v608_v35 = vpop.eup %607 }
 0x214   : > { %v445_v36 = vmul.f32 %v608_v35, %v443_v34  ;;  %vm451_vm3 = vweird.f32 %v608_v35 }
 0x215   : > { %vm452_vm5 = vmor %vm450_vm4, %vm451_vm3 }
 0x216   : > { %v446_v37 = vmul.f32 %v608_v35, %v445_v36 }
 0x218   : > { %v447_v38 = vmul.f32 0.5, %v446_v37 }
 0x21a   : > { %v448_v39 = vsub.f32 1.5, %v447_v38 }
 0x21c   : > { %v449_v40 = vmul.f32 %v608_v35, %v448_v39 }
 0x21e   : > { %v453_v42 = vsel %vm452_vm5, %v608_v35, %v449_v40 }
 0x21f   : > { %v454_v43 = vmul.f32 %v453_v42, %v437_v29 }
 0x221   : > { %v458_v45 = vmul.f32 %v601_v41, %v454_v43 }
 0x223   : > { %v462_v46 = vadd.f32 %v602_v44, %v458_v45 }
 0x225   : > { %v465_v47 = vsel %vm351_vm0, %v462_v46, 0.0 }
 0x226   : > { %466 = vadd.xlane.f32.xlu1 %v465_v47 }
 0x299   : > { %v467_v48 = vpop.xlane.xlu1 %466 }
 0x29a   : > { %v468_v49 = vmul.f32 %v467_v48, %v435_v26 }
 0x29c   : > { %v469_v50 = vsub.f32 %v462_v46, %v468_v49 }
 0x29e   : > { %v470_v51 = vmul.f32 %v469_v50, %v469_v50 }
 0x2a0   : > { %v471_v52 = vsel %vm351_vm0, %v470_v51, 0.0 }
 0x2a1   : > { %472 = vadd.xlane.f32.xlu1 %v471_v52 }
 0x314   : > { %v473_v53 = vpop.xlane.xlu1 %472 }
 0x315   : > { %v474_v54 = vmul.f32 %v473_v53, %v435_v26 }
 0x317   : > { %v475_v55 = vadd.f32 1e-05, %v474_v54 }
 0x319   : > { %609 = vrsqrt.f32 %v475_v55  ;;  %vm482_vm7 = vweird.f32 %v475_v55 }
 0x31f   : > { %v610_v56 = vpop.eup %609 }
 0x320   : > { %v477_v57 = vmul.f32 %v610_v56, %v475_v55  ;;  %vm483_vm6 = vweird.f32 %v610_v56 }
 0x321   : > { %vm484_vm8 = vmor %vm482_vm7, %vm483_vm6 }
 0x322   : > { %v478_v58 = vmul.f32 %v610_v56, %v477_v57 }
 0x324   : > { %v479_v59 = vmul.f32 0.5, %v478_v58 }
 0x326   : > { %v480_v60 = vsub.f32 1.5, %v479_v59 }
 0x328   : > { %v481_v61 = vmul.f32 %v610_v56, %v480_v60 }
 0x32a   : > { %v485_v63 = vsel %vm484_vm8, %v610_v56, %v481_v61 }
 0x32b   : > { %v486_v1 = vmul.f32 %v485_v63, %v469_v50 }
 0x32d   : > { %v490_v2 = vmul.f32 %v603_v62, %v486_v1 }
 0x32f   : > { %v494_v3 = vadd.f32 %v604_v0, %v490_v2 }
 0x331   : > { %495 = vst.msk [vmem:[%s327_s23] sm:$0xff] %vm351_vm0, %v494_v3 }
 0x332 PF: > { %s19_s30 = sadd.s32 1, %s617_s30  }
 0x333   : > { %p16_p4 = scmp.ge.s32.totalorder %s19_s30, 4  }
 0x335   :  { %18 = sbr.rel (!%p16_p4) target bundleno = 1 (0x1), region = 86 }

// kernel: transformer_seq2seq_forward.17
= control target key start
LH: loop header
LB: loop body
LE: loop exit
PB: predicated region body
PF: predicated region fallthrough
CT: control target
= control target key end

     0   :  { %12 = vsyncpa [#allocation3], 0  ;;  %s952_s0 = inlined_call_operand.vmem [shape: f32[16,32], index: 0, kind: input, shape index: {}]   ;;  %s953_s1 = inlined_call_operand.vmem [shape: bf16[32,64], index: 1, kind: input, shape index: {}]   ;;  %s954_s2 = inlined_call_operand.hbm [shape: f32[1,64], index: 2, kind: input, shape index: {}]   ;;  %s955_s3 = inlined_call_operand.vmem [shape: bf16[64,32], index: 3, kind: input, shape index: {}]   ;;  %s956_s4 = inlined_call_operand.hbm [shape: f32[1,32], index: 4, kind: input, shape index: {}]   ;;  %s957_s5 = inlined_call_operand.hbm [shape: f32[1,32], index: 5, kind: input, shape index: {}]   ;;  %s958_s6 = inlined_call_operand.hbm [shape: f32[1,32], index: 6, kind: input, shape index: {}]   ;;  %s959_s7 = inlined_call_operand.vmem [shape: f32[16,32], index: 7, kind: output, shape index: {}]  }
   0x1   :  { %13 = vsyncpa [#allocation5], 0 }
   0x2   :  { %14 = vsyncpa [#allocation8], 0  ;;  %s855_s24 = smov 0  }
   0x3 LB: > { %s233_s27 = sshll.u32 %s956_s4, 4  ;;  %s864_s28 = sadd.s32 4294967295, %s808_s24   ;;  %s808_s24 = sphi %s855_s24, %s20_s24   ;;  %s234_s27 = int_to_ptr.hbm [resolvable:$true] %s233_s27 }
   0x4   : > { %p565_p0 = scmp.ge.s32.totalorder %s808_s24, 1  ;;  %p203_p1 = scmp.lt.s32.totalorder %s808_s24, 3 }
   0x5   : > { %p641_p2 = scmp.eq.s32.totalorder %s864_s28, 0  ;;  %s810_s30 = smov [#allocation4]  }
   0x6   : > { %p869_p3 = pnand %p565_p0, %p203_p1  ;;  %s235_s8 = sshll.u32 %s810_s30, 4  ;;  %s236_s8 = int_to_ptr.vmem [resolvable:$true] %s235_s8 }
   0x7   : > { %s218_s11 = sshll.u32 %s954_s2, 4  ;;  %s245_s14 = sshll.u32 %s957_s5, 4  ;;  %s219_s11 = int_to_ptr.hbm [resolvable:$true] %s218_s11  ;;  %s246_s14 = int_to_ptr.hbm [resolvable:$true] %s245_s14 }
   0x8   : > { %p628_p4 = pneg %p869_p3  ;;  %s811_s16 = smov [#allocation2]  }
   0x9   : > { %s220_s17 = sshll.u32 %s811_s16, 4  ;;  %s812_s18 = smov [#allocation6]   ;;  %s221_s17 = int_to_ptr.vmem [resolvable:$true] %s220_s17 }
   0xa   : > { %p883_p5 = pnand %p641_p2, %p628_p4  ;;  %s247_s19 = sshll.u32 %s812_s18, 4  ;;  %s248_s19 = int_to_ptr.vmem [resolvable:$true] %s247_s19 }
   0xb   : > { %s257_s22 = sshll.u32 %s958_s6, 4  ;;  %s813_s23 = smov [#allocation7]   ;;  %s258_s22 = int_to_ptr.hbm [resolvable:$true] %s257_s22 }
   0xc   : > { %634 = dma.hbm_to_vmem [thread:$0]  (!%p883_p5), %s234_s27, 16, %s236_s8, [#allocation5]  }
   0xd   : > { %631 = dma.hbm_to_vmem [thread:$0]  (!%p883_p5), %s219_s11, 16, %s221_s17, [#allocation3]  }
   0xe   : > { %637 = dma.hbm_to_vmem [thread:$0]  (!%p883_p5), %s246_s14, 16, %s248_s19, [#allocation5]  }
   0xf   : > { %s259_s25 = sshll.u32 %s813_s23, 4  ;;  %279 = sbr.rel (%p869_p3) target bundleno = 564 (0x234), region = 48  ;;  %s260_s25 = int_to_ptr.vmem [resolvable:$true] %s259_s25 }
  0x10   : > { %640 = dma.hbm_to_vmem [thread:$0]  (!%p883_p5), %s258_s22, 16, %s260_s25, [#allocation8]  }
  0x14   : > { %795 = dma.done.wait (%p641_p2), [#allocation3], 16  }
  0x15   : > { %797 = vsyncadd (%p641_p2), [#allocation3], 4294967280 }
  0x16   : > { %799 = dma.done.wait (%p641_p2), [#allocation5], 32  }
  0x17   : > { %801 = vsyncadd (%p641_p2), [#allocation5], 4294967264 }
  0x18   : > { %803 = dma.done.wait (%p641_p2), [#allocation8], 16  }
  0x19   : > { %805 = vsyncadd (%p641_p2), [#allocation8], 4294967280  ;;  %p325_p6 = scmp.lt.s32.totalorder %s864_s28, 1  ;;  %v607_v0 = vld [vmem:[%s953_s1 + $0x8] sm:$0xff]  ;;  %v606_v1 = vld [vmem:[%s953_s1] sm:$0xff]  ;;  %vm356_vm0 = vcmask 261120  }
  0x1a   : > { %v611_v2 = vld [vmem:[%s955_s3 + $0x18] sm:$0xff]  ;;  %366 = vmatpush.bf16.msra.mxu0 %v607_v0  ;;  %v610_v4 = vld [vmem:[%s955_s3 + $0x10] sm:$0xff]  ;;  %v609_v6 = vld [vmem:[%s955_s3 + $0x8] sm:$0xff]  ;;  %vm411_vm1 = vcmask 523264   ;;  %v814_v20 = vmov 32.0  }
  0x1b   : > { %s963_s28 = smov (!%p325_p6, %s864_s28), 1  ;;  %419 = vmatpush.bf16.msra.mxu1 %v611_v2  ;;  %v608_v7 = vld [vmem:[%s955_s3] sm:$0xff]  ;;  %666 = vrcp.f32 %v814_v20 }
  0x1c   : > { %s576_s26 = sshll.u32 %s963_s28, 3  ;;  %v662_v8 = vld [vmem:[#allocation2] ss:$0 sm:$0xff]  ;;  %v663_v14 = vld [vmem:[#allocation4] ss:$0 sm:$0xff] }
  0x1d   : > { %s328_s30 = scalar_lea.vmem %s952_s0, %s576_s26  ;;  %v664_v41 = vld [vmem:[#allocation6] ss:$0 sm:$0xff]  ;;  %v665_v43 = vld [vmem:[#allocation7] ss:$0 sm:$0xff]  ;;  %s332_s22 = scalar_lea.vmem %s959_s7, %s576_s26 }
  0x1e   : > { %v334_v3 = vld [vmem:[%s328_s30] sm:$0xff]  ;;  %367 = vmatpush.bf16.msra.mxu0 %v606_v1 }
  0x1f   : > { %v335_v5 = vpack.c.bf16 %v334_v3, %v334_v3  ;;  %420 = vmatpush.bf16.msra.mxu1 %v610_v4 }
  0x21   : > { %586 = vmatmul.msk.bf16.vlgmr.msra.gmra.mxu0 %vm356_vm0, %v335_v5  ;;  %v667_v21 = vpop.eup %666 }
  0x22   : > { %v435_v22 = vmul.f32 32.0, %v667_v21  ;;  %vm439_vm2 = vweird.f32 %v667_v21 }
  0x23   : > { %421 = vmatpush.bf16.msra.mxu1 %v609_v6 }
  0x24   : > { %v436_v23 = vsub.f32 1.0, %v435_v22 }
  0x26   : > { %v437_v24 = vmul.f32 %v667_v21, %v436_v23 }
  0x27   : > { %422 = vmatpush.bf16.msra.mxu1 %v608_v7 }
  0x28   : > { %v438_v25 = vadd.f32 %v667_v21, %v437_v24 }
  0x2a   : > { %v440_v26 = vsel %vm439_vm2, %v667_v21, %v438_v25 }
  0x9e   : > { %v369_v9 = vpop.f32.mrf.mxu0 }
  0x9f   : > { %v370_v10 = vadd.f32 %v662_v8, %v369_v9 }
  0xa1   : > { %v373_v11 = vmax.f32 %v370_v10, 0.0 }
  0xa3   : > { %v374_v12 = vpack.c.bf16 %v373_v11, %v373_v11 }
  0xa5   : > { %603 = vmatmul.msk.bf16.vlgmr.msra.gmra.mxu1 %vm411_vm1, %v374_v12 }
  0xa6   : > { %v371_v13 = vpop.f32.mrf.mxu0 }
 0x122   : > { %v424_v15 = vpop.f32.mrf.mxu1 }
 0x123   : > { %v425_v16 = vadd.f32 %v663_v14, %v424_v15 }
 0x125   : > { %v428_v17 = vadd.f32 %v425_v16, %v334_v3 }
 0x127   : > { %v431_v18 = vsel %vm356_vm0, %v428_v17, 0.0 }
 0x128   : > { %432 = vadd.xlane.f32.xlu0 %v431_v18 }
 0x12a   : > { %v426_v19 = vpop.f32.mrf.mxu1 }
 0x19b   : > { %v433_v27 = vpop.xlane.xlu0 %432 }
 0x19c   : > { %v441_v28 = vmul.f32 %v440_v26, %v433_v27 }
 0x19e   : > { %v442_v29 = vsub.f32 %v428_v17, %v441_v28 }
 0x1a0   : > { %v443_v30 = vmul.f32 %v442_v29, %v442_v29 }
 0x1a2   : > { %v444_v31 = vsel %vm356_vm0, %v443_v30, 0.0 }
 0x1a3   : > { %445 = vadd.xlane.f32.xlu0 %v444_v31 }
 0x216   : > { %v446_v32 = vpop.xlane.xlu0 %445 }
 0x217   : > { %v447_v33 = vmul.f32 %v446_v32, %v440_v26 }
 0x219   : > { %v448_v34 = vadd.f32 1e-05, %v447_v33 }
 0x21b   : > { %668 = vrsqrt.f32 %v448_v34  ;;  %vm455_vm4 = vweird.f32 %v448_v34 }
 0x221   : > { %v669_v35 = vpop.eup %668 }
 0x222   : > { %v450_v36 = vmul.f32 %v669_v35, %v448_v34  ;;  %vm456_vm3 = vweird.f32 %v669_v35 }
 0x223   : > { %vm457_vm5 = vmor %vm455_vm4, %vm456_vm3 }
 0x224   : > { %v451_v37 = vmul.f32 %v669_v35, %v450_v36 }
 0x226   : > { %v452_v38 = vmul.f32 0.5, %v451_v37 }
 0x228   : > { %v453_v39 = vsub.f32 1.5, %v452_v38 }
 0x22a   : > { %v454_v40 = vmul.f32 %v669_v35, %v453_v39 }
 0x22c   : > { %v458_v42 = vsel %vm457_vm5, %v669_v35, %v454_v40 }
 0x22d   : > { %v459_v44 = vmul.f32 %v458_v42, %v442_v29 }
 0x22f   : > { %v463_v45 = vmul.f32 %v664_v41, %v459_v44 }
 0x231   : > { %v467_v46 = vadd.f32 %v665_v43, %v463_v45 }
 0x233   : > { %468 = vst.msk [vmem:[%s332_s22] sm:$0xff] %vm356_vm0, %v467_v46 }
 0x234 PF: > { %s20_s24 = sadd.s32 1, %s808_s24  }
 0x235   : > { %p17_p7 = scmp.ge.s32.totalorder %s20_s24, 4  }
 0x237   :  { %19 = sbr.rel (!%p17_p7) target bundleno = 3 (0x3), region = 95 }
 0x23c   :  { %488 = vsyncpa [#allocation3], 1 }
 0x23d   :  { %490 = vsyncpa [#allocation3 + $0x1], 1 }
 0x23e   :  { %491 = vsyncpa [#allocation5], 1 }
 0x23f   :  { %492 = vsyncpa [#allocation8], 1 }

// kernel: transformer_seq2seq_forward.18
= control target key start
LH: loop header
LB: loop body
LE: loop exit
PB: predicated region body
PF: predicated region fallthrough
CT: control target
= control target key end

     0   :  { %14 = vsyncpa [#allocation5], 0  ;;  %s1551_s0 = inlined_call_operand.vmem [shape: f32[2,8,32], index: 0, kind: input, shape index: {}]   ;;  %s1552_s1 = inlined_call_operand.vmem [shape: bf16[32,32], index: 1, kind: input, shape index: {}]   ;;  %s1553_s2 = inlined_call_operand.vmem [shape: f32[1,32], index: 2, kind: input, shape index: {}]   ;;  %s1554_s3 = inlined_call_operand.vmem [shape: bf16[32,64], index: 3, kind: input, shape index: {}]   ;;  %s1555_s4 = inlined_call_operand.hbm [shape: f32[1,64], index: 4, kind: input, shape index: {}]   ;;  %s1556_s5 = inlined_call_operand.vmem [shape: bf16[32,32], index: 5, kind: input, shape index: {}]   ;;  %s1557_s6 = inlined_call_operand.hbm [shape: f32[1,32], index: 6, kind: input, shape index: {}]   ;;  %s1558_s7 = inlined_call_operand.hbm [shape: f32[1,32], index: 7, kind: input, shape index: {}]   ;;  %s1559_s8 = inlined_call_operand.hbm [shape: f32[1,32], index: 8, kind: input, shape index: {}]   ;;  %s1560_s9 = inlined_call_operand.vmem [shape: f32[2,8,32], index: 9, kind: output, shape index: {}]  }
   0x1   :  { %15 = vsyncpa [#allocation7], 0 }
   0x2   :  { %16 = vsyncpa [#allocation10], 0  ;;  %s1369_s30 = smov 0   ;;  %s1371_s10 = smov 0  }
   0x3   :  { %s1373_s11 = smov 0  }
   0x4 LB: > { %s297_s14 = sshll.u32 %s1557_s6, 4  ;;  %s1002_s15 = sadd.s32 4294967295, %s1305_s11   ;;  %s1305_s11 = sphi %s1373_s11, %s22_s11   ;;  %s1301_s10 = sphi %s1371_s10, %s1565_s10   ;;  %s1297_s30 = sphi %s1369_s30, %s1564_s30   ;;  %s298_s14 = int_to_ptr.hbm [resolvable:$true] %s297_s14 }
   0x5   : > { %p1004_p0 = scmp.ge.s32.totalorder %s1305_s11, 1  ;;  %p261_p1 = scmp.lt.s32.totalorder %s1305_s11, 3 }
   0x6   : > { %p1390_p2 = scmp.eq.s32.totalorder %s1002_s15, 0  ;;  %s1307_s18 = smov [#allocation6]  }
   0x7   : > { %p1394_p3 = pnand %p1004_p0, %p261_p1  ;;  %s299_s19 = sshll.u32 %s1307_s18, 4  ;;  %s300_s19 = int_to_ptr.vmem [resolvable:$true] %s299_s19 }
   0x8   : > { %s34_s21 = sadd.s32 1, %s1301_s10  ;;  %s282_s24 = sshll.u32 %s1555_s4, 4  ;;  %s283_s24 = int_to_ptr.hbm [resolvable:$true] %s282_s24 }
   0x9   : > { %p1069_p4 = pneg %p1394_p3  ;;  %p36_p6 = scmp.ge.s32.totalorder %s34_s21, 2 }
   0xa   : > { %s309_s27 = sshll.u32 %s1558_s7, 4  ;;  %s1308_s28 = smov [#allocation4]   ;;  %s310_s27 = int_to_ptr.hbm [resolvable:$true] %s309_s27 }
   0xb   : > { %p1402_p5 = pnand %p1390_p2, %p1069_p4  ;;  %s1567_s21 = smov (%p36_p6, %s34_s21), 0 }
   0xc   : > { %s284_s29 = sshll.u32 %s1308_s28, 4  ;;  %s1309_s12 = smov [#allocation8]   ;;  %s285_s29 = int_to_ptr.vmem [resolvable:$true] %s284_s29 }
   0xd   : > { %1075 = dma.hbm_to_vmem [thread:$0]  (!%p1402_p5), %s298_s14, 16, %s300_s19, [#allocation7]  }
   0xe   : > { %1072 = dma.hbm_to_vmem [thread:$0]  (!%p1402_p5), %s283_s24, 16, %s285_s29, [#allocation5]  }
   0xf   : > { %s311_s13 = sshll.u32 %s1309_s12, 4  ;;  %s321_s22 = sshll.u32 %s1559_s8, 4  ;;  %s312_s13 = int_to_ptr.vmem [resolvable:$true] %s311_s13  ;;  %s322_s22 = int_to_ptr.hbm [resolvable:$true] %s321_s22 }
  0x10   : > { %1078 = dma.hbm_to_vmem [thread:$0]  (!%p1402_p5), %s310_s27, 16, %s312_s13, [#allocation7]  }
  0x11   : > { %s1310_s14 = smov [#allocation9]   ;;  %343 = sbr.rel (%p1394_p3) target bundleno = 1412 (0x584), region = 56 }
  0x12   : > { %s323_s19 = sshll.u32 %s1310_s14, 4  ;;  %s324_s19 = int_to_ptr.vmem [resolvable:$true] %s323_s19 }
  0x13   : > { %1081 = dma.hbm_to_vmem [thread:$0]  (!%p1402_p5), %s322_s22, 16, %s324_s19, [#allocation10]  }
  0x16   : > { %1284 = dma.done.wait (%p1390_p2), [#allocation5], 16  }
  0x17   : > { %1286 = vsyncadd (%p1390_p2), [#allocation5], 4294967280 }
  0x18   : > { %1288 = dma.done.wait (%p1390_p2), [#allocation7], 32  }
  0x19   : > { %1290 = vsyncadd (%p1390_p2), [#allocation7], 4294967264 }
  0x1a   : > { %1292 = dma.done.wait (%p1390_p2), [#allocation10], 16  }
  0x1b   : > { %1294 = vsyncadd (%p1390_p2), [#allocation10], 4294967280  ;;  %p396_p7 = scmp.lt.s32.totalorder %s1297_s30, 1  ;;  %v1050_v0 = vld [vmem:[%s1554_s3 + $0x8] sm:$0xff]  ;;  %v1049_v2 = vld [vmem:[%s1554_s3] sm:$0xff]  ;;  %vm434_vm0 = vcmask 261120  }
  0x1c   : > { %v1052_v1 = vld [vmem:[%s1552_s1 + $0x8] sm:$0xff]  ;;  %444 = vmatpush.bf16.msra.mxu0 %v1050_v0  ;;  %v1051_v4 = vld [vmem:[%s1552_s1] sm:$0xff]  ;;  %vm452_vm1 = vcmask 60416   ;;  %s1311_s15 = smov 104   ;;  %s1312_s18 = smov 120   ;;  %vm534_vm2 = vcmask 64512  }
  0x1d   : > { %s1569_s30 = smov (!%p396_p7, %s1297_s30), 1  ;;  %523 = vmatpush.bf16.msra.mxu1 %v1052_v1  ;;  %v1126_v6 = vld [vmem:[#allocation4] ss:$0 sm:$0xff]  ;;  %s1313_s19 = smov 112   ;;  %vm567_vm3 = vcmask 1043456  }
  0x1e   : > { %s1015_s17 = sshll.u32 %s1569_s30, 3  ;;  %v1127_v11 = vld [vmem:[%s1553_s2] ss:$0 sm:$0xff]  ;;  %s1315_s25 = smov 88  }
  0x1f   : > { %s399_s24 = scalar_lea.vmem %s1551_s0, %s1015_s17  ;;  %v587_v19 = vld [vmem:[%s1556_s5] sm:$0xf]  ;;  %s1316_s26 = smov 72  }
  0x20   : > { %v1459_v3 = vld [vmem:[%s399_s24] sm:$0xff]  ;;  %445 = vmatpush.bf16.msra.mxu0 %v1049_v2  ;;  %v670_v20 = vsel %vm567_vm3, %v587_v19, 0  ;;  %s1314_s24 = smov 96   ;;  %s1317_s27 = smov 80  }
  0x21   : > { %v413_v5 = vpack.c.bf16 %v1459_v3, %v1459_v3  ;;  %524 = vmatpush.bf16.msra.mxu1 %v1051_v4  ;;  %s406_s14 = scalar_lea.vmem %s1560_s9, %s1015_s17 }
  0x23   : > { %1025 = vmatmul.msk.bf16.vlgmr.msra.gmra.mxu0 %vm434_vm0, %v413_v5 }
  0x24   : > { %1034 = vmatmul.msk.bf16.vlgmr.msra.gmra.mxu1 %vm434_vm0, %v413_v5 }
  0xa0   : > { %v447_v7 = vpop.f32.mrf.mxu0 }
  0xa1   : > { %v526_v8 = vpop.f32.mrf.mxu1  ;;  %v448_v9 = vadd.f32 %v1126_v6, %v447_v7 }
  0xa2   : > { %v527_v14 = vadd.f32 %v1127_v11, %v526_v8 }
  0xa3   : > { %v1468_v10 = vpack.c.bf16 %v448_v9, %v448_v9 }
  0xa4   : > { %v530_v16 = vmul.f32 0.35355338, %v527_v14 }
  0xa5   : > { %479 = vrot.lane.b32.xlu2 %v1468_v10, %s1311_s15  ;;  %459 = vrot.lane.b32.xlu1 %v1468_v10, %s1312_s18  ;;  %453 = vst.msk [vmem:[#allocation2] sm:$0xf] %vm452_vm1, %v1468_v10 }
  0xa6   : > { %v531_v18 = vpack.c.bf16 %v530_v16, %v530_v16 }
  0xa8   : > { %v449_v12 = vpop.f32.mrf.mxu0 }
  0xa9   : > { %v528_v13 = vpop.f32.mrf.mxu1 }
  0xac   : > { %v532_v15 = vld [vmem:[#allocation2] sm:$0xf] }
  0xad   : > { %469 = vrot.lane.b32.xlu2 %v1468_v10, %s1313_s19  ;;  %v539_v17 = vsel %vm534_vm2, %v532_v15, 0 }
  0xae   : > { %548 = vmatpush.bf16.xpose.msra.mxu2 %v539_v17 }
  0xb5   : > { %593 = vrot.lane.b32.xlu2 %v531_v18, %s1312_s18  ;;  %1035 = vmatmul.msk.bf16.vlgmr.msra.gmra.mxu2 %vm534_vm2, %v531_v18 }
  0xb6   : > { %679 = vmatpush.bf16.msrb.mxu2 %v670_v20  ;;  %v646_v20 = vld [vmem:[%s1556_s5 + $0x4] sm:$0xf] }
  0xbd   : > { %767 = vrot.lane.b32.xlu2 %v531_v18, %s1311_s15 }
  0xff   : > { %v480_v21 = vpop.permute.xlu2 %479 }
 0x100   : > { %483 = vst.msk [vmem:[#allocation2 + $0xc] sm:$0xf] %vm452_vm1, %v480_v21  ;;  %v651_v21 = vsel %vm567_vm3, %v646_v20, 0  ;;  %v1129_v20 = vld [vmem:[#allocation8] ss:$0 sm:$0xff] }
 0x101   : > { %660 = vmatpush.bf16.msrb.mxu1 %v651_v21 }
 0x107   : > { %v470_v22 = vpop.permute.xlu2 %469  ;;  %v764_v23 = vld [vmem:[#allocation2 + $0xc] sm:$0xf] }
 0x108   : > { %473 = vst.msk [vmem:[#allocation2 + $0x8] sm:$0xf] %vm452_vm1, %v470_v22  ;;  %v773_v24 = vsel %vm534_vm2, %v764_v23, 0  ;;  %v742_v22 = vld [vmem:[%s1556_s5 + $0x8] sm:$0xf] }
 0x109   : > { %782 = vmatpush.bf16.xpose.msra.mxu2 %v773_v24  ;;  %v747_v23 = vsel %vm567_vm3, %v742_v22, 0  ;;  %v1130_v22 = vld [vmem:[#allocation9] ss:$0 sm:$0xff] }
 0x10a   : > { %756 = vmatpush.bf16.msra.mxu1 %v747_v23 }
 0x10f   : > { %v686_v40 = vld [vmem:[#allocation2 + $0x8] sm:$0xf]  ;;  %v594_v46 = vpop.permute.xlu2 %593 }
 0x110   : > { %v695_v42 = vsel %vm534_vm2, %v686_v40, 0 }
 0x117   : > { %v460_v25 = vpop.permute.xlu1 %459  ;;  %v768_v61 = vpop.permute.xlu2 %767 }
 0x118   : > { %463 = vst.msk [vmem:[#allocation2 + $0x4] sm:$0xf] %vm452_vm1, %v460_v25 }
 0x11f   : > { %v589_v35 = vld [vmem:[#allocation2 + $0x4] sm:$0xf] }
 0x120   : > { %v599_v39 = vsel %vm534_vm2, %v589_v35, 0 }
 0x138   : > { %v550_v26 = vpop.f32.mrf.mxu2 }
 0x139   : > { %v554_v27 = vsel %vm534_vm2, %v550_v26, -inf }
 0x13a   : > { %555 = vmax.xlane.f32.xlu0 %v554_v27 }
 0x140   : > { %v552_v28 = vpop.f32.mrf.mxu2 }
 0x14e   : > { %455 = vrot.lane.b32.xlu0 %v1468_v10, %s1314_s24 }
 0x156   : > { %689 = vrot.lane.b32.xlu0 %v531_v18, %s1313_s19 }
 0x15e   : > { %464 = vrot.lane.b32.xlu0 %v1468_v10, %s1315_s25 }
 0x1ad   : > { %v556_v29 = vpop.xlane.xlu0 %555 }
 0x1ae   : > { %v557_v30 = vsub.f32 %v550_v26, %v556_v29 }
 0x1b0   : > { %v558_v31 = vmul.f32 1.442695, %v557_v30 }
 0x1b2   : > { %1131 = vpow2.f32 %v558_v31 }
 0x1b8   : > { %v1132_v32 = vpop.eup %1131 }
 0x1b9   : > { %v560_v33 = vsel %vm534_vm2, %v1132_v32, 0.0  ;;  %v563_v41 = vpack.c.bf16 %v1132_v32, %v1132_v32 }
 0x1ba   : > { %561 = vadd.xlane.f32.xlu1 %v560_v33 }
 0x1c0   : > { %v456_v34 = vpop.permute.xlu0 %455 }
 0x1c1   : > { %458 = vst.msk [vmem:[#allocation3] sm:$0xf] %vm452_vm1, %v456_v34 }
 0x1c8   : > { %v690_v36 = vpop.permute.xlu0 %689  ;;  %v533_v37 = vld [vmem:[#allocation3] sm:$0xf] }
 0x1c9   : > { %v569_v38 = vsel %vm567_vm3, %v533_v37, 0 }
 0x1ca   : > { %578 = vmatpush.bf16.msra.mxu3 %v569_v38 }
 0x1cd   : > { %1036 = vmatmul.msk.bf16.vlgmr.msra.gmra.mxu3 %vm534_vm2, %v563_v41 }
 0x1ce   : > { %608 = vmatpush.bf16.xpose.msrb.mxu3 %v599_v39 }
 0x1d0   : > { %v465_v43 = vpop.permute.xlu0 %464 }
 0x1d1   : > { %468 = vst.msk [vmem:[#allocation3 + $0x4] sm:$0xf] %vm452_vm1, %v465_v43 }
 0x1d3   : > { %484 = vrot.lane.b32.xlu1 %v1468_v10, %s1316_s26 }
 0x1d6   : > { %704 = vmatpush.bf16.xpose.msra.mxu3 %v695_v42  ;;  %v820_v42 = vld [vmem:[%s1556_s5 + $0xc] sm:$0xf] }
 0x1d7   : > { %v825_v43 = vsel %vm567_vm3, %v820_v42, 0 }
 0x1d8   : > { %v591_v44 = vld [vmem:[#allocation3 + $0x4] sm:$0xf] }
 0x1d9   : > { %v628_v45 = vsel %vm567_vm3, %v591_v44, 0 }
 0x1da   : > { %637 = vmatpush.bf16.msrb.mxu0 %v628_v45 }
 0x1db   : > { %474 = vrot.lane.b32.xlu1 %v1468_v10, %s1317_s27 }
 0x1dd   : > { %1037 = vmatmul.msk.bf16.vlgmr.msrb.gmra.mxu3 %vm534_vm2, %v594_v46 }
 0x1ed   : > { %1041 = vmatmul.msk.bf16.vlgmr.msra.gmra.mxu3 %vm534_vm2, %v690_v36 }
 0x22d   : > { %v562_v47 = vpop.xlane.xlu1 %561 }
 0x22e   : > { %1133 = vrcp.f32 %v562_v47 }
 0x234   : > { %v1134_v52 = vpop.eup %1133 }
 0x245   : > { %v485_v48 = vpop.permute.xlu1 %484 }
 0x246   : > { %488 = vst.msk [vmem:[#allocation3 + $0xc] sm:$0xf] %vm452_vm1, %v485_v48 }
 0x24d   : > { %v475_v49 = vpop.permute.xlu1 %474  ;;  %v766_v50 = vld [vmem:[#allocation3 + $0xc] sm:$0xf] }
 0x24e   : > { %478 = vst.msk [vmem:[#allocation3 + $0x8] sm:$0xf] %vm452_vm1, %v475_v49  ;;  %v802_v51 = vsel %vm567_vm3, %v766_v50, 0 }
 0x24f   : > { %811 = vmatpush.bf16.msrb.mxu3 %v802_v51 }
 0x250   : > { %v580_v53 = vpop.f32.mrf.mxu3 }
 0x251   : > { %v585_v54 = vmul.f32 %v1134_v52, %v580_v53 }
 0x253   : > { %v586_v55 = vpack.c.bf16 %v585_v54, %v585_v54 }
 0x255   : > { %1040 = vmatmul.msk.bf16.vlgmr.msrb.gmra.mxu2 %vm534_vm2, %v586_v55  ;;  %v688_v56 = vld [vmem:[#allocation3 + $0x8] sm:$0xf] }
 0x256   : > { %v724_v57 = vsel %vm567_vm3, %v688_v56, 0 }
 0x257   : > { %733 = vmatpush.bf16.msra.mxu0 %v724_v57 }
 0x258   : > { %v582_v58 = vpop.f32.mrf.mxu3 }
 0x259   : > { %v1128_v58 = vld [vmem:[#allocation6] ss:$0 sm:$0xff] }
 0x260   : > { %v610_v59 = vpop.f32.mrf.mxu3 }
 0x261   : > { %v614_v60 = vsel %vm534_vm2, %v610_v59, -inf }
 0x262   : > { %615 = vmax.xlane.f32.xlu2 %v614_v60 }
 0x265   : > { %1044 = vmatmul.msk.bf16.vlgmr.msra.gmra.mxu2 %vm534_vm2, %v768_v61 }
 0x268   : > { %v612_v62 = vpop.f32.mrf.mxu3 }
 0x270   : > { %v706_v63 = vpop.f32.mrf.mxu3 }
 0x271   : > { %v710_v0 = vsel %vm534_vm2, %v706_v63, -inf }
 0x272   : > { %711 = vmax.xlane.f32.xlu2 %v710_v0 }
 0x278   : > { %v708_v1 = vpop.f32.mrf.mxu3 }
 0x2d5   : > { %v616_v2 = vpop.xlane.xlu2 %615 }
 0x2d6   : > { %v617_v4 = vsub.f32 %v610_v59, %v616_v2 }
 0x2d8   : > { %v618_v5 = vmul.f32 1.442695, %v617_v4  ;;  %v681_v6 = vpop.f32.mrf.mxu2 }
 0x2da   : > { %1135 = vpow2.f32 %v618_v5 }
 0x2e0   : > { %v1136_v7 = vpop.eup %1135  ;;  %v683_v8 = vpop.f32.mrf.mxu2 }
 0x2e1   : > { %v620_v9 = vsel %vm534_vm2, %v1136_v7, 0.0  ;;  %v623_v10 = vpack.c.bf16 %v1136_v7, %v1136_v7 }
 0x2e2   : > { %621 = vadd.xlane.f32.xlu2 %v620_v9 }
 0x2e3   : > { %1038 = vmatmul.msk.bf16.vlgmr.msrb.gmra.mxu0 %vm534_vm2, %v623_v10 }
 0x2e4   : > { %834 = vmatpush.bf16.msrb.mxu0 %v825_v43 }
 0x2e5   : > { %v712_v11 = vpop.xlane.xlu2 %711 }
 0x2e6   : > { %v713_v12 = vsub.f32 %v706_v63, %v712_v11  ;;  %v1318_v63 = vmov 32.0  }
 0x2e8   : > { %v714_v13 = vmul.f32 1.442695, %v713_v12  ;;  %v784_v14 = vpop.f32.mrf.mxu2 }
 0x2e9   : > { %v788_v15 = vsel %vm534_vm2, %v784_v14, -inf }
 0x2ea   : > { %1137 = vpow2.f32 %v714_v13  ;;  %789 = vmax.xlane.f32.xlu0 %v788_v15 }
 0x2f0   : > { %v1138_v16 = vpop.eup %1137  ;;  %v786_v17 = vpop.f32.mrf.mxu2 }
 0x2f1   : > { %v719_v18 = vpack.c.bf16 %v1138_v16, %v1138_v16  ;;  %v716_v19 = vsel %vm534_vm2, %v1138_v16, 0.0 }
 0x2f2   : > { %717 = vadd.xlane.f32.xlu1 %v716_v19 }
 0x2f3   : > { %1042 = vmatmul.msk.bf16.vlgmr.msra.gmra.mxu0 %vm534_vm2, %v719_v18 }
 0x355   : > { %v622_v24 = vpop.xlane.xlu2 %621 }
 0x356   : > { %1139 = vrcp.f32 %v622_v24 }
 0x35c   : > { %v1140_v27 = vpop.eup %1139 }
 0x35d   : > { %v790_v25 = vpop.xlane.xlu0 %789 }
 0x35e   : > { %v791_v26 = vsub.f32 %v784_v14, %v790_v25 }
 0x360   : > { %v792_v28 = vmul.f32 1.442695, %v791_v26  ;;  %v639_v29 = vpop.f32.mrf.mxu0 }
 0x361   : > { %v644_v30 = vmul.f32 %v1140_v27, %v639_v29 }
 0x362   : > { %1141 = vpow2.f32 %v792_v28 }
 0x363   : > { %v645_v31 = vpack.c.bf16 %v644_v30, %v644_v30 }
 0x365   : > { %1039 = vmatmul.msk.bf16.vlgmr.msrb.gmra.mxu1 %vm534_vm2, %v645_v31  ;;  %v718_v32 = vpop.xlane.xlu1 %717 }
 0x366   : > { %1143 = vrcp.f32 %v718_v32 }
 0x368   : > { %v1142_v33 = vpop.eup %1141  ;;  %v641_v34 = vpop.f32.mrf.mxu0 }
 0x369   : > { %v797_v35 = vpack.c.bf16 %v1142_v33, %v1142_v33  ;;  %v794_v36 = vsel %vm534_vm2, %v1142_v33, 0.0 }
 0x36a   : > { %795 = vadd.xlane.f32.xlu0 %v794_v36 }
 0x36b   : > { %1045 = vmatmul.msk.bf16.vlgmr.msrb.gmra.mxu3 %vm534_vm2, %v797_v35 }
 0x36c   : > { %v1144_v37 = vpop.eup %1143 }
 0x370   : > { %v735_v38 = vpop.f32.mrf.mxu0 }
 0x371   : > { %v740_v39 = vmul.f32 %v1144_v37, %v735_v38 }
 0x373   : > { %v741_v40 = vpack.c.bf16 %v740_v39, %v740_v39 }
 0x375   : > { %1043 = vmatmul.msk.bf16.vlgmr.msra.gmra.mxu1 %vm534_vm2, %v741_v40 }
 0x378   : > { %v737_v41 = vpop.f32.mrf.mxu0 }
 0x3dd   : > { %v796_v45 = vpop.xlane.xlu0 %795 }
 0x3de   : > { %1145 = vrcp.f32 %v796_v45 }
 0x3df   : > { %1147 = vrcp.f32 %v1318_v63 }
 0x3e2   : > { %v662_v44 = vpop.f32.mrf.mxu1 }
 0x3e3   : > { %v682_v50 = vadd.f32 %v681_v6, %v662_v44 }
 0x3e4   : > { %v1146_v47 = vpop.eup %1145 }
 0x3e5   : > { %v1148_v0 = vpop.eup %1147 }
 0x3e6   : > { %v853_v1 = vmul.f32 32.0, %v1148_v0  ;;  %vm857_vm4 = vweird.f32 %v1148_v0 }
 0x3e8   : > { %v854_v2 = vsub.f32 1.0, %v853_v1 }
 0x3ea   : > { %v664_v46 = vpop.f32.mrf.mxu1  ;;  %v855_v4 = vmul.f32 %v1148_v0, %v854_v2 }
 0x3ec   : > { %v856_v5 = vadd.f32 %v1148_v0, %v855_v4 }
 0x3ee   : > { %v813_v48 = vpop.f32.mrf.mxu3  ;;  %v858_v6 = vsel %vm857_vm4, %v1148_v0, %v856_v5 }
 0x3ef   : > { %v818_v49 = vmul.f32 %v1146_v47, %v813_v48 }
 0x3f1   : > { %v819_v51 = vpack.c.bf16 %v818_v49, %v818_v49 }
 0x3f2   : > { %v758_v52 = vpop.f32.mrf.mxu1 }
 0x3f3   : > { %v762_v53 = vadd.f32 %v758_v52, %v682_v50  ;;  %1046 = vmatmul.msk.bf16.vlgmr.msrb.gmra.mxu0 %vm534_vm2, %v819_v51 }
 0x3f6   : > { %v815_v54 = vpop.f32.mrf.mxu3 }
 0x3fa   : > { %v760_v55 = vpop.f32.mrf.mxu1 }
 0x470   : > { %v836_v56 = vpop.f32.mrf.mxu0 }
 0x471   : > { %v840_v57 = vadd.f32 %v836_v56, %v762_v53 }
 0x473   : > { %v841_v59 = vadd.f32 %v840_v57, %v1459_v3 }
 0x475   : > { %v846_v60 = vadd.f32 %v1128_v58, %v841_v59 }
 0x477   : > { %v849_v61 = vsel %vm434_vm0, %v846_v60, 0.0 }
 0x478   : > { %v838_v62 = vpop.f32.mrf.mxu0  ;;  %850 = vadd.xlane.f32.xlu2 %v849_v61 }
 0x4eb   : > { %v851_v7 = vpop.xlane.xlu2 %850 }
 0x4ec   : > { %v859_v8 = vmul.f32 %v858_v6, %v851_v7 }
 0x4ee   : > { %v860_v9 = vsub.f32 %v846_v60, %v859_v8 }
 0x4f0   : > { %v861_v10 = vmul.f32 %v860_v9, %v860_v9 }
 0x4f2   : > { %v862_v3 = vsel %vm434_vm0, %v861_v10, 0.0 }
 0x4f3   : > { %863 = vadd.xlane.f32.xlu0 %v862_v3 }
 0x566   : > { %v864_v11 = vpop.xlane.xlu0 %863 }
 0x567   : > { %v865_v12 = vmul.f32 %v864_v11, %v858_v6 }
 0x569   : > { %v866_v13 = vadd.f32 1e-05, %v865_v12 }
 0x56b   : > { %1149 = vrsqrt.f32 %v866_v13  ;;  %vm873_vm6 = vweird.f32 %v866_v13 }
 0x571   : > { %v1150_v14 = vpop.eup %1149 }
 0x572   : > { %v868_v15 = vmul.f32 %v1150_v14, %v866_v13  ;;  %vm874_vm5 = vweird.f32 %v1150_v14 }
 0x573   : > { %vm875_vm7 = vmor %vm873_vm6, %vm874_vm5 }
 0x574   : > { %v869_v16 = vmul.f32 %v1150_v14, %v868_v15 }
 0x576   : > { %v870_v17 = vmul.f32 0.5, %v869_v16 }
 0x578   : > { %v871_v18 = vsub.f32 1.5, %v870_v17 }
 0x57a   : > { %v872_v19 = vmul.f32 %v1150_v14, %v871_v18 }
 0x57c   : > { %v876_v21 = vsel %vm875_vm7, %v1150_v14, %v872_v19 }
 0x57d   : > { %v877_v23 = vmul.f32 %v876_v21, %v860_v9 }
 0x57f   : > { %v881_v24 = vmul.f32 %v1129_v20, %v877_v23 }
 0x581   : > { %v885_v25 = vadd.f32 %v1130_v22, %v881_v24 }
 0x583   : > { %886 = vst.msk [vmem:[%s406_s14] sm:$0xff] %vm434_vm0, %v885_v25 }
 0x584 PF: > { %s22_s11 = sadd.s32 1, %s1305_s11   ;;  %s1564_s30 = smov %s1301_s10 }
 0x585   : > { %p19_p8 = scmp.ge.s32.totalorder %s22_s11, 4   ;;  %s1565_s10 = smov %s1567_s21 }
 0x587   :  { %21 = sbr.rel (!%p19_p8) target bundleno = 4 (0x4), region = 120 }
 0x58c   :  { %912 = vsyncpa [#allocation5], 1 }
 0x58d   :  { %914 = vsyncpa [#allocation5 + $0x1], 1 }
 0x58e   :  { %915 = vsyncpa [#allocation7], 1 }
 0x58f   :  { %916 = vsyncpa [#allocation10], 1 }

// kernel: transformer_seq2seq_forward.16
= control target key start
LH: loop header
LB: loop body
LE: loop exit
PB: predicated region body
PF: predicated region fallthrough
CT: control target
= control target key end

     0   :  { %15 = vsyncpa [#allocation5], 0  ;;  %s1624_s0 = inlined_call_operand.vmem [shape: f32[2,8,32], index: 0, kind: input, shape index: {}]   ;;  %s1625_s1 = inlined_call_operand.vmem [shape: f32[2,8,32], index: 1, kind: input, shape index: {}]   ;;  %s1626_s2 = inlined_call_operand.vmem [shape: bf16[32,32], index: 2, kind: input, shape index: {}]   ;;  %s1627_s3 = inlined_call_operand.vmem [shape: f32[1,32], index: 3, kind: input, shape index: {}]   ;;  %s1628_s4 = inlined_call_operand.vmem [shape: bf16[32,64], index: 4, kind: input, shape index: {}]   ;;  %s1629_s5 = inlined_call_operand.hbm [shape: f32[1,64], index: 5, kind: input, shape index: {}]   ;;  %s1630_s6 = inlined_call_operand.vmem [shape: bf16[32,32], index: 6, kind: input, shape index: {}]   ;;  %s1631_s7 = inlined_call_operand.hbm [shape: f32[1,32], index: 7, kind: input, shape index: {}]   ;;  %s1632_s8 = inlined_call_operand.hbm [shape: f32[1,32], index: 8, kind: input, shape index: {}]   ;;  %s1633_s9 = inlined_call_operand.hbm [shape: f32[1,32], index: 9, kind: input, shape index: {}]   ;;  %s1634_s10 = inlined_call_operand.vmem [shape: f32[2,8,32], index: 10, kind: output, shape index: {}]  }
   0x1   :  { %16 = vsyncpa [#allocation7], 0 }
   0x2   :  { %17 = vsyncpa [#allocation10], 0  ;;  %s1441_s13 = smov 0   ;;  %s1443_s14 = smov 0  }
   0x3   :  { %s1445_s15 = smov 0  }
   0x4 LB: > { %s326_s18 = sshll.u32 %s1631_s7, 4  ;;  %s1068_s19 = sadd.s32 4294967295, %s1372_s15   ;;  %s1372_s15 = sphi %s1445_s15, %s23_s15   ;;  %s1368_s14 = sphi %s1443_s14, %s1639_s14   ;;  %s1364_s13 = sphi %s1441_s13, %s1638_s13   ;;  %s327_s18 = int_to_ptr.hbm [resolvable:$true] %s326_s18 }
   0x5   : > { %p1070_p0 = scmp.ge.s32.totalorder %s1372_s15, 1  ;;  %p290_p1 = scmp.lt.s32.totalorder %s1372_s15, 3 }
   0x6   : > { %p1462_p2 = scmp.eq.s32.totalorder %s1068_s19, 0  ;;  %s1374_s22 = smov [#allocation6]  }
   0x7   : > { %p1466_p3 = pnand %p1070_p0, %p290_p1  ;;  %s328_s23 = sshll.u32 %s1374_s22, 4  ;;  %s329_s23 = int_to_ptr.vmem [resolvable:$true] %s328_s23 }
   0x8   : > { %s35_s25 = sadd.s32 1, %s1368_s14  ;;  %s311_s28 = sshll.u32 %s1629_s5, 4  ;;  %s312_s28 = int_to_ptr.hbm [resolvable:$true] %s311_s28 }
   0x9   : > { %p1136_p4 = pneg %p1466_p3  ;;  %p37_p6 = scmp.ge.s32.totalorder %s35_s25, 2 }
   0xa   : > { %s338_s11 = sshll.u32 %s1632_s8, 4  ;;  %s1375_s12 = smov [#allocation4]   ;;  %s339_s11 = int_to_ptr.hbm [resolvable:$true] %s338_s11 }
   0xb   : > { %p1474_p5 = pnand %p1462_p2, %p1136_p4  ;;  %s1641_s25 = smov (%p37_p6, %s35_s25), 0 }
   0xc   : > { %s313_s16 = sshll.u32 %s1375_s12, 4  ;;  %s1376_s17 = smov [#allocation8]   ;;  %s314_s16 = int_to_ptr.vmem [resolvable:$true] %s313_s16 }
   0xd   : > { %1142 = dma.hbm_to_vmem [thread:$0]  (!%p1474_p5), %s327_s18, 16, %s329_s23, [#allocation7]  }
   0xe   : > { %1139 = dma.hbm_to_vmem [thread:$0]  (!%p1474_p5), %s312_s28, 16, %s314_s16, [#allocation5]  }
   0xf   : > { %s340_s19 = sshll.u32 %s1376_s17, 4  ;;  %s350_s27 = sshll.u32 %s1633_s9, 4  ;;  %s341_s19 = int_to_ptr.vmem [resolvable:$true] %s340_s19  ;;  %s351_s27 = int_to_ptr.hbm [resolvable:$true] %s350_s27 }
  0x10   : > { %1145 = dma.hbm_to_vmem [thread:$0]  (!%p1474_p5), %s339_s11, 16, %s341_s19, [#allocation7]  }
  0x11   : > { %s1377_s18 = smov [#allocation9]   ;;  %382 = sbr.rel (%p1466_p3) target bundleno = 1412 (0x584), region = 60 }
  0x12   : > { %s352_s23 = sshll.u32 %s1377_s18, 4  ;;  %s353_s23 = int_to_ptr.vmem [resolvable:$true] %s352_s23 }
  0x13   : > { %1148 = dma.hbm_to_vmem [thread:$0]  (!%p1474_p5), %s351_s27, 16, %s353_s23, [#allocation10]  }
  0x16   : > { %1351 = dma.done.wait (%p1462_p2), [#allocation5], 16  }
  0x17   : > { %1353 = vsyncadd (%p1462_p2), [#allocation5], 4294967280 }
  0x18   : > { %1355 = dma.done.wait (%p1462_p2), [#allocation7], 32  }
  0x19   : > { %1357 = vsyncadd (%p1462_p2), [#allocation7], 4294967264 }
  0x1a   : > { %1359 = dma.done.wait (%p1462_p2), [#allocation10], 16  }
  0x1b   : > { %1361 = vsyncadd (%p1462_p2), [#allocation10], 4294967280  ;;  %p444_p7 = scmp.lt.s32.totalorder %s1364_s13, 1  ;;  %v1117_v0 = vld [vmem:[%s1628_s4 + $0x8] sm:$0xff]  ;;  %v1116_v2 = vld [vmem:[%s1628_s4] sm:$0xff]  ;;  %vm489_vm0 = vcmask 261120  }
  0x1c   : > { %v1119_v1 = vld [vmem:[%s1626_s2 + $0x8] sm:$0xff]  ;;  %v1118_v4 = vld [vmem:[%s1626_s2] sm:$0xff]  ;;  %499 = vmatpush.bf16.msra.mxu0 %v1117_v0  ;;  %vm507_vm1 = vcmask 60416   ;;  %s1378_s18 = smov 104   ;;  %s1379_s23 = smov 120   ;;  %vm587_vm2 = vcmask 64512  }
  0x1d   : > { %s1643_s13 = smov (!%p444_p7, %s1364_s13), 1  ;;  %576 = vmatpush.bf16.msra.mxu1 %v1119_v1  ;;  %v1193_v8 = vld [vmem:[#allocation4] ss:$0 sm:$0xff]  ;;  %vm620_vm3 = vcmask 1043456   ;;  %s1382_s16 = smov 88  }
  0x1e   : > { %s1514_s21 = sshll.u32 %s1643_s13, 3  ;;  %v1194_v13 = vld [vmem:[%s1627_s3] ss:$0 sm:$0xff]  ;;  %s1383_s17 = smov 72  }
  0x1f   : > { %s454_s29 = scalar_lea.vmem %s1625_s1, %s1514_s21  ;;  %s450_s12 = scalar_lea.vmem %s1624_s0, %s1514_s21  ;;  %v640_v21 = vld [vmem:[%s1630_s6] sm:$0xf] }
  0x20   : > { %v467_v3 = vld [vmem:[%s454_s29] sm:$0xff]  ;;  %500 = vmatpush.bf16.msra.mxu0 %v1116_v2  ;;  %s1380_s29 = smov 112   ;;  %v723_v22 = vsel %vm620_vm3, %v640_v21, 0  ;;  %s1384_s20 = smov 80  }
  0x21   : > { %v1536_v5 = vld [vmem:[%s450_s12] sm:$0xff]  ;;  %v468_v6 = vpack.c.bf16 %v467_v3, %v467_v3  ;;  %577 = vmatpush.bf16.msra.mxu1 %v1118_v4  ;;  %s1381_s12 = smov 96   ;;  %s461_s28 = scalar_lea.vmem %s1634_s10, %s1514_s21 }
  0x22   : > { %v545_v7 = vpack.c.bf16 %v1536_v5, %v1536_v5 }
  0x23   : > { %1092 = vmatmul.msk.bf16.vlgmr.msra.gmra.mxu0 %vm489_vm0, %v468_v6 }
  0x24   : > { %1101 = vmatmul.msk.bf16.vlgmr.msra.gmra.mxu1 %vm489_vm0, %v545_v7 }
  0xa0   : > { %v502_v9 = vpop.f32.mrf.mxu0 }
  0xa1   : > { %v579_v10 = vpop.f32.mrf.mxu1  ;;  %v503_v11 = vadd.f32 %v1193_v8, %v502_v9 }
  0xa2   : > { %v580_v16 = vadd.f32 %v1194_v13, %v579_v10 }
  0xa3   : > { %v1542_v12 = vpack.c.bf16 %v503_v11, %v503_v11 }
  0xa4   : > { %v583_v18 = vmul.f32 0.35355338, %v580_v16 }
  0xa5   : > { %534 = vrot.lane.b32.xlu2 %v1542_v12, %s1378_s18  ;;  %514 = vrot.lane.b32.xlu1 %v1542_v12, %s1379_s23  ;;  %508 = vst.msk [vmem:[#allocation2] sm:$0xf] %vm507_vm1, %v1542_v12 }
  0xa6   : > { %v584_v20 = vpack.c.bf16 %v583_v18, %v583_v18 }
  0xa8   : > { %v504_v14 = vpop.f32.mrf.mxu0 }
  0xa9   : > { %v581_v15 = vpop.f32.mrf.mxu1 }
  0xac   : > { %v585_v17 = vld [vmem:[#allocation2] sm:$0xf] }
  0xad   : > { %524 = vrot.lane.b32.xlu2 %v1542_v12, %s1380_s29  ;;  %v592_v19 = vsel %vm587_vm2, %v585_v17, 0 }
  0xae   : > { %601 = vmatpush.bf16.xpose.msra.mxu2 %v592_v19 }
  0xb5   : > { %646 = vrot.lane.b32.xlu2 %v584_v20, %s1379_s23  ;;  %1102 = vmatmul.msk.bf16.vlgmr.msra.gmra.mxu2 %vm587_vm2, %v584_v20 }
  0xb6   : > { %732 = vmatpush.bf16.msrb.mxu2 %v723_v22  ;;  %v699_v22 = vld [vmem:[%s1630_s6 + $0x4] sm:$0xf] }
  0xbd   : > { %820 = vrot.lane.b32.xlu2 %v584_v20, %s1378_s18 }
  0xff   : > { %v535_v23 = vpop.permute.xlu2 %534 }
 0x100   : > { %538 = vst.msk [vmem:[#allocation2 + $0xc] sm:$0xf] %vm507_vm1, %v535_v23  ;;  %v704_v23 = vsel %vm620_vm3, %v699_v22, 0  ;;  %v1196_v22 = vld [vmem:[#allocation8] ss:$0 sm:$0xff] }
 0x101   : > { %713 = vmatpush.bf16.msrb.mxu1 %v704_v23 }
 0x107   : > { %v525_v24 = vpop.permute.xlu2 %524  ;;  %v817_v25 = vld [vmem:[#allocation2 + $0xc] sm:$0xf] }
 0x108   : > { %528 = vst.msk [vmem:[#allocation2 + $0x8] sm:$0xf] %vm507_vm1, %v525_v24  ;;  %v826_v26 = vsel %vm587_vm2, %v817_v25, 0  ;;  %v795_v24 = vld [vmem:[%s1630_s6 + $0x8] sm:$0xf] }
 0x109   : > { %835 = vmatpush.bf16.xpose.msra.mxu2 %v826_v26  ;;  %v800_v25 = vsel %vm620_vm3, %v795_v24, 0  ;;  %v1197_v24 = vld [vmem:[#allocation9] ss:$0 sm:$0xff] }
 0x10a   : > { %809 = vmatpush.bf16.msra.mxu1 %v800_v25 }
 0x10f   : > { %v739_v42 = vld [vmem:[#allocation2 + $0x8] sm:$0xf]  ;;  %v647_v48 = vpop.permute.xlu2 %646 }
 0x110   : > { %v748_v44 = vsel %vm587_vm2, %v739_v42, 0 }
 0x117   : > { %v515_v27 = vpop.permute.xlu1 %514  ;;  %v821_v63 = vpop.permute.xlu2 %820 }
 0x118   : > { %518 = vst.msk [vmem:[#allocation2 + $0x4] sm:$0xf] %vm507_vm1, %v515_v27 }
 0x11f   : > { %v642_v37 = vld [vmem:[#allocation2 + $0x4] sm:$0xf] }
 0x120   : > { %v652_v41 = vsel %vm587_vm2, %v642_v37, 0 }
 0x138   : > { %v603_v28 = vpop.f32.mrf.mxu2 }
 0x139   : > { %v607_v29 = vsel %vm587_vm2, %v603_v28, -inf }
 0x13a   : > { %608 = vmax.xlane.f32.xlu0 %v607_v29 }
 0x140   : > { %v605_v30 = vpop.f32.mrf.mxu2 }
 0x14e   : > { %510 = vrot.lane.b32.xlu0 %v1542_v12, %s1381_s12 }
 0x156   : > { %742 = vrot.lane.b32.xlu0 %v584_v20, %s1380_s29 }
 0x15e   : > { %519 = vrot.lane.b32.xlu0 %v1542_v12, %s1382_s16 }
 0x1ad   : > { %v609_v31 = vpop.xlane.xlu0 %608 }
 0x1ae   : > { %v610_v32 = vsub.f32 %v603_v28, %v609_v31 }
 0x1b0   : > { %v611_v33 = vmul.f32 1.442695, %v610_v32 }
 0x1b2   : > { %1198 = vpow2.f32 %v611_v33 }
 0x1b8   : > { %v1199_v34 = vpop.eup %1198 }
 0x1b9   : > { %v613_v35 = vsel %vm587_vm2, %v1199_v34, 0.0  ;;  %v616_v43 = vpack.c.bf16 %v1199_v34, %v1199_v34 }
 0x1ba   : > { %614 = vadd.xlane.f32.xlu1 %v613_v35 }
 0x1c0   : > { %v511_v36 = vpop.permute.xlu0 %510 }
 0x1c1   : > { %513 = vst.msk [vmem:[#allocation3] sm:$0xf] %vm507_vm1, %v511_v36 }
 0x1c8   : > { %v743_v38 = vpop.permute.xlu0 %742  ;;  %v586_v39 = vld [vmem:[#allocation3] sm:$0xf] }
 0x1c9   : > { %v622_v40 = vsel %vm620_vm3, %v586_v39, 0 }
 0x1ca   : > { %631 = vmatpush.bf16.msra.mxu3 %v622_v40 }
 0x1cd   : > { %1103 = vmatmul.msk.bf16.vlgmr.msra.gmra.mxu3 %vm587_vm2, %v616_v43 }
 0x1ce   : > { %661 = vmatpush.bf16.xpose.msrb.mxu3 %v652_v41 }
 0x1d0   : > { %v520_v45 = vpop.permute.xlu0 %519 }
 0x1d1   : > { %523 = vst.msk [vmem:[#allocation3 + $0x4] sm:$0xf] %vm507_vm1, %v520_v45 }
 0x1d3   : > { %539 = vrot.lane.b32.xlu1 %v1542_v12, %s1383_s17 }
 0x1d6   : > { %757 = vmatpush.bf16.xpose.msra.mxu3 %v748_v44  ;;  %v873_v44 = vld [vmem:[%s1630_s6 + $0xc] sm:$0xf] }
 0x1d7   : > { %v878_v45 = vsel %vm620_vm3, %v873_v44, 0 }
 0x1d8   : > { %v644_v46 = vld [vmem:[#allocation3 + $0x4] sm:$0xf] }
 0x1d9   : > { %v681_v47 = vsel %vm620_vm3, %v644_v46, 0 }
 0x1da   : > { %690 = vmatpush.bf16.msrb.mxu0 %v681_v47 }
 0x1db   : > { %529 = vrot.lane.b32.xlu1 %v1542_v12, %s1384_s20 }
 0x1dd   : > { %1104 = vmatmul.msk.bf16.vlgmr.msrb.gmra.mxu3 %vm587_vm2, %v647_v48 }
 0x1ed   : > { %1108 = vmatmul.msk.bf16.vlgmr.msra.gmra.mxu3 %vm587_vm2, %v743_v38 }
 0x22d   : > { %v615_v49 = vpop.xlane.xlu1 %614 }
 0x22e   : > { %1200 = vrcp.f32 %v615_v49 }
 0x234   : > { %v1201_v54 = vpop.eup %1200 }
 0x245   : > { %v540_v50 = vpop.permute.xlu1 %539 }
 0x246   : > { %543 = vst.msk [vmem:[#allocation3 + $0xc] sm:$0xf] %vm507_vm1, %v540_v50 }
 0x24d   : > { %v530_v51 = vpop.permute.xlu1 %529  ;;  %v819_v52 = vld [vmem:[#allocation3 + $0xc] sm:$0xf] }
 0x24e   : > { %533 = vst.msk [vmem:[#allocation3 + $0x8] sm:$0xf] %vm507_vm1, %v530_v51  ;;  %v855_v53 = vsel %vm620_vm3, %v819_v52, 0 }
 0x24f   : > { %864 = vmatpush.bf16.msrb.mxu3 %v855_v53 }
 0x250   : > { %v633_v55 = vpop.f32.mrf.mxu3 }
 0x251   : > { %v638_v56 = vmul.f32 %v1201_v54, %v633_v55 }
 0x253   : > { %v639_v57 = vpack.c.bf16 %v638_v56, %v638_v56 }
 0x255   : > { %1107 = vmatmul.msk.bf16.vlgmr.msrb.gmra.mxu2 %vm587_vm2, %v639_v57  ;;  %v741_v58 = vld [vmem:[#allocation3 + $0x8] sm:$0xf] }
 0x256   : > { %v777_v59 = vsel %vm620_vm3, %v741_v58, 0 }
 0x257   : > { %786 = vmatpush.bf16.msra.mxu0 %v777_v59 }
 0x258   : > { %v635_v60 = vpop.f32.mrf.mxu3 }
 0x259   : > { %v1195_v60 = vld [vmem:[#allocation6] ss:$0 sm:$0xff] }
 0x260   : > { %v663_v61 = vpop.f32.mrf.mxu3 }
 0x261   : > { %v667_v62 = vsel %vm587_vm2, %v663_v61, -inf }
 0x262   : > { %668 = vmax.xlane.f32.xlu2 %v667_v62 }
 0x265   : > { %1111 = vmatmul.msk.bf16.vlgmr.msra.gmra.mxu2 %vm587_vm2, %v821_v63 }
 0x268   : > { %v665_v0 = vpop.f32.mrf.mxu3 }
 0x270   : > { %v759_v1 = vpop.f32.mrf.mxu3 }
 0x271   : > { %v763_v2 = vsel %vm587_vm2, %v759_v1, -inf }
 0x272   : > { %764 = vmax.xlane.f32.xlu2 %v763_v2 }
 0x278   : > { %v761_v3 = vpop.f32.mrf.mxu3 }
 0x2d5   : > { %v669_v4 = vpop.xlane.xlu2 %668 }
 0x2d6   : > { %v670_v6 = vsub.f32 %v663_v61, %v669_v4 }
 0x2d8   : > { %v671_v7 = vmul.f32 1.442695, %v670_v6  ;;  %v734_v8 = vpop.f32.mrf.mxu2 }
 0x2da   : > { %1202 = vpow2.f32 %v671_v7 }
 0x2e0   : > { %v1203_v9 = vpop.eup %1202  ;;  %v736_v10 = vpop.f32.mrf.mxu2 }
 0x2e1   : > { %v673_v11 = vsel %vm587_vm2, %v1203_v9, 0.0  ;;  %v676_v12 = vpack.c.bf16 %v1203_v9, %v1203_v9 }
 0x2e2   : > { %674 = vadd.xlane.f32.xlu2 %v673_v11 }
 0x2e3   : > { %1105 = vmatmul.msk.bf16.vlgmr.msrb.gmra.mxu0 %vm587_vm2, %v676_v12 }
 0x2e4   : > { %887 = vmatpush.bf16.msrb.mxu0 %v878_v45 }
 0x2e5   : > { %v765_v13 = vpop.xlane.xlu2 %764 }
 0x2e6   : > { %v766_v14 = vsub.f32 %v759_v1, %v765_v13  ;;  %v1385_v1 = vmov 32.0  }
 0x2e8   : > { %v767_v15 = vmul.f32 1.442695, %v766_v14  ;;  %v837_v16 = vpop.f32.mrf.mxu2 }
 0x2e9   : > { %v841_v17 = vsel %vm587_vm2, %v837_v16, -inf }
 0x2ea   : > { %1204 = vpow2.f32 %v767_v15  ;;  %842 = vmax.xlane.f32.xlu0 %v841_v17 }
 0x2f0   : > { %v1205_v18 = vpop.eup %1204  ;;  %v839_v19 = vpop.f32.mrf.mxu2 }
 0x2f1   : > { %v772_v20 = vpack.c.bf16 %v1205_v18, %v1205_v18  ;;  %v769_v21 = vsel %vm587_vm2, %v1205_v18, 0.0 }
 0x2f2   : > { %770 = vadd.xlane.f32.xlu1 %v769_v21 }
 0x2f3   : > { %1109 = vmatmul.msk.bf16.vlgmr.msra.gmra.mxu0 %vm587_vm2, %v772_v20 }
 0x355   : > { %v675_v26 = vpop.xlane.xlu2 %674 }
 0x356   : > { %1206 = vrcp.f32 %v675_v26 }
 0x35c   : > { %v1207_v29 = vpop.eup %1206 }
 0x35d   : > { %v843_v27 = vpop.xlane.xlu0 %842 }
 0x35e   : > { %v844_v28 = vsub.f32 %v837_v16, %v843_v27 }
 0x360   : > { %v845_v30 = vmul.f32 1.442695, %v844_v28  ;;  %v692_v31 = vpop.f32.mrf.mxu0 }
 0x361   : > { %v697_v32 = vmul.f32 %v1207_v29, %v692_v31 }
 0x362   : > { %1208 = vpow2.f32 %v845_v30 }
 0x363   : > { %v698_v33 = vpack.c.bf16 %v697_v32, %v697_v32 }
 0x365   : > { %1106 = vmatmul.msk.bf16.vlgmr.msrb.gmra.mxu1 %vm587_vm2, %v698_v33  ;;  %v771_v34 = vpop.xlane.xlu1 %770 }
 0x366   : > { %1210 = vrcp.f32 %v771_v34 }
 0x368   : > { %v1209_v35 = vpop.eup %1208  ;;  %v694_v36 = vpop.f32.mrf.mxu0 }
 0x369   : > { %v850_v37 = vpack.c.bf16 %v1209_v35, %v1209_v35  ;;  %v847_v38 = vsel %vm587_vm2, %v1209_v35, 0.0 }
 0x36a   : > { %848 = vadd.xlane.f32.xlu0 %v847_v38 }
 0x36b   : > { %1112 = vmatmul.msk.bf16.vlgmr.msrb.gmra.mxu3 %vm587_vm2, %v850_v37 }
 0x36c   : > { %v1211_v39 = vpop.eup %1210 }
 0x370   : > { %v788_v40 = vpop.f32.mrf.mxu0 }
 0x371   : > { %v793_v41 = vmul.f32 %v1211_v39, %v788_v40 }
 0x373   : > { %v794_v42 = vpack.c.bf16 %v793_v41, %v793_v41 }
 0x375   : > { %1110 = vmatmul.msk.bf16.vlgmr.msra.gmra.mxu1 %vm587_vm2, %v794_v42 }
 0x378   : > { %v790_v43 = vpop.f32.mrf.mxu0 }
 0x3dd   : > { %v849_v47 = vpop.xlane.xlu0 %848 }
 0x3de   : > { %1212 = vrcp.f32 %v849_v47 }
 0x3df   : > { %1214 = vrcp.f32 %v1385_v1 }
 0x3e2   : > { %v715_v46 = vpop.f32.mrf.mxu1 }
 0x3e3   : > { %v735_v52 = vadd.f32 %v734_v8, %v715_v46 }
 0x3e4   : > { %v1213_v49 = vpop.eup %1212 }
 0x3e5   : > { %v1215_v2 = vpop.eup %1214 }
 0x3e6   : > { %v906_v3 = vmul.f32 32.0, %v1215_v2  ;;  %vm910_vm4 = vweird.f32 %v1215_v2 }
 0x3e8   : > { %v907_v4 = vsub.f32 1.0, %v906_v3 }
 0x3ea   : > { %v717_v48 = vpop.f32.mrf.mxu1  ;;  %v908_v6 = vmul.f32 %v1215_v2, %v907_v4 }
 0x3ec   : > { %v909_v7 = vadd.f32 %v1215_v2, %v908_v6 }
 0x3ee   : > { %v866_v50 = vpop.f32.mrf.mxu3  ;;  %v911_v8 = vsel %vm910_vm4, %v1215_v2, %v909_v7 }
 0x3ef   : > { %v871_v51 = vmul.f32 %v1213_v49, %v866_v50 }
 0x3f1   : > { %v872_v53 = vpack.c.bf16 %v871_v51, %v871_v51 }
 0x3f2   : > { %v811_v54 = vpop.f32.mrf.mxu1 }
 0x3f3   : > { %v815_v55 = vadd.f32 %v811_v54, %v735_v52  ;;  %1113 = vmatmul.msk.bf16.vlgmr.msrb.gmra.mxu0 %vm587_vm2, %v872_v53 }
 0x3f6   : > { %v868_v56 = vpop.f32.mrf.mxu3 }
 0x3fa   : > { %v813_v57 = vpop.f32.mrf.mxu1 }
 0x470   : > { %v889_v58 = vpop.f32.mrf.mxu0 }
 0x471   : > { %v893_v59 = vadd.f32 %v889_v58, %v815_v55 }
 0x473   : > { %v894_v61 = vadd.f32 %v893_v59, %v1536_v5 }
 0x475   : > { %v899_v62 = vadd.f32 %v1195_v60, %v894_v61 }
 0x477   : > { %v902_v63 = vsel %vm489_vm0, %v899_v62, 0.0 }
 0x478   : > { %v891_v0 = vpop.f32.mrf.mxu0  ;;  %903 = vadd.xlane.f32.xlu2 %v902_v63 }
 0x4eb   : > { %v904_v9 = vpop.xlane.xlu2 %903 }
 0x4ec   : > { %v912_v10 = vmul.f32 %v911_v8, %v904_v9 }
 0x4ee   : > { %v913_v11 = vsub.f32 %v899_v62, %v912_v10 }
 0x4f0   : > { %v914_v12 = vmul.f32 %v913_v11, %v913_v11 }
 0x4f2   : > { %v915_v5 = vsel %vm489_vm0, %v914_v12, 0.0 }
 0x4f3   : > { %916 = vadd.xlane.f32.xlu0 %v915_v5 }
 0x566   : > { %v917_v13 = vpop.xlane.xlu0 %916 }
 0x567   : > { %v918_v14 = vmul.f32 %v917_v13, %v911_v8 }
 0x569   : > { %v919_v15 = vadd.f32 1e-05, %v918_v14 }
 0x56b   : > { %1216 = vrsqrt.f32 %v919_v15  ;;  %vm926_vm6 = vweird.f32 %v919_v15 }
 0x571   : > { %v1217_v16 = vpop.eup %1216 }
 0x572   : > { %v921_v17 = vmul.f32 %v1217_v16, %v919_v15  ;;  %vm927_vm5 = vweird.f32 %v1217_v16 }
 0x573   : > { %vm928_vm7 = vmor %vm926_vm6, %vm927_vm5 }
 0x574   : > { %v922_v18 = vmul.f32 %v1217_v16, %v921_v17 }
 0x576   : > { %v923_v19 = vmul.f32 0.5, %v922_v18 }
 0x578   : > { %v924_v20 = vsub.f32 1.5, %v923_v19 }
 0x57a   : > { %v925_v21 = vmul.f32 %v1217_v16, %v924_v20 }
 0x57c   : > { %v929_v23 = vsel %vm928_vm7, %v1217_v16, %v925_v21 }
 0x57d   : > { %v930_v25 = vmul.f32 %v929_v23, %v913_v11 }
 0x57f   : > { %v934_v26 = vmul.f32 %v1196_v22, %v930_v25 }
 0x581   : > { %v938_v27 = vadd.f32 %v1197_v24, %v934_v26 }
 0x583   : > { %939 = vst.msk [vmem:[%s461_s28] sm:$0xff] %vm489_vm0, %v938_v27 }
 0x584 PF: > { %s23_s15 = sadd.s32 1, %s1372_s15   ;;  %s1638_s13 = smov %s1368_s14 }
 0x585   : > { %p20_p8 = scmp.ge.s32.totalorder %s23_s15, 4   ;;  %s1639_s14 = smov %s1641_s25 }
 0x587   :  { %22 = sbr.rel (!%p20_p8) target bundleno = 4 (0x4), region = 126 }
 0x58c   :  { %965 = vsyncpa [#allocation5], 1 }
 0x58d   :  { %967 = vsyncpa [#allocation5 + $0x1], 1 }
 0x58e   :  { %968 = vsyncpa [#allocation7], 1 }
 0x58f   :  { %969 = vsyncpa [#allocation10], 1 }

// kernel: transformer_seq2seq_forward.21
= control target key start
LH: loop header
LB: loop body
LE: loop exit
PB: predicated region body
PF: predicated region fallthrough
CT: control target
= control target key end

     0   :  { %s448_s12 = smov 0   ;;  %s450_s13 = smov 0   ;;  %s487_s0 = inlined_call_operand.vmem [shape: f32[16,32], index: 0, kind: input, shape index: {}]   ;;  %s488_s1 = inlined_call_operand.vmem [shape: bf16[32,128], index: 1, kind: input, shape index: {}]   ;;  %s489_s2 = inlined_call_operand.vmem [shape: f32[1,128], index: 2, kind: input, shape index: {}]   ;;  %s490_s3 = inlined_call_operand.vmem [shape: f32[16,128], index: 3, kind: output, shape index: {}]  }
   0x1   :  { %s452_s14 = smov 0  }
   0x2 LB: > { %s25_s15 = sadd.s32 1, %s422_s13  ;;  %p363_p0 = scmp.ge.s32.totalorder %s426_s14, 1  ;;  %s426_s14 = sphi %s452_s14, %s13_s14   ;;  %s422_s13 = sphi %s450_s13, %s492_s13   ;;  %s418_s12 = sphi %s448_s12, %s491_s12  }
   0x3   : > { %p27_p1 = scmp.ge.s32.totalorder %s25_s15, 2  ;;  %p167_p2 = scmp.lt.s32.totalorder %s426_s14, 3 }
   0x5   : > { %s494_s15 = smov (%p27_p1, %s25_s15), 0  ;;  %p168_p3 = pnand %p363_p0, %p167_p2 }
   0x6   : > { %p199_p4 = scmp.lt.s32.totalorder (!%p168_p3), %s418_s12, 1 }
   0x7   : > { %171 = sbr.rel (%p168_p3) target bundleno = 154 (0x9a), region = 32 }
   0xc   : > { %v378_v0 = vld [vmem:[%s488_s1 + $0x8] sm:$0xff]  ;;  %v377_v1 = vld [vmem:[%s488_s1] sm:$0xff]  ;;  %s496_s12 = smov (!%p199_p4, %s418_s12), 1  ;;  %vm240_vm0 = vcmask 261120  }
   0xd   : > { %250 = vmatpush.bf16.msra.mxu0 %v378_v0  ;;  %s364_s20 = sshll.u32 %s496_s12, 3  ;;  %v403_v4 = vld [vmem:[%s489_s2] ss:$0 sm:$0xff] }
   0xe   : > { %s202_s23 = scalar_lea.vmem %s487_s0, %s364_s20  ;;  %s216_s28 = scalar_lea.vmem %s490_s3, %s364_s20 }
   0xf   : > { %v218_v2 = vld [vmem:[%s202_s23] sm:$0xff] }
  0x10   : > { %v219_v3 = vpack.c.bf16 %v218_v2, %v218_v2 }
  0x11   : > { %251 = vmatpush.bf16.msra.mxu0 %v377_v1 }
  0x14   : > { %374 = vmatmul.msk.bf16.vlgmr.msra.gmra.mxu0 %vm240_vm0, %v219_v3 }
  0x91   : > { %v253_v5 = vpop.f32.mrf.mxu0 }
  0x92   : > { %v254_v6 = vadd.f32 %v403_v4, %v253_v5 }
  0x94   : > { %257 = vst [vmem:[%s216_s28] sm:$0xff] %v254_v6 }
  0x99   : > { %v255_v7 = vpop.f32.mrf.mxu0 }
  0x9a PF: > { %s13_s14 = sadd.s32 1, %s426_s14   ;;  %s491_s12 = smov %s422_s13 }
  0x9b   : > { %p10_p5 = scmp.ge.s32.totalorder %s13_s14, 4   ;;  %s492_s13 = smov %s494_s15 }
  0x9d   :  { %12 = sbr.rel (!%p10_p5) target bundleno = 2 (0x2), region = 68 }

</bundles_post_ra>
